<compile_context>
chip_gen: v6e
topology: v6e:2x2x1
jax: 0.10.0
libtpu: 0.0.40
codegen_flags: <defaults>
</compile_context>

<pallas_src>
import functools

import jax
import jax.numpy as jnp
from jax.experimental import pallas as pl
from jax.experimental.pallas import tpu as pltpu


def _round_up(x, m):
    return ((x + m - 1) // m) * m


# ----------------------------------------------------------------------------
# Fused DnCNN kernel: grid=(num_layers,), one 3x3 conv [+BN] [+ReLU] per step
# ----------------------------------------------------------------------------
def _ffdnet_dncnn_kernel(x_ref, w_ref, gamma_ref, beta_ref, o_ref, buf_ref, *,
                         num_layers, eps, col_start):
    # x_ref:     (N, H, W, Cp)      network input, channels zero-padded, f32
    # w_ref:     (1, 9, Cp, Cp)     this layer's conv weights, bf16
    #                               (tap index t = 3*dy + dx, rows = ci, cols = co)
    # gamma_ref: (1, 1, Cp)         BN weight for this layer (1.0 where unused)
    # beta_ref:  (1, 1, Cp)         BN bias   for this layer (0.0 where unused)
    # o_ref:     (N, H, W, Cp)      lane-dense output (real channels 0..3), f32
    # buf_ref:   (N, H+2, Wb, Cp)   persistent padded activation buffer, bf16
    l = pl.program_id(0)
    last = num_layers - 1
    N, H, W, Cp = x_ref.shape
    M = N * H * W
    c0 = col_start                     # interior column start (tile aligned)

    # ---- one-time init: zero buffer (provides the conv halo zeros for every
    # ---- layer) and load the network input into the interior ----
    @pl.when(l == 0)
    def _():
        buf_ref[...] = jnp.zeros(buf_ref.shape, jnp.bfloat16)
        buf_ref[:, 1:H + 1, c0:c0 + W, :] = x_ref[...].astype(jnp.bfloat16)

    # ---- 3x3 conv (padding=1, no bias): 9 accumulated K=Cp MXU matmuls ----
    acc = jnp.zeros((M, Cp), jnp.float32)
    for dy in range(3):
        for dx in range(3):
            t = 3 * dy + dx
            tap = buf_ref[:, dy:dy + H, c0 - 1 + dx:c0 - 1 + dx + W, :]
            acc = acc + jnp.dot(tap.reshape(M, Cp), w_ref[0, t],
                                preferred_element_type=jnp.float32)

    def write_interior(h_f32):  # cast to bf16 exactly once per layer
        buf_ref[:, 1:H + 1, c0:c0 + W, :] = (
            h_f32.reshape(N, H, W, Cp).astype(jnp.bfloat16))

    # ---- layer 0: ReLU only ----
    @pl.when(l == 0)
    def _():
        write_interior(jnp.maximum(acc, 0.0))

    # ---- middle layers: BatchNorm (training-mode batch stats) + ReLU ----
    @pl.when(jnp.logical_and(l > 0, l < last))
    def _():
        inv_m = 1.0 / M
        mean = jnp.sum(acc, axis=0, keepdims=True) * inv_m          # (1, Cp)
        ex2 = jnp.sum(acc * acc, axis=0, keepdims=True) * inv_m     # (1, Cp)
        var = jnp.maximum(ex2 - mean * mean, 0.0)                   # biased var
        scale = gamma_ref[0] * jax.lax.rsqrt(var + eps)
        shift = beta_ref[0] - mean * scale
        write_interior(jnp.maximum(acc * scale + shift, 0.0))

    # ---- last layer: conv only, lane-dense store ----
    @pl.when(l == last)
    def _():
        o_ref[...] = acc.reshape(N, H, W, Cp)


def dncnn_fused(x_pad, packed):
    """x_pad: (N, Hs, Ws, Cp) f32, channels zero-padded to Cp (multiple of 128)."""
    N, Hs, Ws, Cp = x_pad.shape
    num_layers = packed["w_all"].shape[0]
    col_start = 16                                   # bf16 sublane-tile aligned
    Wb = col_start + _round_up(Ws + 1, 16)           # padded width, mult. of 16

    kernel = functools.partial(_ffdnet_dncnn_kernel, num_layers=num_layers,
                               eps=1e-5, col_start=col_start)
    grid_spec = pltpu.PrefetchScalarGridSpec(
        num_scalar_prefetch=0,
        grid=(num_layers,),
        in_specs=[
            pl.BlockSpec((N, Hs, Ws, Cp), lambda l: (0, 0, 0, 0)),   # input (resident)
            pl.BlockSpec((1, 9, Cp, Cp), lambda l: (l, 0, 0, 0)),    # per-layer weights
            pl.BlockSpec((1, 1, Cp), lambda l: (l, 0, 0)),           # per-layer gamma
            pl.BlockSpec((1, 1, Cp), lambda l: (l, 0, 0)),           # per-layer beta
        ],
        out_specs=pl.BlockSpec((N, Hs, Ws, Cp), lambda l: (0, 0, 0, 0)),
        scratch_shapes=[pltpu.VMEM((N, Hs + 2, Wb, Cp), jnp.bfloat16)],
    )
    return pl.pallas_call(
        kernel,
        out_shape=jax.ShapeDtypeStruct((N, Hs, Ws, Cp), jnp.float32),
        grid_spec=grid_spec,
        compiler_params=pltpu.CompilerParams(
            dimension_semantics=("arbitrary",),      # layers are sequential
            vmem_limit_bytes=32 * 1024 * 1024,
        ),
    )(x_pad, packed["w_all"], packed["gamma"], packed["beta"])


# ----------------------------------------------------------------------------
# downsample / upsample (pixel-shuffle style) — pure data rearrangement (glue)
# ----------------------------------------------------------------------------
def downsample_jax(x):
    """(N, C, H, W) -> (N, 4C, H/2, W/2); out channel 4*c + idx <- (c, idx)."""
    N, C, H, W = x.shape
    idxL = [(0, 0), (0, 1), (1, 0), (1, 1)]
    parts = jnp.stack([x[:, :, i0::2, i1::2] for (i0, i1) in idxL], axis=2)
    return parts.reshape(N, C * 4, H // 2, W // 2)


def upsample_jax(x):
    """(N, Cin, Hs, Ws) -> (N, Cin/4, 2Hs, 2Ws); inverse of downsample_jax."""
    N, Cin, Hs, Ws = x.shape
    Cout = Cin // 4
    xr = x.reshape(N, Cout, 2, 2, Hs, Ws)            # (N, co, i0, i1, h, w)
    xr = jnp.transpose(xr, (0, 1, 4, 2, 5, 3))       # (N, co, h, i0, w, i1)
    return xr.reshape(N, Cout, 2 * Hs, 2 * Ws)


# ----------------------------------------------------------------------------
# FFDNet parameters (is_gray=True: 15 layers, 5 -> 64 x13 -> 4) — deterministic
# ----------------------------------------------------------------------------
def init_ffdnet_params(key, is_gray=True):
    if is_gray:
        num_layers, cin0, feat, cout_last = 15, 5, 64, 4
    else:
        num_layers, cin0, feat, cout_last = 12, 15, 96, 12

    keys = jax.random.split(key, 2 * num_layers)
    params = []
    for li in range(num_layers):
        if li == 0:
            cin, cout, use_bn = cin0, feat, False
        elif li == num_layers - 1:
            cin, cout, use_bn = feat, cout_last, False
        else:
            cin, cout, use_bn = feat, feat, True
        std = (2.0 / (9.0 * cin)) ** 0.5
        w = std * jax.random.normal(keys[2 * li], (3, 3, cin, cout), jnp.float32)
        gamma = 1.0 + 0.1 * jax.random.normal(keys[2 * li + 1], (cout,), jnp.float32)
        beta = 0.05 * jnp.arange(cout, dtype=jnp.float32) / max(cout, 1)
        params.append(dict(w=w, gamma=gamma, beta=beta, use_bn=use_bn))
    return params


def pack_params(params):
    """Stack / zero-pad parameters for the fused kernel (lane-dense Cp width)."""
    num_layers = len(params)
    cin0 = params[0]["w"].shape[2]
    feat = params[0]["w"].shape[3]
    cout_last = params[-1]["w"].shape[3]
    Cp = _round_up(max(feat, cin0, cout_last), 128)

    def pad_w(w):  # (3, 3, cin, cout) -> (9, Cp, Cp), bf16, t = 3*dy + dx
        cin, cout = w.shape[2], w.shape[3]
        wp = jnp.zeros((3, 3, Cp, Cp), jnp.float32).at[:, :, :cin, :cout].set(w)
        return wp.reshape(9, Cp, Cp).astype(jnp.bfloat16)

    w_all = jnp.stack([pad_w(p["w"]) for p in params], axis=0)  # (L, 9, Cp, Cp)

    gammas, betas = [], []
    for p in params:
        if p["use_bn"]:
            c = p["gamma"].shape[0]
            gammas.append(jnp.pad(p["gamma"].astype(jnp.float32), (0, Cp - c),
                                  constant_values=1.0))
            betas.append(jnp.pad(p["beta"].astype(jnp.float32), (0, Cp - c),
                                 constant_values=0.0))
        else:  # placeholders (never used inside the kernel for these layers)
            gammas.append(jnp.ones((Cp,), jnp.float32))
            betas.append(jnp.zeros((Cp,), jnp.float32))
    gamma = jnp.stack(gammas, axis=0)[:, None, :]   # (L, 1, Cp)
    beta = jnp.stack(betas, axis=0)[:, None, :]     # (L, 1, Cp)

    return dict(w_all=w_all, gamma=gamma, beta=beta, cp=Cp,
                cout_last=cout_last, num_layers=num_layers)


# ----------------------------------------------------------------------------
# FFDNet forward
# ----------------------------------------------------------------------------
def ffdnet_forward(packed, x_nchw):
    """x_nchw: (N, C, H, W) float32. Returns (N, C, H, W)."""
    N, C, H, W = x_nchw.shape
    # noise_sigma = 30 per batch element, broadcast to (N, C, H/2, W/2)
    noise_map = jnp.full((N, C, H // 2, W // 2), 30.0, jnp.float32)
    x_down = downsample_jax(x_nchw)                          # (N, 4C, H/2, W/2)
    x_cat = jnp.concatenate([noise_map, x_down], axis=1)     # (N, 5C, H/2, W/2)

    # NCHW -> NHWC, then zero-pad channels to the kernel's lane-dense width Cp.
    x_nhwc = jnp.transpose(x_cat, (0, 2, 3, 1)).astype(jnp.float32)
    cp = packed["cp"]
    x_pad = jnp.pad(x_nhwc, ((0, 0), (0, 0), (0, 0), (0, cp - x_nhwc.shape[-1])))

    h = dncnn_fused(x_pad, packed)                           # (N, H/2, W/2, Cp)
    h = h[..., :packed["cout_last"]]                         # drop zero lanes
    h_nchw = jnp.transpose(h, (0, 3, 1, 2))                  # (N, 4C, H/2, W/2)
    return upsample_jax(h_nchw)                              # (N, C, H, W)


if __name__ == "__main__":
    key = jax.random.PRNGKey(0)
    k_param, k_x = jax.random.split(key)

    # is_gray=True -> input (N, 1, H, W); downsampled_channels = 1 + 4*1 = 5
    x = jax.random.normal(k_x, (2, 1, 16, 16), dtype=jnp.float32)
    params = init_ffdnet_params(k_param, is_gray=True)
    packed = pack_params(params)

    fwd = jax.jit(lambda xx: ffdnet_forward(packed, xx))
    y = fwd(x)
    jax.block_until_ready(y)

    assert y.shape == (2, 1, 16, 16), y.shape
    assert jnp.all(jnp.isfinite(y)), "non-finite output"
    print("KERNEL_OK")
</pallas_src>

<mosaic_0001>
module attributes {stable_mosaic.version = 11 : i64} {
  func.func @_ffdnet_dncnn_kernel(%arg0: i32, %arg1: memref<2x8x8x128xf32, #tpu.memory_space<vmem>>, %arg2: memref<1x9x128x128xbf16, #tpu.memory_space<vmem>>, %arg3: memref<1x1x128xf32, #tpu.memory_space<vmem>>, %arg4: memref<1x1x128xf32, #tpu.memory_space<vmem>>, %arg5: memref<2x8x8x128xf32, #tpu.memory_space<vmem>>, %arg6: memref<2x10x32x128xbf16, #tpu.memory_space<vmem>>) attributes {dimension_semantics = [#tpu.dimension_semantics<arbitrary>], iteration_bounds = array<i64: 15>, scalar_prefetch = 0 : i64, scratch_operands = 1 : i64, tpu.core_type = #tpu.core_type<tc>, window_params = [{pipeline_mode = #tpu.pipeline_mode<synchronous>, transform_indices = @transform_0, window_bounds = array<i64: 2, 8, 8, 128>}, {transform_indices = @transform_1, window_bounds = array<i64: 1, 9, 128, 128>}, {transform_indices = @transform_2, window_bounds = array<i64: 1, 1, 128>}, {transform_indices = @transform_3, window_bounds = array<i64: 1, 1, 128>}, {pipeline_mode = #tpu.pipeline_mode<synchronous>, transform_indices = @transform_4, window_bounds = array<i64: 2, 8, 8, 128>}]} {
    %c0_i32 = arith.constant 0 : i32
    %0 = arith.cmpi eq, %arg0, %c0_i32 : i32
    %1 = arith.extui %0 : i1 to i32
    %c0_i32_0 = arith.constant 0 : i32
    %2 = arith.cmpi ne, %1, %c0_i32_0 : i32
    scf.if %2 {
      %cst_76 = arith.constant 0.000000e+00 : bf16
      %69 = vector.broadcast %cst_76 : bf16 to vector<2x10x32x128xbf16>
      %c0_77 = arith.constant 0 : index
      %c0_78 = arith.constant 0 : index
      %c0_79 = arith.constant 0 : index
      %c0_80 = arith.constant 0 : index
      %70 = vector.load %arg6[%c0_77, %c0_78, %c0_79, %c0_80] : memref<2x10x32x128xbf16, #tpu.memory_space<vmem>>, vector<2x10x32x128xbf16>
      tpu.vector_store %arg6[%c0_77, %c0_78, %c0_79, %c0_80], %69 {strides = array<i32>} : memref<2x10x32x128xbf16, #tpu.memory_space<vmem>>, vector<2x10x32x128xbf16>,
      %c0_81 = arith.constant 0 : index
      %c0_82 = arith.constant 0 : index
      %c0_83 = arith.constant 0 : index
      %c0_84 = arith.constant 0 : index
      %71 = vector.load %arg1[%c0_81, %c0_82, %c0_83, %c0_84] : memref<2x8x8x128xf32, #tpu.memory_space<vmem>>, vector<2x8x8x128xf32>
      %72 = arith.truncf %71 : vector<2x8x8x128xf32> to vector<2x8x8x128xbf16>
      %c0_85 = arith.constant 0 : index
      %c1_86 = arith.constant 1 : index
      %c16_87 = arith.constant 16 : index
      %c0_88 = arith.constant 0 : index
      %73 = vector.load %arg6[%c0_85, %c1_86, %c16_87, %c0_88] : memref<2x10x32x128xbf16, #tpu.memory_space<vmem>>, vector<2x8x8x128xbf16>
      tpu.vector_store %arg6[%c0_85, %c1_86, %c16_87, %c0_88], %72 {strides = array<i32>} : memref<2x10x32x128xbf16, #tpu.memory_space<vmem>>, vector<2x8x8x128xbf16>,
    } else {
    }
    %cst = arith.constant 0.000000e+00 : f32
    %3 = vector.broadcast %cst : f32 to vector<128x128xf32>
    %c0 = arith.constant 0 : index
    %c0_1 = arith.constant 0 : index
    %c15 = arith.constant 15 : index
    %c0_2 = arith.constant 0 : index
    %4 = vector.load %arg6[%c0, %c0_1, %c15, %c0_2] : memref<2x10x32x128xbf16, #tpu.memory_space<vmem>>, vector<2x8x8x128xbf16>
    %5 = vector.shape_cast %4 : vector<2x8x8x128xbf16> to vector<128x128xbf16>
    %c0_3 = arith.constant 0 : index
    %c0_4 = arith.constant 0 : index
    %c0_5 = arith.constant 0 : index
    %c0_6 = arith.constant 0 : index
    %6 = vector.load %arg2[%c0_3, %c0_4, %c0_5, %c0_6] : memref<1x9x128x128xbf16, #tpu.memory_space<vmem>>, vector<1x1x128x128xbf16>
    %7 = vector.shape_cast %6 : vector<1x1x128x128xbf16> to vector<128x128xbf16>
    %cst_7 = arith.constant dense<0.000000e+00> : vector<128x128xf32>
    %8 = tpu.matmul %5, %7, %cst_7 {dimension_numbers = #tpu.dot_dimension_numbers<[1], [0], [0], [1], [0, 0, 1, 1], [], []>} : vector<128x128xbf16>, vector<128x128xbf16>, vector<128x128xf32> -> vector<128x128xf32>
    %9 = arith.addf %3, %8 : vector<128x128xf32>
    %c0_8 = arith.constant 0 : index
    %c0_9 = arith.constant 0 : index
    %c16 = arith.constant 16 : index
    %c0_10 = arith.constant 0 : index
    %10 = vector.load %arg6[%c0_8, %c0_9, %c16, %c0_10] : memref<2x10x32x128xbf16, #tpu.memory_space<vmem>>, vector<2x8x8x128xbf16>
    %11 = vector.shape_cast %10 : vector<2x8x8x128xbf16> to vector<128x128xbf16>
    %c0_11 = arith.constant 0 : index
    %c1 = arith.constant 1 : index
    %c0_12 = arith.constant 0 : index
    %c0_13 = arith.constant 0 : index
    %12 = vector.load %arg2[%c0_11, %c1, %c0_12, %c0_13] : memref<1x9x128x128xbf16, #tpu.memory_space<vmem>>, vector<1x1x128x128xbf16>
    %13 = vector.shape_cast %12 : vector<1x1x128x128xbf16> to vector<128x128xbf16>
    %cst_14 = arith.constant dense<0.000000e+00> : vector<128x128xf32>
    %14 = tpu.matmul %11, %13, %cst_14 {dimension_numbers = #tpu.dot_dimension_numbers<[1], [0], [0], [1], [0, 0, 1, 1], [], []>} : vector<128x128xbf16>, vector<128x128xbf16>, vector<128x128xf32> -> vector<128x128xf32>
    %15 = arith.addf %9, %14 : vector<128x128xf32>
    %c0_15 = arith.constant 0 : index
    %c0_16 = arith.constant 0 : index
    %c17 = arith.constant 17 : index
    %c0_17 = arith.constant 0 : index
    %16 = vector.load %arg6[%c0_15, %c0_16, %c17, %c0_17] : memref<2x10x32x128xbf16, #tpu.memory_space<vmem>>, vector<2x8x8x128xbf16>
    %17 = vector.shape_cast %16 : vector<2x8x8x128xbf16> to vector<128x128xbf16>
    %c0_18 = arith.constant 0 : index
    %c2 = arith.constant 2 : index
    %c0_19 = arith.constant 0 : index
    %c0_20 = arith.constant 0 : index
    %18 = vector.load %arg2[%c0_18, %c2, %c0_19, %c0_20] : memref<1x9x128x128xbf16, #tpu.memory_space<vmem>>, vector<1x1x128x128xbf16>
    %19 = vector.shape_cast %18 : vector<1x1x128x128xbf16> to vector<128x128xbf16>
    %cst_21 = arith.constant dense<0.000000e+00> : vector<128x128xf32>
    %20 = tpu.matmul %17, %19, %cst_21 {dimension_numbers = #tpu.dot_dimension_numbers<[1], [0], [0], [1], [0, 0, 1, 1], [], []>} : vector<128x128xbf16>, vector<128x128xbf16>, vector<128x128xf32> -> vector<128x128xf32>
    %21 = arith.addf %15, %20 : vector<128x128xf32>
    %c0_22 = arith.constant 0 : index
    %c1_23 = arith.constant 1 : index
    %c15_24 = arith.constant 15 : index
    %c0_25 = arith.constant 0 : index
    %22 = vector.load %arg6[%c0_22, %c1_23, %c15_24, %c0_25] : memref<2x10x32x128xbf16, #tpu.memory_space<vmem>>, vector<2x8x8x128xbf16>
    %23 = vector.shape_cast %22 : vector<2x8x8x128xbf16> to vector<128x128xbf16>
    %c0_26 = arith.constant 0 : index
    %c3 = arith.constant 3 : index
    %c0_27 = arith.constant 0 : index
    %c0_28 = arith.constant 0 : index
    %24 = vector.load %arg2[%c0_26, %c3, %c0_27, %c0_28] : memref<1x9x128x128xbf16, #tpu.memory_space<vmem>>, vector<1x1x128x128xbf16>
    %25 = vector.shape_cast %24 : vector<1x1x128x128xbf16> to vector<128x128xbf16>
    %cst_29 = arith.constant dense<0.000000e+00> : vector<128x128xf32>
    %26 = tpu.matmul %23, %25, %cst_29 {dimension_numbers = #tpu.dot_dimension_numbers<[1], [0], [0], [1], [0, 0, 1, 1], [], []>} : vector<128x128xbf16>, vector<128x128xbf16>, vector<128x128xf32> -> vector<128x128xf32>
    %27 = arith.addf %21, %26 : vector<128x128xf32>
    %c0_30 = arith.constant 0 : index
    %c1_31 = arith.constant 1 : index
    %c16_32 = arith.constant 16 : index
    %c0_33 = arith.constant 0 : index
    %28 = vector.load %arg6[%c0_30, %c1_31, %c16_32, %c0_33] : memref<2x10x32x128xbf16, #tpu.memory_space<vmem>>, vector<2x8x8x128xbf16>
    %29 = vector.shape_cast %28 : vector<2x8x8x128xbf16> to vector<128x128xbf16>
    %c0_34 = arith.constant 0 : index
    %c4 = arith.constant 4 : index
    %c0_35 = arith.constant 0 : index
    %c0_36 = arith.constant 0 : index
    %30 = vector.load %arg2[%c0_34, %c4, %c0_35, %c0_36] : memref<1x9x128x128xbf16, #tpu.memory_space<vmem>>, vector<1x1x128x128xbf16>
    %31 = vector.shape_cast %30 : vector<1x1x128x128xbf16> to vector<128x128xbf16>
    %cst_37 = arith.constant dense<0.000000e+00> : vector<128x128xf32>
    %32 = tpu.matmul %29, %31, %cst_37 {dimension_numbers = #tpu.dot_dimension_numbers<[1], [0], [0], [1], [0, 0, 1, 1], [], []>} : vector<128x128xbf16>, vector<128x128xbf16>, vector<128x128xf32> -> vector<128x128xf32>
    %33 = arith.addf %27, %32 : vector<128x128xf32>
    %c0_38 = arith.constant 0 : index
    %c1_39 = arith.constant 1 : index
    %c17_40 = arith.constant 17 : index
    %c0_41 = arith.constant 0 : index
    %34 = vector.load %arg6[%c0_38, %c1_39, %c17_40, %c0_41] : memref<2x10x32x128xbf16, #tpu.memory_space<vmem>>, vector<2x8x8x128xbf16>
    %35 = vector.shape_cast %34 : vector<2x8x8x128xbf16> to vector<128x128xbf16>
    %c0_42 = arith.constant 0 : index
    %c5 = arith.constant 5 : index
    %c0_43 = arith.constant 0 : index
    %c0_44 = arith.constant 0 : index
    %36 = vector.load %arg2[%c0_42, %c5, %c0_43, %c0_44] : memref<1x9x128x128xbf16, #tpu.memory_space<vmem>>, vector<1x1x128x128xbf16>
    %37 = vector.shape_cast %36 : vector<1x1x128x128xbf16> to vector<128x128xbf16>
    %cst_45 = arith.constant dense<0.000000e+00> : vector<128x128xf32>
    %38 = tpu.matmul %35, %37, %cst_45 {dimension_numbers = #tpu.dot_dimension_numbers<[1], [0], [0], [1], [0, 0, 1, 1], [], []>} : vector<128x128xbf16>, vector<128x128xbf16>, vector<128x128xf32> -> vector<128x128xf32>
    %39 = arith.addf %33, %38 : vector<128x128xf32>
    %c0_46 = arith.constant 0 : index
    %c2_47 = arith.constant 2 : index
    %c15_48 = arith.constant 15 : index
    %c0_49 = arith.constant 0 : index
    %40 = vector.load %arg6[%c0_46, %c2_47, %c15_48, %c0_49] : memref<2x10x32x128xbf16, #tpu.memory_space<vmem>>, vector<2x8x8x128xbf16>
    %41 = vector.shape_cast %40 : vector<2x8x8x128xbf16> to vector<128x128xbf16>
    %c0_50 = arith.constant 0 : index
    %c6 = arith.constant 6 : index
    %c0_51 = arith.constant 0 : index
    %c0_52 = arith.constant 0 : index
    %42 = vector.load %arg2[%c0_50, %c6, %c0_51, %c0_52] : memref<1x9x128x128xbf16, #tpu.memory_space<vmem>>, vector<1x1x128x128xbf16>
    %43 = vector.shape_cast %42 : vector<1x1x128x128xbf16> to vector<128x128xbf16>
    %cst_53 = arith.constant dense<0.000000e+00> : vector<128x128xf32>
    %44 = tpu.matmul %41, %43, %cst_53 {dimension_numbers = #tpu.dot_dimension_numbers<[1], [0], [0], [1], [0, 0, 1, 1], [], []>} : vector<128x128xbf16>, vector<128x128xbf16>, vector<128x128xf32> -> vector<128x128xf32>
    %45 = arith.addf %39, %44 : vector<128x128xf32>
    %c0_54 = arith.constant 0 : index
    %c2_55 = arith.constant 2 : index
    %c16_56 = arith.constant 16 : index
    %c0_57 = arith.constant 0 : index
    %46 = vector.load %arg6[%c0_54, %c2_55, %c16_56, %c0_57] : memref<2x10x32x128xbf16, #tpu.memory_space<vmem>>, vector<2x8x8x128xbf16>
    %47 = vector.shape_cast %46 : vector<2x8x8x128xbf16> to vector<128x128xbf16>
    %c0_58 = arith.constant 0 : index
    %c7 = arith.constant 7 : index
    %c0_59 = arith.constant 0 : index
    %c0_60 = arith.constant 0 : index
    %48 = vector.load %arg2[%c0_58, %c7, %c0_59, %c0_60] : memref<1x9x128x128xbf16, #tpu.memory_space<vmem>>, vector<1x1x128x128xbf16>
    %49 = vector.shape_cast %48 : vector<1x1x128x128xbf16> to vector<128x128xbf16>
    %cst_61 = arith.constant dense<0.000000e+00> : vector<128x128xf32>
    %50 = tpu.matmul %47, %49, %cst_61 {dimension_numbers = #tpu.dot_dimension_numbers<[1], [0], [0], [1], [0, 0, 1, 1], [], []>} : vector<128x128xbf16>, vector<128x128xbf16>, vector<128x128xf32> -> vector<128x128xf32>
    %51 = arith.addf %45, %50 : vector<128x128xf32>
    %c0_62 = arith.constant 0 : index
    %c2_63 = arith.constant 2 : index
    %c17_64 = arith.constant 17 : index
    %c0_65 = arith.constant 0 : index
    %52 = vector.load %arg6[%c0_62, %c2_63, %c17_64, %c0_65] : memref<2x10x32x128xbf16, #tpu.memory_space<vmem>>, vector<2x8x8x128xbf16>
    %53 = vector.shape_cast %52 : vector<2x8x8x128xbf16> to vector<128x128xbf16>
    %c0_66 = arith.constant 0 : index
    %c8 = arith.constant 8 : index
    %c0_67 = arith.constant 0 : index
    %c0_68 = arith.constant 0 : index
    %54 = vector.load %arg2[%c0_66, %c8, %c0_67, %c0_68] : memref<1x9x128x128xbf16, #tpu.memory_space<vmem>>, vector<1x1x128x128xbf16>
    %55 = vector.shape_cast %54 : vector<1x1x128x128xbf16> to vector<128x128xbf16>
    %cst_69 = arith.constant dense<0.000000e+00> : vector<128x128xf32>
    %56 = tpu.matmul %53, %55, %cst_69 {dimension_numbers = #tpu.dot_dimension_numbers<[1], [0], [0], [1], [0, 0, 1, 1], [], []>} : vector<128x128xbf16>, vector<128x128xbf16>, vector<128x128xf32> -> vector<128x128xf32>
    %57 = arith.addf %51, %56 : vector<128x128xf32>
    %c0_i32_70 = arith.constant 0 : i32
    %58 = arith.cmpi eq, %arg0, %c0_i32_70 : i32
    %59 = arith.extui %58 : i1 to i32
    %c0_i32_71 = arith.constant 0 : i32
    %60 = arith.cmpi ne, %59, %c0_i32_71 : i32
    scf.if %60 {
      %cst_76 = arith.constant 0.000000e+00 : f32
      %69 = vector.broadcast %cst_76 : f32 to vector<128x128xf32>
      %70 = arith.maximumf %57, %69 : vector<128x128xf32>
      %71 = vector.shape_cast %70 : vector<128x128xf32> to vector<2x8x8x128xf32>
      %72 = arith.truncf %71 : vector<2x8x8x128xf32> to vector<2x8x8x128xbf16>
      %c0_77 = arith.constant 0 : index
      %c1_78 = arith.constant 1 : index
      %c16_79 = arith.constant 16 : index
      %c0_80 = arith.constant 0 : index
      %73 = vector.load %arg6[%c0_77, %c1_78, %c16_79, %c0_80] : memref<2x10x32x128xbf16, #tpu.memory_space<vmem>>, vector<2x8x8x128xbf16>
      tpu.vector_store %arg6[%c0_77, %c1_78, %c16_79, %c0_80], %72 {strides = array<i32>} : memref<2x10x32x128xbf16, #tpu.memory_space<vmem>>, vector<2x8x8x128xbf16>,
    } else {
    }
    %c0_i32_72 = arith.constant 0 : i32
    %61 = arith.cmpi sgt, %arg0, %c0_i32_72 : i32
    %c14_i32 = arith.constant 14 : i32
    %62 = arith.cmpi slt, %arg0, %c14_i32 : i32
    %63 = arith.andi %61, %62 : i1
    %64 = arith.extui %63 : i1 to i32
    %c0_i32_73 = arith.constant 0 : i32
    %65 = arith.cmpi ne, %64, %c0_i32_73 : i32
    scf.if %65 {
      %cst_76 = arith.constant dense<0.000000e+00> : vector<128xf32>
      %69 = vector.multi_reduction <add>, %57, %cst_76 [0] : vector<128x128xf32> to vector<128xf32>
      %70 = vector.shape_cast %69 : vector<128xf32> to vector<1x128xf32>
      %cst_77 = arith.constant 7.812500e-03 : f32
      %71 = vector.broadcast %cst_77 : f32 to vector<1x128xf32>
      %72 = arith.mulf %70, %71 : vector<1x128xf32>
      %73 = arith.mulf %57, %57 : vector<128x128xf32>
      %cst_78 = arith.constant dense<0.000000e+00> : vector<128xf32>
      %74 = vector.multi_reduction <add>, %73, %cst_78 [0] : vector<128x128xf32> to vector<128xf32>
      %75 = vector.shape_cast %74 : vector<128xf32> to vector<1x128xf32>
      %cst_79 = arith.constant 7.812500e-03 : f32
      %76 = vector.broadcast %cst_79 : f32 to vector<1x128xf32>
      %77 = arith.mulf %75, %76 : vector<1x128xf32>
      %78 = arith.mulf %72, %72 : vector<1x128xf32>
      %79 = arith.subf %77, %78 : vector<1x128xf32>
      %cst_80 = arith.constant 0.000000e+00 : f32
      %80 = vector.broadcast %cst_80 : f32 to vector<1x128xf32>
      %81 = arith.maximumf %79, %80 : vector<1x128xf32>
      %c0_81 = arith.constant 0 : index
      %c0_82 = arith.constant 0 : index
      %c0_83 = arith.constant 0 : index
      %82 = vector.load %arg3[%c0_81, %c0_82, %c0_83] : memref<1x1x128xf32, #tpu.memory_space<vmem>>, vector<1x1x128xf32>
      %83 = vector.shape_cast %82 : vector<1x1x128xf32> to vector<1x128xf32>
      %cst_84 = arith.constant 9.99999974E-6 : f32
      %84 = vector.broadcast %cst_84 : f32 to vector<1x128xf32>
      %85 = arith.addf %81, %84 : vector<1x128xf32>
      %86 = math.rsqrt %85 : vector<1x128xf32>
      %87 = arith.mulf %83, %86 : vector<1x128xf32>
      %c0_85 = arith.constant 0 : index
      %c0_86 = arith.constant 0 : index
      %c0_87 = arith.constant 0 : index
      %88 = vector.load %arg4[%c0_85, %c0_86, %c0_87] : memref<1x1x128xf32, #tpu.memory_space<vmem>>, vector<1x1x128xf32>
      %89 = vector.shape_cast %88 : vector<1x1x128xf32> to vector<1x128xf32>
      %90 = arith.mulf %72, %87 : vector<1x128xf32>
      %91 = arith.subf %89, %90 : vector<1x128xf32>
      %92 = vector.broadcast %87 : vector<1x128xf32> to vector<128x128xf32>
      %93 = arith.mulf %57, %92 : vector<128x128xf32>
      %94 = vector.broadcast %91 : vector<1x128xf32> to vector<128x128xf32>
      %95 = arith.addf %93, %94 : vector<128x128xf32>
      %cst_88 = arith.constant 0.000000e+00 : f32
      %96 = vector.broadcast %cst_88 : f32 to vector<128x128xf32>
      %97 = arith.maximumf %95, %96 : vector<128x128xf32>
      %98 = vector.shape_cast %97 : vector<128x128xf32> to vector<2x8x8x128xf32>
      %99 = arith.truncf %98 : vector<2x8x8x128xf32> to vector<2x8x8x128xbf16>
      %c0_89 = arith.constant 0 : index
      %c1_90 = arith.constant 1 : index
      %c16_91 = arith.constant 16 : index
      %c0_92 = arith.constant 0 : index
      %100 = vector.load %arg6[%c0_89, %c1_90, %c16_91, %c0_92] : memref<2x10x32x128xbf16, #tpu.memory_space<vmem>>, vector<2x8x8x128xbf16>
      tpu.vector_store %arg6[%c0_89, %c1_90, %c16_91, %c0_92], %99 {strides = array<i32>} : memref<2x10x32x128xbf16, #tpu.memory_space<vmem>>, vector<2x8x8x128xbf16>,
    } else {
    }
    %c14_i32_74 = arith.constant 14 : i32
    %66 = arith.cmpi eq, %arg0, %c14_i32_74 : i32
    %67 = arith.extui %66 : i1 to i32
    %c0_i32_75 = arith.constant 0 : i32
    %68 = arith.cmpi ne, %67, %c0_i32_75 : i32
    scf.if %68 {
      %69 = vector.shape_cast %57 : vector<128x128xf32> to vector<2x8x8x128xf32>
      %c0_76 = arith.constant 0 : index
      %c0_77 = arith.constant 0 : index
      %c0_78 = arith.constant 0 : index
      %c0_79 = arith.constant 0 : index
      %70 = vector.load %arg5[%c0_76, %c0_77, %c0_78, %c0_79] : memref<2x8x8x128xf32, #tpu.memory_space<vmem>>, vector<2x8x8x128xf32>
      tpu.vector_store %arg5[%c0_76, %c0_77, %c0_78, %c0_79], %69 {strides = array<i32>} : memref<2x8x8x128xf32, #tpu.memory_space<vmem>>, vector<2x8x8x128xf32>,
    } else {
    }
    return
  }
  func.func @transform_0(%arg0: i32) -> (i32, i32, i32, i32) {
    %c0_i32 = arith.constant 0 : i32
    %c0_i32_0 = arith.constant 0 : i32
    %c0_i32_1 = arith.constant 0 : i32
    %c0_i32_2 = arith.constant 0 : i32
    %c0_i32_3 = arith.constant 0 : i32
    return %c0_i32, %c0_i32_0, %c0_i32_1, %c0_i32_2 : i32, i32, i32, i32
  }
  func.func @transform_1(%arg0: i32) -> (i32, i32, i32, i32) {
    %c0_i32 = arith.constant 0 : i32
    %c0_i32_0 = arith.constant 0 : i32
    %c0_i32_1 = arith.constant 0 : i32
    %c0_i32_2 = arith.constant 0 : i32
    return %arg0, %c0_i32, %c0_i32_0, %c0_i32_1 : i32, i32, i32, i32
  }
  func.func @transform_2(%arg0: i32) -> (i32, i32, i32) {
    %c0_i32 = arith.constant 0 : i32
    %c0_i32_0 = arith.constant 0 : i32
    %c0_i32_1 = arith.constant 0 : i32
    return %arg0, %c0_i32, %c0_i32_0 : i32, i32, i32
  }
  func.func @transform_3(%arg0: i32) -> (i32, i32, i32) {
    %c0_i32 = arith.constant 0 : i32
    %c0_i32_0 = arith.constant 0 : i32
    %c0_i32_1 = arith.constant 0 : i32
    return %arg0, %c0_i32, %c0_i32_0 : i32, i32, i32
  }
  func.func @transform_4(%arg0: i32) -> (i32, i32, i32, i32) {
    %c0_i32 = arith.constant 0 : i32
    %c0_i32_0 = arith.constant 0 : i32
    %c0_i32_1 = arith.constant 0 : i32
    %c0_i32_2 = arith.constant 0 : i32
    %c0_i32_3 = arith.constant 0 : i32
    return %c0_i32, %c0_i32_0, %c0_i32_1, %c0_i32_2 : i32, i32, i32, i32
  }
}

</mosaic_0001>

<bundles_post_ra>
// kernel: _lambda_.1
= control target key start
LH: loop header
LB: loop body
LE: loop exit
PB: predicated region body
PF: predicated region fallthrough
CT: control target
= control target key end

     0   :  { %s6249_s0 = inlined_call_operand.vmem [shape: f32[2,8,8,128], index: 0, kind: input, shape index: {}]   ;;  %s6250_s1 = inlined_call_operand.hbm [shape: bf16[15,9,128,128], index: 1, kind: input, shape index: {}]   ;;  %s6251_s2 = inlined_call_operand.hbm [shape: f32[15,1,128], index: 2, kind: input, shape index: {}]   ;;  %s6252_s3 = inlined_call_operand.hbm [shape: f32[15,1,128], index: 3, kind: input, shape index: {}]   ;;  %s6253_s4 = inlined_call_operand.vmem [shape: f32[2,8,8,128], index: 4, kind: output, shape index: {}]  }
   0x1   :  { %6255 = sst [smem:[#allocation26_spill]] %s6250_s1 }
   0x2   :  { %6256 = sst [smem:[#allocation27_spill]] %s6251_s2 }
   0x3   :  { %9 = vsyncpa [#allocation4], 0 }
   0x4   :  { %11 = vsyncpa [#allocation4 + $0x1], 0 }
   0x5   :  { %12 = vsyncpa [#allocation6], 0 }
   0x6   :  { %14 = vsyncpa [#allocation6 + $0x1], 0  ;;  %s5206_s15 = smov 0   ;;  %s5208_s16 = smov 0  }
   0x7   :  { %s5210_s17 = smov 0   ;;  %s5212_s18 = smov 0  }
   0x8 LB: > { %s5225_s19 = sadd.s32 4294967295, %s5173_s18   ;;  %s5228_s20 = sadd.s32 1, %s5173_s18   ;;  %s5173_s18 = sphi %s5212_s18, %s6304_s18   ;;  %s5169_s17 = sphi %s5210_s17, %s6303_s17   ;;  %s5165_s16 = sphi %s5208_s16, %s6302_s16   ;;  %s5161_s15 = sphi %s5206_s15, %s6301_s15  }
   0x9   : > { %s45_s21 = ssub.s32 %s5173_s18, %s5228_s20  ;;  %s48_s22 = sadd.s32 1, %s5169_s17 }
   0xa   : > { %p46_p0 = scmp.eq.s32.totalorder %s45_s21, 0  ;;  %p55_p1 = scmp.ne.s32.totalorder %s5169_s17, %s5165_s16 }
   0xb   : > { %p56_p2 = scmp.eq.s32.totalorder %s5173_s18, 0  ;;  %p61_p3 = scmp.ne.s32.totalorder %s5165_s16, %s5161_s15 }
   0xc   : > { %s5238_s23 = scalar_select %p46_p0, %s5169_s17, %s48_s22  }
   0xd   : > { %p57_p4 = por %p56_p2, %p55_p1  ;;  %p62_p5 = scmp.eq.s32.totalorder %s5225_s19, 0 }
   0xe   : > { %6257 = sst [smem:[#allocation10_spill]] %s5238_s23  ;;  %p4917_p6 = scmp.lt.s32.totalorder %s5173_s18, 15 }
   0xf   : > { %p5242_p7 = por %p62_p5, %p61_p3  ;;  %s5247_s25 = sand.u32 1, %s5169_s17  }
  0x10   : > { %p5249_p8 = pnand %p4917_p6, %p57_p4  ;;  %s182_s27 = sand.u32 1, %s5173_s18  }
  0x11   : > { %s6258_s24 = scalar_select %p5242_p7, 1, 0 }
  0x12   : > { %s4122_s28 = sshll.u32 %s5173_s18, 4  ;;  %s6260_s2 = sld [smem:[#allocation27_spill]] }
  0x13   : > { %s185_s6 = scalar_lea.vmem [#allocation5], %s5247_s25  ;;  %s5263_s8 = scalar_lea.sflag [#allocation6], %s182_s27 }
  0x14   : > { %s192_s7 = sshll.u32 %s185_s6, 4  ;;  %p5269_p10 = pneg %p5249_p8  ;;  %s193_s7 = int_to_ptr.vmem [resolvable:$true] %s192_s7 }
  0x18   : > { %s5260_s5 = scalar_lea.hbm %s6260_s2, %s4122_s28  ;;  %s5056_s13 = scalar_lea.hbm %s6260_s2, 240 }
  0x19   : > { %s5051_s9 = scalar_lea.hbm %s5260_s5, 16  ;;  %p5057_p13 = scmp.lt.s32.totalorder %s5260_s5, %s6260_s2 }
  0x1a   : > { %p5052_p9 = scmp.ne.s32.totalorder %s5260_s5, %s5051_s9  ;;  %p5058_p0 = scmp.lt.s32.totalorder %s5056_s13, %s5051_s9 }
  0x1c   : > { %p5054_p11 = pnand %p5269_p10, %p5052_p9  ;;  %p5059_p1 = por %p5058_p0, %p5057_p13 }
  0x1e   : > { %p5055_p12 = pneg %p5054_p11 }
  0x20   : > { %p5060_p2 = pnand %p5059_p1, %p5055_p12 }
  0x22   : > { %5063 = shalt.err (!%p5060_p2)
}
  0x23   : > { %s5064_s21 = scalar_lea.vmem %s193_s7, 16  ;;  %s5175_s22 = smov [#allocation5]  }
  0x24   : > { %p5065_p3 = scmp.ne.s32.totalorder %s193_s7, %s5064_s21  ;;  %s5069_s27 = sshll.u32 %s5175_s22, 4  ;;  %s5070_s27 = int_to_ptr.vmem [resolvable:$false] %s5069_s27 }
  0x25   : > { %s5071_s29 = scalar_lea.vmem %s5070_s27, 32  ;;  %p5072_p6 = scmp.lt.s32.totalorder %s193_s7, %s5070_s27 }
  0x26   : > { %p5067_p4 = pnand %p5065_p3, %p5269_p10  ;;  %p5073_p9 = scmp.lt.s32.totalorder %s5071_s29, %s5064_s21 }
  0x28   : > { %p5068_p5 = pneg %p5067_p4  ;;  %p5074_p11 = por %p5073_p9, %p5072_p6 }
  0x2a   : > { %p5075_p7 = pnand %p5074_p11, %p5068_p5 }
  0x2c   : > { %5078 = shalt.err (!%p5075_p7)
}
  0x2d   : > { %4913 = dma.hbm_to_vmem [thread:$0]  (!%p5249_p8), %s5260_s5, 16, %s193_s7, %s5263_s8  }
  0x2e   : > { %p4124_p12 = scmp.ge.s32.totalorder %s5173_s18, 1  ;;  %p214_p13 = scmp.lt.s32.totalorder %s5173_s18, 16 }
  0x2f   : > { %s4898_s30 = smul.u32 576, %s5247_s25  ;;  %s6263_s1 = sld [smem:[#allocation26_spill]] }
  0x30   : > { %p5291_p0 = pnand %p4124_p12, %p214_p13  ;;  %s4899_s9 = smul.u32 9216, %s5173_s18 }
  0x31   : > { %s165_s14 = scalar_lea.vmem [#allocation3], %s4898_s30  ;;  %s162_s5 = scalar_lea.sflag [#allocation4], %s5247_s25 }
  0x32   : > { %s6262_s6 = scalar_select %p5291_p0, 1, 0 }
  0x33   : > { %s172_s15 = sshll.u32 %s165_s14, 4  ;;  %s5301_s15 = int_to_ptr.vmem [resolvable:$true] %s172_s15 }
  0x35   : > { %s5299_s13 = scalar_lea.hbm %s6263_s1, %s4899_s9  ;;  %s5084_s27 = scalar_lea.hbm %s6263_s1, 138240 }
  0x36   : > { %s5079_s7 = scalar_lea.hbm %s5299_s13, 9216  ;;  %p5085_p3 = scmp.lt.s32.totalorder %s5299_s13, %s6263_s1 }
  0x37   : > { %p5080_p7 = scmp.ne.s32.totalorder %s5299_s13, %s5079_s7  ;;  %p5086_p4 = scmp.lt.s32.totalorder %s5084_s27, %s5079_s7 }
  0x39   : > { %p5082_p1 = pnand %p5080_p7, %p5269_p10  ;;  %p5087_p5 = por %p5086_p4, %p5085_p3 }
  0x3b   : > { %p5083_p2 = pneg %p5082_p1 }
  0x3d   : > { %p5088_p6 = pnand %p5087_p5, %p5083_p2 }
  0x3f   : > { %5091 = shalt.err (!%p5088_p6)
}
  0x40   : > { %s5092_s30 = scalar_lea.vmem %s5301_s15, 9216  ;;  %s5176_s11 = smov [#allocation3]  }
  0x41   : > { %p5093_p9 = scmp.ne.s32.totalorder %s5301_s15, %s5092_s30  ;;  %s5097_s12 = sshll.u32 %s5176_s11, 4  ;;  %s5098_s12 = int_to_ptr.vmem [resolvable:$false] %s5097_s12 }
  0x42   : > { %s5099_s14 = scalar_lea.vmem %s5098_s12, 18432  ;;  %p5100_p13 = scmp.lt.s32.totalorder %s5301_s15, %s5098_s12 }
  0x43   : > { %p5095_p11 = pnand %p5093_p9, %p5269_p10  ;;  %p5101_p7 = scmp.lt.s32.totalorder %s5099_s14, %s5092_s30 }
  0x45   : > { %p5096_p12 = pneg %p5095_p11  ;;  %p5102_p1 = por %p5101_p7, %p5100_p13 }
  0x47   : > { %p5103_p0 = pnand %p5102_p1, %p5096_p12 }
  0x49   : > { %5106 = shalt.err (!%p5103_p0)
}
  0x4a   : > { %s5177_s7 = smov 64   ;;  %s5178_s21 = smov 4  }
  0x4b   : > { %4910 = dma.hbm_to_vmem [thread:$0]  (!%p5249_p8), %s5299_s13, 9216, %s5301_s15, %s162_s5, %s5177_s7, %s5177_s7, %s5178_s21  }
  0x4c   : > { %s207_s29 = scalar_lea.hbm %s6252_s3, %s4122_s28  ;;  %s202_s9 = scalar_lea.vmem [#allocation7], %s5247_s25 }
  0x4d   : > { %s209_s30 = sshll.u32 %s202_s9, 4  ;;  %s5107_s11 = scalar_lea.hbm %s207_s29, 16  ;;  %s210_s30 = int_to_ptr.vmem [resolvable:$true] %s209_s30 }
  0x4e   : > { %p5108_p0 = scmp.ne.s32.totalorder %s207_s29, %s5107_s11  ;;  %s5112_s1 = scalar_lea.hbm %s6252_s3, 240 }
  0x4f   : > { %p5113_p4 = scmp.lt.s32.totalorder %s207_s29, %s6252_s3  ;;  %p5114_p5 = scmp.lt.s32.totalorder %s5112_s1, %s5107_s11 }
  0x50   : > { %p5110_p2 = pnand %p5108_p0, %p5269_p10 }
  0x51   : > { %p5115_p6 = por %p5114_p5, %p5113_p4 }
  0x52   : > { %p5111_p3 = pneg %p5110_p2 }
  0x54   : > { %p5116_p9 = pnand %p5115_p6, %p5111_p3 }
  0x56   : > { %5119 = shalt.err (!%p5116_p9)
}
  0x57   : > { %s5120_s18 = scalar_lea.vmem %s210_s30, 16  ;;  %s5179_s25 = smov [#allocation7]  }
  0x58   : > { %p5121_p11 = scmp.ne.s32.totalorder %s210_s30, %s5120_s18  ;;  %s5125_s28 = sshll.u32 %s5179_s25, 4  ;;  %s5126_s28 = int_to_ptr.vmem [resolvable:$false] %s5125_s28 }
  0x59   : > { %s5127_s13 = scalar_lea.vmem %s5126_s28, 32  ;;  %p5128_p7 = scmp.lt.s32.totalorder %s210_s30, %s5126_s28 }
  0x5a   : > { %p5123_p12 = pnand %p5121_p11, %p5269_p10  ;;  %p5129_p1 = scmp.lt.s32.totalorder %s5127_s13, %s5120_s18 }
  0x5c   : > { %p5124_p13 = pneg %p5123_p12  ;;  %p5130_p0 = por %p5129_p1, %p5128_p7 }
  0x5e   : > { %p5131_p2 = pnand %p5130_p0, %p5124_p13 }
  0x60   : > { %5134 = shalt.err (!%p5131_p2)
}
  0x61   : > { %4916 = dma.hbm_to_vmem [thread:$0]  (!%p5249_p8), %s207_s29, 16, %s210_s30, %s5263_s8  }
  0x62   : > { %p6264_p3 = scmp.ne.s32.totalorder %s6262_s6, 0 }
  0x64   : > { %218 = sbr.rel (%p6264_p3) target bundleno = 718 (0x2ce), region = 36 }
  0x69   : > { %s5348_s1 = sand.u32 1, %s5165_s16   ;;  %p6265_p10 = scmp.ne.s32.totalorder %s6258_s24, 0 }
  0x6a   : > { %s4900_s2 = smul.u32 576, %s5348_s1  ;;  %s221_s23 = scalar_lea.sflag [#allocation4], %s5348_s1 }
  0x6c   : > { %s5352_s10 = scalar_lea.vmem [#allocation3], %s4900_s2 }
  0x6d   : > { %5152 = dma.done.wait (%p6265_p10), %s221_s23, 9216  }
  0x6e   : > { %5154 = vsyncadd (%p6265_p10), %s221_s23, 4294958080  ;;  %s229_s26 = sand.u32 1, %s5225_s19   ;;  %s232_s6 = scalar_lea.vmem [#allocation5], %s5348_s1 }
  0x6f   : > { %s230_s8 = scalar_lea.sflag [#allocation6], %s229_s26 }
  0x70   : > { %5156 = dma.done.wait (%p6265_p10), %s230_s8, 32  }
  0x71   : > { %5158 = vsyncadd (%p6265_p10), %s230_s8, 4294967264  ;;  %s240_s15 = scalar_lea.vmem [#allocation7], %s5348_s1  ;;  %p4125_p8 = scmp.ne.s32.totalorder %s5225_s19, 0 }
  0x73   : > { %272 = sbr.rel (%p4125_p8) target bundleno = 159 (0x9f), region = 52 }
  0x78   : > { %v5371_v0 = vld [vmem:[%s6249_s0] sm:$0xff]  ;;  %v5376_v1 = vld [vmem:[%s6249_s0 + $0x8] sm:$0xff]  ;;  %v5381_v2 = vld [vmem:[%s6249_s0 + $0x10] sm:$0xff]  ;;  %v5180_v3 = vmov 0  }
  0x79   : > { %279 = vst [vmem:[#allocation2 + $0x18] sm:$0xf] %v5180_v3  ;;  %274 = vst [vmem:[#allocation2 + $0x4] sm:$0xf] %v5180_v3  ;;  %v369_v4 = vpack.c.bf16 %v5371_v0, %v5371_v0  ;;  %v370_v5 = vpack.c.bf16 %v5376_v1, %v5376_v1  ;;  %v371_v6 = vpack.c.bf16 %v5381_v2, %v5381_v2  ;;  %v356_v7 = vld [vmem:[%s6249_s0 + $0x18] sm:$0xff]  ;;  %v357_v8 = vld [vmem:[%s6249_s0 + $0x20] sm:$0xff] }
  0x7a   : > { %275 = vst [vmem:[#allocation2 + $0x8] sm:$0xf] %v5180_v3  ;;  %276 = vst [vmem:[#allocation2 + $0xc] sm:$0xf] %v5180_v3  ;;  %v358_v9 = vld [vmem:[%s6249_s0 + $0x28] sm:$0xff]  ;;  %v372_v10 = vpack.c.bf16 %v356_v7, %v356_v7  ;;  %v373_v11 = vpack.c.bf16 %v357_v8, %v357_v8  ;;  %v359_v13 = vld [vmem:[%s6249_s0 + $0x30] sm:$0xff] }
  0x7b   : > { %278 = vst [vmem:[#allocation2 + $0x14] sm:$0xf] %v5180_v3  ;;  %280 = vst [vmem:[#allocation2 + $0x1c] sm:$0xf] %v5180_v3  ;;  %v374_v12 = vpack.c.bf16 %v358_v9, %v358_v9  ;;  %v360_v14 = vld [vmem:[%s6249_s0 + $0x38] sm:$0xff]  ;;  %v361_v15 = vld [vmem:[%s6249_s0 + $0x40] sm:$0xff]  ;;  %v375_v16 = vpack.c.bf16 %v359_v13, %v359_v13 }
  0x7c   : > { %282 = vst [vmem:[#allocation2 + $0x24] sm:$0xf] %v5180_v3  ;;  %283 = vst [vmem:[#allocation2 + $0x28] sm:$0xf] %v5180_v3  ;;  %v376_v17 = vpack.c.bf16 %v360_v14, %v360_v14  ;;  %v377_v18 = vpack.c.bf16 %v361_v15, %v361_v15  ;;  %v362_v19 = vld [vmem:[%s6249_s0 + $0x48] sm:$0xff]  ;;  %v363_v20 = vld [vmem:[%s6249_s0 + $0x50] sm:$0xff] }
  0x7d   : > { %284 = vst [vmem:[#allocation2 + $0x2c] sm:$0xf] %v5180_v3  ;;  %286 = vst [vmem:[#allocation2 + $0x34] sm:$0xf] %v5180_v3  ;;  %v364_v21 = vld [vmem:[%s6249_s0 + $0x58] sm:$0xff]  ;;  %v378_v22 = vpack.c.bf16 %v362_v19, %v362_v19  ;;  %v379_v23 = vpack.c.bf16 %v363_v20, %v363_v20  ;;  %v365_v25 = vld [vmem:[%s6249_s0 + $0x60] sm:$0xff] }
  0x7e   : > { %287 = vst [vmem:[#allocation2 + $0x38] sm:$0xf] %v5180_v3  ;;  %288 = vst [vmem:[#allocation2 + $0x3c] sm:$0xf] %v5180_v3  ;;  %v380_v24 = vpack.c.bf16 %v364_v21, %v364_v21  ;;  %v366_v26 = vld [vmem:[%s6249_s0 + $0x68] sm:$0xff]  ;;  %v367_v27 = vld [vmem:[%s6249_s0 + $0x70] sm:$0xff]  ;;  %v381_v28 = vpack.c.bf16 %v365_v25, %v365_v25 }
  0x7f   : > { %290 = vst [vmem:[#allocation2 + $0x44] sm:$0xf] %v5180_v3  ;;  %291 = vst [vmem:[#allocation2 + $0x48] sm:$0xf] %v5180_v3  ;;  %v382_v29 = vpack.c.bf16 %v366_v26, %v366_v26  ;;  %v383_v30 = vpack.c.bf16 %v367_v27, %v367_v27  ;;  %v368_v31 = vld [vmem:[%s6249_s0 + $0x78] sm:$0xff] }
  0x80   : > { %292 = vst [vmem:[#allocation2 + $0x4c] sm:$0xf] %v5180_v3  ;;  %294 = vst [vmem:[#allocation2 + $0x54] sm:$0xf] %v5180_v3  ;;  %v384_v32 = vpack.c.bf16 %v368_v31, %v368_v31 }
  0x81   : > { %295 = vst [vmem:[#allocation2 + $0x58] sm:$0xf] %v5180_v3  ;;  %296 = vst [vmem:[#allocation2 + $0x5c] sm:$0xf] %v5180_v3 }
  0x82   : > { %298 = vst [vmem:[#allocation2 + $0x64] sm:$0xf] %v5180_v3  ;;  %299 = vst [vmem:[#allocation2 + $0x68] sm:$0xf] %v5180_v3 }
  0x83   : > { %300 = vst [vmem:[#allocation2 + $0x6c] sm:$0xf] %v5180_v3  ;;  %302 = vst [vmem:[#allocation2 + $0x74] sm:$0xf] %v5180_v3 }
  0x84   : > { %303 = vst [vmem:[#allocation2 + $0x78] sm:$0xf] %v5180_v3  ;;  %304 = vst [vmem:[#allocation2 + $0x7c] sm:$0xf] %v5180_v3 }
  0x85   : > { %306 = vst [vmem:[#allocation2 + $0x84] sm:$0xf] %v5180_v3  ;;  %307 = vst [vmem:[#allocation2 + $0x88] sm:$0xf] %v5180_v3 }
  0x86   : > { %308 = vst [vmem:[#allocation2 + $0x8c] sm:$0xf] %v5180_v3  ;;  %310 = vst [vmem:[#allocation2 + $0x94] sm:$0xf] %v5180_v3 }
  0x87   : > { %311 = vst [vmem:[#allocation2 + $0x98] sm:$0xf] %v5180_v3  ;;  %312 = vst [vmem:[#allocation2 + $0x9c] sm:$0xf] %v5180_v3 }
  0x88   : > { %314 = vst [vmem:[#allocation2 + $0xa4] sm:$0xf] %v5180_v3  ;;  %315 = vst [vmem:[#allocation2 + $0xa8] sm:$0xf] %v5180_v3 }
  0x89   : > { %316 = vst [vmem:[#allocation2 + $0xac] sm:$0xf] %v5180_v3  ;;  %318 = vst [vmem:[#allocation2 + $0xb4] sm:$0xf] %v5180_v3 }
  0x8a   : > { %319 = vst [vmem:[#allocation2 + $0xb8] sm:$0xf] %v5180_v3  ;;  %320 = vst [vmem:[#allocation2 + $0xbc] sm:$0xf] %v5180_v3 }
  0x8b   : > { %322 = vst [vmem:[#allocation2 + $0xc4] sm:$0xf] %v5180_v3  ;;  %323 = vst [vmem:[#allocation2 + $0xc8] sm:$0xf] %v5180_v3 }
  0x8c   : > { %324 = vst [vmem:[#allocation2 + $0xcc] sm:$0xf] %v5180_v3  ;;  %326 = vst [vmem:[#allocation2 + $0xd4] sm:$0xf] %v5180_v3 }
  0x8d   : > { %327 = vst [vmem:[#allocation2 + $0xd8] sm:$0xf] %v5180_v3  ;;  %328 = vst [vmem:[#allocation2 + $0xdc] sm:$0xf] %v5180_v3 }
  0x8e   : > { %330 = vst [vmem:[#allocation2 + $0xe4] sm:$0xf] %v5180_v3  ;;  %331 = vst [vmem:[#allocation2 + $0xe8] sm:$0xf] %v5180_v3 }
  0x8f   : > { %332 = vst [vmem:[#allocation2 + $0xec] sm:$0xf] %v5180_v3  ;;  %334 = vst [vmem:[#allocation2 + $0xf4] sm:$0xf] %v5180_v3 }
  0x90   : > { %335 = vst [vmem:[#allocation2 + $0xf8] sm:$0xf] %v5180_v3  ;;  %336 = vst [vmem:[#allocation2 + $0xfc] sm:$0xf] %v5180_v3 }
  0x91   : > { %338 = vst [vmem:[#allocation2 + $0x104] sm:$0xf] %v5180_v3  ;;  %339 = vst [vmem:[#allocation2 + $0x108] sm:$0xf] %v5180_v3 }
  0x92   : > { %340 = vst [vmem:[#allocation2 + $0x10c] sm:$0xf] %v5180_v3  ;;  %342 = vst [vmem:[#allocation2 + $0x114] sm:$0xf] %v5180_v3 }
  0x93   : > { %343 = vst [vmem:[#allocation2 + $0x118] sm:$0xf] %v5180_v3  ;;  %344 = vst [vmem:[#allocation2 + $0x11c] sm:$0xf] %v5180_v3 }
  0x94   : > { %346 = vst [vmem:[#allocation2 + $0x124] sm:$0xf] %v5180_v3  ;;  %347 = vst [vmem:[#allocation2 + $0x128] sm:$0xf] %v5180_v3 }
  0x95   : > { %348 = vst [vmem:[#allocation2 + $0x12c] sm:$0xf] %v5180_v3  ;;  %350 = vst [vmem:[#allocation2 + $0x134] sm:$0xf] %v5180_v3 }
  0x96   : > { %351 = vst [vmem:[#allocation2 + $0x138] sm:$0xf] %v5180_v3  ;;  %352 = vst [vmem:[#allocation2 + $0x13c] sm:$0xf] %v5180_v3 }
  0x97   : > { %386 = vst [vmem:[#allocation2 + $0x18] sm:$0xf] %v369_v4  ;;  %387 = vst [vmem:[#allocation2 + $0x28] sm:$0xf] %v370_v5 }
  0x98   : > { %388 = vst [vmem:[#allocation2 + $0x38] sm:$0xf] %v371_v6  ;;  %389 = vst [vmem:[#allocation2 + $0x48] sm:$0xf] %v372_v10 }
  0x99   : > { %390 = vst [vmem:[#allocation2 + $0x58] sm:$0xf] %v373_v11  ;;  %391 = vst [vmem:[#allocation2 + $0x68] sm:$0xf] %v374_v12 }
  0x9a   : > { %392 = vst [vmem:[#allocation2 + $0x78] sm:$0xf] %v375_v16  ;;  %393 = vst [vmem:[#allocation2 + $0x88] sm:$0xf] %v376_v17 }
  0x9b   : > { %394 = vst [vmem:[#allocation2 + $0xb8] sm:$0xf] %v377_v18  ;;  %395 = vst [vmem:[#allocation2 + $0xc8] sm:$0xf] %v378_v22 }
  0x9c   : > { %396 = vst [vmem:[#allocation2 + $0xd8] sm:$0xf] %v379_v23  ;;  %397 = vst [vmem:[#allocation2 + $0xe8] sm:$0xf] %v380_v24 }
  0x9d   : > { %398 = vst [vmem:[#allocation2 + $0xf8] sm:$0xf] %v381_v28  ;;  %399 = vst [vmem:[#allocation2 + $0x108] sm:$0xf] %v382_v29 }
  0x9e   : > { %400 = vst [vmem:[#allocation2 + $0x118] sm:$0xf] %v383_v30  ;;  %401 = vst [vmem:[#allocation2 + $0x128] sm:$0xf] %v384_v32 }
  0x9f PF: > { %v4953_v33 = vld [vmem:[%s5352_s10 + $0x78] sm:$0xff]   ;;  %v4955_v35 = vld [vmem:[%s5352_s10 + $0x70] sm:$0xff]   ;;  %v4957_v37 = vld [vmem:[%s5352_s10 + $0x68] sm:$0xff]   ;;  %vm434_vm0 = vsmask.f32 256 }
  0xa0   : > { %v4954_v34 = vld [vmem:[%s5352_s10 + $0x38] sm:$0xff]   ;;  %4594 = vmatprep.subr.bf16.mxu0 %v4953_v33  ;;  %v4956_v36 = vld [vmem:[%s5352_s10 + $0x30] sm:$0xff]   ;;  %v4958_v38 = vld [vmem:[%s5352_s10 + $0x28] sm:$0xff]   ;;  %vm435_vm1 = vsmask.f32 4368 }
  0xa1   : > { %4626 = vmatprep.subr.bf16.mxu1 %v4954_v34  ;;  %4595 = vmatpush3.bf16.msra.mxu0 %v4953_v33  ;;  %v4959_v39 = vld [vmem:[%s5352_s10 + $0x60] sm:$0xff]   ;;  %v4961_v41 = vld [vmem:[%s5352_s10 + $0x58] sm:$0xff]   ;;  %v4963_v43 = vld [vmem:[%s5352_s10 + $0x50] sm:$0xff]   ;;  %vm1080_vm3 = vsmask.f32 3328 }
  0xa2   : > { %4627 = vmatpush3.bf16.msra.mxu1 %v4954_v34  ;;  %4596 = vmatprep.subr.bf16.mxu0 %v4955_v35  ;;  %v4960_v40 = vld [vmem:[%s5352_s10 + $0x20] sm:$0xff]   ;;  %v4962_v42 = vld [vmem:[%s5352_s10 + $0x18] sm:$0xff]   ;;  %v4964_v44 = vld [vmem:[%s5352_s10 + $0x10] sm:$0xff]   ;;  %vm1081_vm4 = vsmask.f32 7440 }
  0xa3   : > { %4628 = vmatprep.subr.bf16.mxu1 %v4956_v36  ;;  %v403_v45 = vld [vmem:[#allocation2 + $0x8] sm:$0xf]  ;;  %v405_v46 = vld [vmem:[#allocation2 + $0x18] sm:$0xf]  ;;  %v402_v47 = vld [vmem:[#allocation2 + $0x4] sm:$0x8] }
  0xa4   : > { %v443_v48 = vshrl.u32 %v403_v45, 16  ;;  %v446_v49 = vshll.u32 %v403_v45, 16  ;;  %v456_v50 = vshrl.u32 %v405_v46, 16  ;;  %v459_v51 = vshll.u32 %v405_v46, 16  ;;  %v404_v52 = vld [vmem:[#allocation2 + $0x14] sm:$0x8]  ;;  %vm5444_vm2 = vmor %vm434_vm0, %vm435_vm1 }
  0xa5   : > { %4597 = vmatpush3.bf16.msra.mxu0 %v4955_v35  ;;  %v4158_v53 = vcombine.low %v403_v45, %v405_v46  ;;  %v438_v54 = vshrl.u32 %v402_v47, 16  ;;  %v4965_v55 = vld [vmem:[%s5352_s10 + $0x48] sm:$0xff]   ;;  %v451_v58 = vshrl.u32 %v404_v52, 16  ;;  %v5448_v63 = vld [vmem:[#allocation2 + $0x38] sm:$0xf]  ;;  %v4967_v15 = vld [vmem:[%s5352_s10 + $0x40] sm:$0xff]  }
  0xa6   : > { %4629 = vmatpush3.bf16.msra.mxu1 %v4956_v36  ;;  %4598 = vmatprep.subr.bf16.mxu0 %v4957_v37  ;;  %v445_v56 = vrot.slane %v443_v48, 7  ;;  %v458_v57 = vrot.slane %v456_v50, 7  ;;  %v5441_v59 = vld [vmem:[#allocation2 + $0x28] sm:$0xf]  ;;  %v482_v5 = vshrl.u32 %v5448_v63, 16  ;;  %v485_v9 = vshll.u32 %v5448_v63, 16  ;;  %vm5552_vm5 = vmor %vm1080_vm3, %vm1081_vm4 }
  0xa7   : > { %4630 = vmatprep.subr.bf16.mxu1 %v4958_v38  ;;  %v4966_v60 = vld [vmem:[%s5352_s10 + $0x8] sm:$0xff]   ;;  %v4126_v62 = vrot.slane %v438_v54, 11  ;;  %v469_v0 = vshrl.u32 %v5441_v59, 16  ;;  %v472_v1 = vshll.u32 %v5441_v59, 16  ;;  %4610 = vmatprep.mubr.bf16.mxu0 %v4158_v53  ;;  %v4127_v3 = vrot.slane %v451_v58, 11  ;;  %v4968_v19 = vld [vmem:[%s5352_s10] sm:$0xff]  }
  0xa8   : > { %v448_v2 = vor.u32 %v446_v49, %v445_v56  ;;  %v461_v4 = vor.u32 %v459_v51, %v458_v57  ;;  %v406_v6 = vld [vmem:[#allocation2 + $0x24] sm:$0x8]  ;;  %v408_v7 = vld [vmem:[#allocation2 + $0x34] sm:$0x8]  ;;  %v484_v13 = vrot.slane %v482_v5, 7  ;;  %v4971_v23 = vld [vmem:[%s5352_s10 + $0xb8] sm:$0xff]   ;;  %v4159_v32 = vcombine.low %v5441_v59, %v5448_v63 }
  0xa9   : > { %4599 = vmatpush3.bf16.msra.mxu0 %v4957_v37  ;;  %v471_v8 = vrot.slane %v469_v0, 7  ;;  %v464_v10 = vshrl.u32 %v406_v6, 16  ;;  %v477_v14 = vshrl.u32 %v408_v7, 16  ;;  %v5463_v24 = vld [vmem:[#allocation2 + $0x48] sm:$0xf]  ;;  %v4972_v27 = vld [vmem:[%s5352_s10 + $0xf8] sm:$0xff]  }
  0xaa   : > { %4631 = vmatpush3.bf16.msra.mxu1 %v4958_v38  ;;  %4600 = vmatprep.subr.bf16.mxu0 %v4959_v39  ;;  %v449_v11 = vsel %vm5444_vm2, %v4126_v62, %v448_v2  ;;  %v462_v12 = vsel %vm5444_vm2, %v4127_v3, %v461_v4  ;;  %v487_v21 = vor.u32 %v485_v9, %v484_v13  ;;  %v5465_v25 = vld [vmem:[#allocation2 + $0x58] sm:$0xf]  ;;  %v495_v28 = vshrl.u32 %v5463_v24, 16  ;;  %v410_v31 = vld [vmem:[#allocation2 + $0x44] sm:$0x8]  ;;  %v4974_v54 = vld [vmem:[%s5352_s10 + $0xf0] sm:$0xff]  }
  0xab   : > { %4632 = vmatprep.subr.bf16.mxu1 %v4960_v40  ;;  %v4174_v16 = vcombine.low %v449_v11, %v462_v12  ;;  %v4128_v17 = vrot.slane %v464_v10, 11  ;;  %v474_v18 = vor.u32 %v472_v1, %v471_v8  ;;  %v4129_v20 = vrot.slane %v477_v14, 11  ;;  %v412_v35 = vld [vmem:[#allocation2 + $0x54] sm:$0x8]  ;;  %v5476_v37 = vld [vmem:[#allocation2 + $0x68] sm:$0xf] }
  0xac   : > { %v498_v29 = vshll.u32 %v5463_v24, 16  ;;  %v508_v30 = vshrl.u32 %v5465_v25, 16  ;;  %v511_v34 = vshll.u32 %v5465_v25, 16  ;;  %v490_v36 = vshrl.u32 %v410_v31, 16  ;;  %v414_v48 = vld [vmem:[#allocation2 + $0x64] sm:$0x8] }
  0xad   : > { %4601 = vmatpush3.bf16.msra.mxu0 %v4959_v39  ;;  %4642 = vmatprep.mubr.bf16.mxu1 %v4174_v16  ;;  %v475_v22 = vsel %vm5444_vm2, %v4128_v17, %v474_v18  ;;  %v488_v26 = vsel %vm5444_vm2, %v4129_v20, %v487_v21  ;;  %v497_v38 = vrot.slane %v495_v28, 7  ;;  %v524_v45 = vshll.u32 %v5476_v37, 16  ;;  %v416_v53 = vld [vmem:[#allocation2 + $0x74] sm:$0x8]  ;;  %v4977_v3 = vld [vmem:[%s5352_s10 + $0xa8] sm:$0xff]  }
  0xae   : > { %4633 = vmatpush3.bf16.msra.mxu1 %v4960_v40  ;;  %4602 = vmatprep.subr.bf16.mxu0 %v4961_v41  ;;  %v4175_v33 = vcombine.low %v475_v22, %v488_v26  ;;  %v510_v39 = vrot.slane %v508_v30, 7  ;;  %v503_v40 = vshrl.u32 %v412_v35, 16  ;;  %v516_v56 = vshrl.u32 %v414_v48, 16  ;;  %v4978_v4 = vld [vmem:[%s5352_s10 + $0xe8] sm:$0xff]   ;;  %v421_v6 = vld [vmem:[#allocation2 + $0xb8] sm:$0xf] }
  0xaf   : > { %4634 = vmatprep.subr.bf16.mxu1 %v4962_v42  ;;  %v500_v49 = vor.u32 %v498_v29, %v497_v38  ;;  %v529_v57 = vshrl.u32 %v416_v53, 16  ;;  %v4160_v58 = vcombine.low %v5463_v24, %v5465_v25  ;;  %v419_v5 = vld [vmem:[#allocation2 + $0xa8] sm:$0xf]  ;;  %v418_v11 = vld [vmem:[#allocation2 + $0xa4] sm:$0x8]  ;;  %v563_v16 = vshll.u32 %v421_v6, 16 }
  0xb0   : > { %v4131_v50 = vrot.slane %v503_v40, 11  ;;  %v513_v51 = vor.u32 %v511_v34, %v510_v39  ;;  %v4132_v0 = vrot.slane %v516_v56, 11  ;;  %v547_v9 = vshrl.u32 %v419_v5, 16  ;;  %v420_v12 = vld [vmem:[#allocation2 + $0xb4] sm:$0x8]  ;;  %v4980_v30 = vld [vmem:[%s5352_s10 + $0xe0] sm:$0xff]  }
  0xb1   : > { %4603 = vmatpush3.bf16.msra.mxu0 %v4961_v41  ;;  %v5478_v41 = vld [vmem:[#allocation2 + $0x78] sm:$0xf]  ;;  %v4133_v1 = vrot.slane %v529_v57, 11  ;;  %v550_v10 = vshll.u32 %v419_v5, 16  ;;  %v5500_v17 = vld [vmem:[#allocation2 + $0xc8] sm:$0xf]  ;;  %v4162_v35 = vcombine.low %v419_v5, %v421_v6 }
  0xb2   : > { %4635 = vmatpush3.bf16.msra.mxu1 %v4962_v42  ;;  %4604 = vmatprep.subr.bf16.mxu0 %v4963_v43  ;;  %v521_v42 = vshrl.u32 %v5476_v37, 16  ;;  %v534_v46 = vshrl.u32 %v5478_v41, 16  ;;  %v537_v47 = vshll.u32 %v5478_v41, 16  ;;  %v4161_v13 = vcombine.low %v5476_v37, %v5478_v41  ;;  %v5502_v18 = vld [vmem:[#allocation2 + $0xd8] sm:$0xf] }
  0xb3   : > { %4636 = vmatprep.subr.bf16.mxu1 %v4964_v44  ;;  %v549_v20 = vrot.slane %v547_v9, 7  ;;  %v542_v21 = vshrl.u32 %v418_v11, 16  ;;  %v555_v22 = vshrl.u32 %v420_v12, 16  ;;  %v422_v24 = vld [vmem:[#allocation2 + $0xc4] sm:$0x8]  ;;  %v576_v26 = vshll.u32 %v5500_v17, 16 }
  0xb4   : > { %v523_v52 = vrot.slane %v521_v42, 7  ;;  %v589_v28 = vshll.u32 %v5502_v18, 16  ;;  %v424_v29 = vld [vmem:[#allocation2 + $0xd4] sm:$0x8]  ;;  %v568_v38 = vshrl.u32 %v422_v24, 16  ;;  %v4984_v48 = vld [vmem:[%s5352_s10 + $0xd8] sm:$0xff]  }
  0xb5   : > { %4605 = vmatpush3.bf16.msra.mxu0 %v4963_v43  ;;  %v4973_v43 = vld [vmem:[%s5352_s10 + $0xb0] sm:$0xff]   ;;  %v4134_v31 = vrot.slane %v542_v21, 11  ;;  %v581_v41 = vshrl.u32 %v424_v29, 16  ;;  %v430_v9 = vld [vmem:[#allocation2 + $0x104] sm:$0x8] }
  0xb6   : > { %4637 = vmatpush3.bf16.msra.mxu1 %v4964_v44  ;;  %4606 = vmatprep.subr.bf16.mxu0 %v4965_v55  ;;  %v4130_v44 = vrot.slane %v490_v36, 11  ;;  %v526_v62 = vor.u32 %v524_v45, %v523_v52  ;;  %v4983_v45 = vld [vmem:[%s5352_s10 + $0x98] sm:$0xff]   ;;  %v620_v21 = vshrl.u32 %v430_v9, 16 }
  0xb7   : > { %4638 = vmatprep.subr.bf16.mxu1 %v4966_v60  ;;  %v429_v52 = vld [vmem:[#allocation2 + $0xf8] sm:$0xf] }
  0xb8   : > { %v501_v59 = vsel %vm5444_vm2, %v4130_v44, %v500_v49  ;;  %v527_v7 = vsel %vm5444_vm2, %v4132_v0, %v526_v62  ;;  %v427_v49 = vld [vmem:[#allocation2 + $0xe8] sm:$0xf]  ;;  %v612_v57 = vshrl.u32 %v429_v52, 16  ;;  %v4985_v0 = vld [vmem:[%s5352_s10 + $0x90] sm:$0xff]  }
  0xb9   : > { %4607 = vmatpush3.bf16.msra.mxu0 %v4965_v55  ;;  %v536_v55 = vrot.slane %v534_v46, 7  ;;  %v599_v53 = vshrl.u32 %v427_v49, 16  ;;  %v5522_v62 = vld [vmem:[#allocation2 + $0x108] sm:$0xf] }
  0xba   : > { %4639 = vmatpush3.bf16.msra.mxu1 %v4966_v60  ;;  %4608 = vmatprep.subr.bf16.mxu0 %v4967_v15  ;;  %v514_v60 = vsel %vm5444_vm2, %v4131_v50, %v513_v51  ;;  %v4163_v50 = vcombine.low %v5500_v17, %v5502_v18  ;;  %v614_v5 = vrot.slane %v612_v57, 7 }
  0xbb   : > { %4640 = vmatprep.subr.bf16.mxu1 %v4968_v19  ;;  %v4176_v63 = vcombine.low %v501_v59, %v514_v60  ;;  %v539_v2 = vor.u32 %v537_v47, %v536_v55  ;;  %v4137_v47 = vrot.slane %v581_v41, 11  ;;  %v426_v55 = vld [vmem:[#allocation2 + $0xe4] sm:$0x8]  ;;  %v4164_v59 = vcombine.low %v427_v49, %v429_v52  ;;  %v428_v60 = vld [vmem:[#allocation2 + $0xf4] sm:$0x8] }
  0xbd   : > { %4609 = vmatpush3.bf16.msra.mxu0 %v4967_v15  ;;  %v540_v8 = vsel %vm5444_vm2, %v4133_v1, %v539_v2  ;;  %v560_v15 = vshrl.u32 %v421_v6, 16  ;;  %v601_v1 = vrot.slane %v599_v53, 7  ;;  %v594_v2 = vshrl.u32 %v426_v55, 16 }
  0xbe   : > { %4641 = vmatpush3.bf16.msra.mxu1 %v4968_v19  ;;  %4658 = vmatprep.subr.bf16.mxu0 %v4971_v23  ;;  %v4177_v14 = vcombine.low %v527_v7, %v540_v8  ;;  %v4979_v19 = vld [vmem:[%s5352_s10 + $0xa0] sm:$0xff]   ;;  %v625_v6 = vshrl.u32 %v5522_v62, 16  ;;  %v628_v7 = vshll.u32 %v5522_v62, 16 }
  0xbf   : > { %4690 = vmatprep.subr.bf16.mxu1 %v4972_v27  ;;  %v562_v25 = vrot.slane %v560_v15, 7  ;;  %v4138_v11 = vrot.slane %v594_v2, 11  ;;  %v432_v15 = vld [vmem:[#allocation2 + $0x114] sm:$0x8] }
  0xc0   : > { %4611 = vmatmul.mubr.bf16.vlgmr.msra.gmra.mxu0 %v4159_v32  ;;  %v552_v32 = vor.u32 %v550_v10, %v549_v20  ;;  %v4986_v10 = vld [vmem:[%s5352_s10 + $0xd0] sm:$0xff]  }
  0xc1   : > { %4643 = vmatmul.mubr.bf16.vlgmr.msra.gmra.mxu1 %v4175_v33  ;;  %4659 = vmatpush3.bf16.msra.mxu0 %v4971_v23  ;;  %v573_v23 = vshrl.u32 %v5500_v17, 16  ;;  %v4135_v33 = vrot.slane %v555_v22, 11  ;;  %v565_v36 = vor.u32 %v563_v16, %v562_v25  ;;  %v627_v17 = vrot.slane %v625_v6, 7  ;;  %v5559_v6 = vld [vmem:[%s5352_s10 + $0x178] sm:$0xff]  }
  0xc2   : > { %4691 = vmatpush3.bf16.msra.mxu1 %v4972_v27  ;;  %4660 = vmatprep.subr.bf16.mxu0 %v4973_v43  ;;  %v586_v27 = vshrl.u32 %v5502_v18, 16  ;;  %v553_v39 = vsel %vm5444_vm2, %v4134_v31, %v552_v32  ;;  %v633_v22 = vshrl.u32 %v432_v15, 16  ;;  %v4991_v31 = vld [vmem:[%s5352_s10 + $0x80] sm:$0xff]   ;;  %v1048_v32 = vld [vmem:[#allocation2 + $0x8] sm:$0xf] }
  0xc3   : > { %4692 = vmatprep.subr.bf16.mxu1 %v4974_v54  ;;  %4614 = vmatprep.mubr.bf16.mxu0 %v4160_v58  ;;  %v575_v34 = vrot.slane %v573_v23, 7  ;;  %v566_v42 = vsel %vm5444_vm2, %v4135_v33, %v565_v36  ;;  %v615_v58 = vshll.u32 %v429_v52, 16  ;;  %v630_v24 = vor.u32 %v628_v7, %v627_v17  ;;  %v1049_v33 = vld [vmem:[#allocation2 + $0xc] sm:$0x1]  ;;  %v4992_v36 = vld [vmem:[%s5352_s10 + $0xc0] sm:$0xff]  }
  0xc4   : > { %4646 = vmatprep.mubr.bf16.mxu1 %v4176_v63  ;;  %v588_v37 = vrot.slane %v586_v27, 7  ;;  %v4178_v46 = vcombine.low %v553_v39, %v566_v42  ;;  %v4141_v29 = vrot.slane %v633_v22, 11  ;;  %v1087_v41 = vshll.u32 %v1048_v32, 16  ;;  %v1518_v42 = vld [vmem:[#allocation2 + $0x14] sm:$0x8] }
  0xc5   : > { %4661 = vmatpush3.bf16.msra.mxu0 %v4973_v43  ;;  %v578_v40 = vor.u32 %v576_v26, %v575_v34  ;;  %v4136_v43 = vrot.slane %v568_v38, 11  ;;  %v617_v16 = vor.u32 %v615_v58, %v614_v5  ;;  %v4990_v26 = vld [vmem:[%s5352_s10 + $0xc8] sm:$0xff]   ;;  %v1051_v38 = vld [vmem:[#allocation2 + $0x1c] sm:$0x1]  ;;  %v1551_v58 = vshrl.u32 %v1518_v42, 16 }
  0xc6   : > { %4693 = vmatpush3.bf16.msra.mxu1 %v4974_v54  ;;  %4662 = vmatprep.subr.bf16.mxu0 %v4977_v3  ;;  %v591_v44 = vor.u32 %v589_v28, %v588_v37  ;;  %v602_v54 = vshll.u32 %v427_v49, 16  ;;  %v4140_v28 = vrot.slane %v620_v21, 11  ;;  %v1050_v37 = vld [vmem:[#allocation2 + $0x18] sm:$0xf]  ;;  %v1089_v49 = vrot.slane %v1087_v41, 5 }
  0xc7   : > { %4694 = vmatprep.subr.bf16.mxu1 %v4978_v4  ;;  %v579_v51 = vsel %vm5444_vm2, %v4136_v43, %v578_v40  ;;  %v1084_v40 = vshrl.u32 %v1048_v32, 16  ;;  %v1093_v43 = vshll.u32 %v1049_v33, 16  ;;  %v1054_v5 = vld [vmem:[#allocation2 + $0x38] sm:$0xf]  ;;  %v1524_v22 = vld [vmem:[#allocation2 + $0x44] sm:$0x8] }
  0xc8   : > { %4615 = vmatmul.mubr.bf16.gmra.mxu0 %v4161_v13  ;;  %v592_v56 = vsel %vm5444_vm2, %v4137_v47, %v591_v44  ;;  %v604_v12 = vor.u32 %v602_v54, %v601_v1  ;;  %v631_v34 = vsel %vm5444_vm2, %v4140_v28, %v630_v24  ;;  %v1098_v44 = vshrl.u32 %v1050_v37, 16  ;;  %v5541_v47 = vld [vmem:[#allocation2 + $0x18] sm:$0xf] }
  0xc9   : > { %4647 = vmatmul.mubr.bf16.gmra.mxu1 %v4177_v14  ;;  %4663 = vmatpush3.bf16.msra.mxu0 %v4977_v3  ;;  %v4179_v63 = vcombine.low %v579_v51, %v592_v56  ;;  %v607_v3 = vshrl.u32 %v428_v60, 16  ;;  %v5543_v51 = vld [vmem:[#allocation2 + $0x28] sm:$0xf]  ;;  %v1095_v52 = vrot.slane %v1093_v43, 5  ;;  %v1559_v60 = vshll.u32 %v5541_v47, 16 }
  0xca   : > { %4695 = vmatpush3.bf16.msra.mxu1 %v4978_v4  ;;  %4664 = vmatprep.subr.bf16.mxu0 %v4979_v19  ;;  %v433_v4 = vld [vmem:[#allocation2 + $0x118] sm:$0xf]  ;;  %v605_v20 = vsel %vm5444_vm2, %v4138_v11, %v604_v12  ;;  %v1100_v53 = vrot.slane %v1098_v44, 4  ;;  %v1052_v56 = vld [vmem:[#allocation2 + $0x28] sm:$0xf]  ;;  %v1590_v43 = vshrl.u32 %v1524_v22, 16 }
  0xcb   : > { %4696 = vmatprep.subr.bf16.mxu1 %v4980_v30  ;;  %4618 = vmatprep.mubr.bf16.mxu0 %v4162_v35  ;;  %v638_v8 = vshrl.u32 %v433_v4, 16  ;;  %v4139_v13 = vrot.slane %v607_v3, 11  ;;  %v641_v14 = vshll.u32 %v433_v4, 16  ;;  %v1569_v3 = vshrl.u32 %v5543_v51, 16  ;;  %v5563_v21 = vld [vmem:[#allocation2 + $0x38] sm:$0xf] }
  0xcc   : > { %4650 = vmatprep.mubr.bf16.mxu1 %v4178_v46  ;;  %v1107_v46 = vshll.u32 %v1051_v38, 16  ;;  %v1112_v11 = vshrl.u32 %v1052_v56, 16  ;;  %v1115_v15 = vshll.u32 %v1052_v56, 16  ;;  %v1585_v42 = vshll.u32 %v5563_v21, 16 }
  0xcd   : > { %4665 = vmatpush3.bf16.msra.mxu0 %v4979_v19  ;;  %v640_v18 = vrot.slane %v638_v8, 7  ;;  %v4989_v19 = vld [vmem:[%s5352_s10 + $0x88] sm:$0xff]   ;;  %v618_v23 = vsel %vm5444_vm2, %v4139_v13, %v617_v16  ;;  %v4222_v8 = vrot.slane %v1551_v58, 11  ;;  %v1522_v16 = vld [vmem:[#allocation2 + $0x34] sm:$0x8] }
  0xce   : > { %4697 = vmatpush3.bf16.msra.mxu1 %v4980_v30  ;;  %4666 = vmatprep.subr.bf16.mxu0 %v4983_v45  ;;  %v4180_v27 = vcombine.low %v605_v20, %v618_v23  ;;  %v4165_v30 = vcombine.low %v5522_v62, %v433_v4  ;;  %v1109_v55 = vrot.slane %v1107_v46, 5  ;;  %v1053_v62 = vld [vmem:[#allocation2 + $0x2c] sm:$0x1]  ;;  %v1572_v4 = vshll.u32 %v5543_v51, 16 }
  0xcf   : > { %4698 = vmatprep.subr.bf16.mxu1 %v4984_v48  ;;  %v643_v25 = vor.u32 %v641_v14, %v640_v18  ;;  %v1571_v14 = vrot.slane %v1569_v3, 7  ;;  %v1121_v20 = vshll.u32 %v1053_v62, 16  ;;  %v1577_v38 = vshrl.u32 %v1522_v16, 16  ;;  %v1059_v62 = vld [vmem:[#allocation2 + $0x5c] sm:$0x1] }
  0xd0   : > { %4619 = vmatmul.mubr.bf16.gmra.mxu0 %v4163_v50  ;;  %v1520_v50 = vld [vmem:[#allocation2 + $0x24] sm:$0x8]  ;;  %v1163_v22 = vshll.u32 %v1059_v62, 16 }
  0xd1   : > { %4651 = vmatmul.mubr.bf16.gmra.mxu1 %v4179_v63  ;;  %4667 = vmatpush3.bf16.msra.mxu0 %v4983_v45  ;;  %v644_v35 = vsel %vm5444_vm2, %v4141_v29, %v643_v25  ;;  %v1101_v45 = vshll.u32 %v1050_v37, 16  ;;  %v5548_v63 = vld [vmem:[%s5352_s10 + $0x138] sm:$0xff]   ;;  %v1564_v2 = vshrl.u32 %v1520_v50, 16  ;;  %v1574_v24 = vor.u32 %v1572_v4, %v1571_v14  ;;  %v4999_v62 = vld [vmem:[%s5352_s10 + $0x120] sm:$0xff]  }
  0xd2   : > { %4699 = vmatpush3.bf16.msra.mxu1 %v4984_v48  ;;  %4668 = vmatprep.subr.bf16.mxu0 %v4985_v0  ;;  %v4181_v39 = vcombine.low %v631_v34, %v644_v35  ;;  %v1086_v48 = vrot.slane %v1084_v40, 4  ;;  %v1117_v25 = vrot.slane %v1115_v15, 5  ;;  %v4225_v50 = vrot.slane %v1590_v43, 11 }
  0xd3   : > { %4700 = vmatprep.subr.bf16.mxu1 %v4986_v10  ;;  %4622 = vmatprep.mubr.bf16.mxu0 %v4164_v59  ;;  %v1103_v54 = vrot.slane %v1101_v45, 5  ;;  %v1556_v59 = vshrl.u32 %v5541_v47, 16  ;;  %v4223_v13 = vrot.slane %v1564_v2, 11  ;;  %v4224_v45 = vrot.slane %v1577_v38, 11 }
  0xd4   : > { %4654 = vmatprep.mubr.bf16.mxu1 %v4180_v27  ;;  %v1090_v57 = vor.u32 %v1089_v49, %v1086_v48  ;;  %v5568_v27 = vld [vmem:[#allocation2 + $0x48] sm:$0xf] }
  0xd5   : > { %4669 = vmatpush3.bf16.msra.mxu0 %v4985_v0  ;;  %v1104_v1 = vor.u32 %v1103_v54, %v1100_v53  ;;  %v1558_v9 = vrot.slane %v1556_v59, 7  ;;  %v1575_v32 = vsel %vm5444_vm2, %v4223_v13, %v1574_v24  ;;  %v1595_v48 = vshrl.u32 %v5568_v27, 16  ;;  %v1056_v53 = vld [vmem:[#allocation2 + $0x48] sm:$0xf]  ;;  %v1057_v54 = vld [vmem:[#allocation2 + $0x4c] sm:$0x1] }
  0xd6   : > { %4701 = vmatpush3.bf16.msra.mxu1 %v4986_v10  ;;  %4670 = vmatprep.subr.bf16.mxu0 %v4989_v19  ;;  %v1091_v7 = vrot.slane %v1090_v57, 4  ;;  %v1055_v10 = vld [vmem:[#allocation2 + $0x3c] sm:$0x1]  ;;  %v1058_v59 = vld [vmem:[#allocation2 + $0x58] sm:$0xf]  ;;  %v1143_v2 = vshll.u32 %v1056_v53, 16 }
  0xd7   : > { %4702 = vmatprep.subr.bf16.mxu1 %v4990_v26  ;;  %v1105_v12 = vrot.slane %v1104_v1, 4  ;;  %v1561_v18 = vor.u32 %v1559_v60, %v1558_v9  ;;  %v1135_v35 = vshll.u32 %v1055_v10, 16  ;;  %v1597_v58 = vrot.slane %v1595_v48, 7  ;;  %v1526_v10 = vld [vmem:[#allocation2 + $0x54] sm:$0x8] }
  0xd8   : > { %4623 = vmatmul.mubr.bf16.gmra.mxu0 %v4165_v30  ;;  %v1096_v17 = vsel %vm5552_vm5, %v1091_v7, %v1095_v52  ;;  %v1123_v30 = vrot.slane %v1121_v20, 5  ;;  %v1598_v52 = vshll.u32 %v5568_v27, 16  ;;  %v4287_v60 = vcombine.low %v5563_v21, %v5568_v27  ;;  %v4995_v13 = vld [vmem:[%s5352_s10 + $0x130] sm:$0xff]  }
  0xd9   : > { %4655 = vmatmul.mubr.bf16.gmra.mxu1 %v4181_v39  ;;  %4671 = vmatpush3.bf16.msra.mxu0 %v4989_v19  ;;  %v1114_v19 = vrot.slane %v1112_v11, 4  ;;  %v1110_v23 = vsel %vm5552_vm5, %v1105_v12, %v1109_v55  ;;  %v1562_v29 = vsel %vm5444_vm2, %v4222_v8, %v1561_v18  ;;  %v1582_v39 = vshrl.u32 %v5563_v21, 16  ;;  %v5589_v11 = vld [vmem:[#allocation2 + $0x58] sm:$0xf] }
  0xda   : > { %4703 = vmatpush3.bf16.msra.mxu1 %v4990_v26  ;;  %4672 = vmatprep.subr.bf16.mxu0 %v4991_v31  ;;  %v1126_v26 = vshrl.u32 %v1054_v5, 16  ;;  %v4206_v28 = vcombine.low %v1096_v17, %v1110_v23  ;;  %v1137_v41 = vrot.slane %v1135_v35, 5  ;;  %v4286_v55 = vcombine.low %v5541_v47, %v5543_v51  ;;  %v1528_v17 = vld [vmem:[#allocation2 + $0x64] sm:$0x8]  ;;  %v5594_v23 = vld [vmem:[#allocation2 + $0x68] sm:$0xf] }
  0xdb   : > { %4704 = vmatprep.subr.bf16.mxu1 %v4992_v36  ;;  %v1118_v33 = vor.u32 %v1117_v25, %v1114_v19  ;;  %v1584_v46 = vrot.slane %v1582_v39, 7  ;;  %v1140_v1 = vshrl.u32 %v1056_v53, 16  ;;  %v1149_v3 = vshll.u32 %v1057_v54, 16  ;;  %v4996_v25 = vld [vmem:[%s5352_s10 + $0x170] sm:$0xff]   ;;  %v1061_v35 = vld [vmem:[#allocation2 + $0x6c] sm:$0x1] }
  0xdc   : > { %v1128_v34 = vrot.slane %v1126_v26, 4  ;;  %4674 = vmatprep.mubr.bf16.mxu0 %v4206_v28  ;;  %v1154_v4 = vshrl.u32 %v1058_v59, 16  ;;  %v1600_v8 = vor.u32 %v1598_v52, %v1597_v58  ;;  %v1157_v9 = vshll.u32 %v1058_v59, 16  ;;  %v1530_v53 = vld [vmem:[#allocation2 + $0x74] sm:$0x8] }
  0xdd   : > { %4673 = vmatpush3.bf16.msra.mxu0 %v4991_v31  ;;  %v1129_v31 = vshll.u32 %v1054_v5, 16  ;;  %v1119_v40 = vrot.slane %v1118_v33, 4  ;;  %v1587_v57 = vor.u32 %v1585_v42, %v1584_v46  ;;  %v1142_v14 = vrot.slane %v1140_v1, 4  ;;  %v4998_v42 = vld [vmem:[%s5352_s10 + $0x168] sm:$0xff]   ;;  %v5607_v54 = vld [vmem:[#allocation2 + $0x78] sm:$0xf] }
  0xde   : > { %4705 = vmatpush3.bf16.msra.mxu1 %v4992_v36  ;;  %4722 = vmatprep.subr.bf16.mxu0 %v5548_v63  ;;  %v4254_v36 = vcombine.low %v1562_v29, %v1575_v32  ;;  %v1145_v15 = vrot.slane %v1143_v2, 5  ;;  %v1151_v16 = vrot.slane %v1149_v3, 5  ;;  %v1601_v18 = vsel %vm5444_vm2, %v4225_v50, %v1600_v8  ;;  %v1532_v59 = vld [vmem:[#allocation2 + $0x84] sm:$0x8]  ;;  %v5013_v51 = vld [vmem:[%s5352_s10 + $0x1b0] sm:$0xff]  }
  0xdf   : > { %4754 = vmatprep.subr.bf16.mxu1 %v5559_v6  ;;  %v1131_v37 = vrot.slane %v1129_v31, 5  ;;  %v1124_v49 = vsel %vm5552_vm5, %v1119_v40, %v1123_v30  ;;  %v1588_v7 = vsel %vm5444_vm2, %v4224_v45, %v1587_v57  ;;  %v1156_v19 = vrot.slane %v1154_v4, 4  ;;  %v1060_v30 = vld [vmem:[#allocation2 + $0x68] sm:$0xf]  ;;  %v1063_v45 = vld [vmem:[#allocation2 + $0x7c] sm:$0x1] }
  0xe0   : > { %4706 = vmatprep.mubr.bf16.mxu1 %v4254_v36  ;;  %v1159_v20 = vrot.slane %v1157_v9, 5  ;;  %v4255_v24 = vcombine.low %v1588_v7, %v1601_v18  ;;  %v1146_v26 = vor.u32 %v1145_v15, %v1142_v14  ;;  %v1603_v28 = vshrl.u32 %v1526_v10, 16  ;;  %v4997_v36 = vld [vmem:[%s5352_s10 + $0x128] sm:$0xff]   ;;  %v5000_v7 = vld [vmem:[%s5352_s10 + $0x160] sm:$0xff]  }
  0xe1   : > { %v1132_v44 = vor.u32 %v1131_v37, %v1128_v34  ;;  %v1608_v29 = vshrl.u32 %v5589_v11, 16  ;;  %v1165_v32 = vrot.slane %v1163_v22, 5  ;;  %v1611_v33 = vshll.u32 %v5589_v11, 16  ;;  %v5001_v22 = vld [vmem:[%s5352_s10 + $0x118] sm:$0xff]  }
  0xe2   : > { %v1160_v31 = vor.u32 %v1159_v20, %v1156_v19  ;;  %v1616_v34 = vshrl.u32 %v1528_v17, 16  ;;  %4707 = vmatmul.mubr.bf16.vlgmr.msra.gmra.mxu1 %v4255_v24  ;;  %v1147_v37 = vrot.slane %v1146_v26, 4  ;;  %v4226_v38 = vrot.slane %v1603_v28, 11 }
  0xe3   : > { %v1133_v56 = vrot.slane %v1132_v44, 4  ;;  %v1610_v39 = vrot.slane %v1608_v29, 7  ;;  %v1621_v40 = vshrl.u32 %v5594_v23, 16  ;;  %4755 = vmatpush3.bf16.msra.mxu1 %v5559_v6  ;;  %v1624_v44 = vshll.u32 %v5594_v23, 16  ;;  %v5002_v29 = vld [vmem:[%s5352_s10 + $0x158] sm:$0xff]  }
  0xe4   : > { %v1161_v43 = vrot.slane %v1160_v31, 4  ;;  %v1168_v46 = vshrl.u32 %v1060_v30, 16  ;;  %4756 = vmatprep.subr.bf16.mxu1 %v4996_v25  ;;  %v1152_v48 = vsel %vm5552_vm5, %v1147_v37, %v1151_v16  ;;  %v1171_v52 = vshll.u32 %v1060_v30, 16 }
  0xe5   : > { %v1138_v5 = vsel %vm5552_vm5, %v1133_v56, %v1137_v41  ;;  %v1062_v41 = vld [vmem:[#allocation2 + $0x78] sm:$0xf]  ;;  %v1623_v50 = vrot.slane %v1621_v40, 7  ;;  %v1177_v57 = vshll.u32 %v1061_v35, 16  ;;  %v1629_v15 = vshrl.u32 %v1530_v53, 16 }
  0xe6   : > { %v4207_v12 = vcombine.low %v1124_v49, %v1138_v5  ;;  %v1613_v49 = vor.u32 %v1611_v33, %v1610_v39  ;;  %v1166_v6 = vsel %vm5552_vm5, %v1161_v43, %v1165_v32  ;;  %v1170_v56 = vrot.slane %v1168_v46, 4  ;;  %v5614_v5 = vld [vmem:[#allocation2 + $0x88] sm:$0xf]  ;;  %v1067_v39 = vld [vmem:[#allocation2 + $0xbc] sm:$0x1] }
  0xe7   : > { %v1182_v58 = vshrl.u32 %v1062_v41, 16  ;;  %v4208_v1 = vcombine.low %v1152_v48, %v1166_v6  ;;  %v1626_v3 = vor.u32 %v1624_v44, %v1623_v50  ;;  %v1173_v4 = vrot.slane %v1171_v52, 5  ;;  %4757 = vmatpush3.bf16.msra.mxu1 %v4996_v25  ;;  %v1064_v33 = vld [vmem:[#allocation2 + $0xa8] sm:$0xf]  ;;  %v5629_v50 = vld [vmem:[#allocation2 + $0xb8] sm:$0xf] }
  0xe8   : > { %4675 = vmatmul.mubr.bf16.vlgmr.msra.gmra.mxu0 %v4207_v12  ;;  %v1614_v2 = vsel %vm5444_vm2, %v4226_v38, %v1613_v49  ;;  %v1179_v8 = vrot.slane %v1177_v57, 5  ;;  %v1185_v10 = vshll.u32 %v1062_v41, 16  ;;  %v1191_v12 = vshll.u32 %v1063_v45, 16  ;;  %4758 = vmatprep.subr.bf16.mxu1 %v4998_v42  ;;  %v1066_v38 = vld [vmem:[#allocation2 + $0xb8] sm:$0xf]  ;;  %v5003_v52 = vld [vmem:[%s5352_s10 + $0x110] sm:$0xff]  }
  0xe9   : > { %4723 = vmatpush3.bf16.msra.mxu0 %v5548_v63  ;;  %v4227_v63 = vrot.slane %v1616_v34, 11  ;;  %v1184_v9 = vrot.slane %v1182_v58, 4  ;;  %4678 = vmatprep.mubr.bf16.mxu0 %v4208_v1  ;;  %v1174_v14 = vor.u32 %v1173_v4, %v1170_v56  ;;  %v1634_v16 = vshrl.u32 %v5607_v54, 16  ;;  %v1065_v34 = vld [vmem:[#allocation2 + $0xac] sm:$0x1]  ;;  %v5004_v4 = vld [vmem:[%s5352_s10 + $0x150] sm:$0xff]  }
  0xea   : > { %4724 = vmatprep.subr.bf16.mxu0 %v4995_v13  ;;  %v1187_v18 = vrot.slane %v1185_v10, 5  ;;  %v1193_v19 = vrot.slane %v1191_v12, 5  ;;  %v1637_v20 = vshll.u32 %v5607_v54, 16  ;;  %v4228_v25 = vrot.slane %v1629_v15, 11  ;;  %v1534_v45 = vld [vmem:[#allocation2 + $0xb4] sm:$0x8] }
  0xeb   : > { %v1175_v24 = vrot.slane %v1174_v14, 4  ;;  %v1636_v26 = vrot.slane %v1634_v16, 7  ;;  %v1642_v28 = vshrl.u32 %v1532_v59, 16  ;;  %v1647_v31 = vshrl.u32 %v5614_v5, 16  ;;  %4759 = vmatpush3.bf16.msra.mxu1 %v4998_v42  ;;  %v1536_v58 = vld [vmem:[#allocation2 + $0xc4] sm:$0x8] }
  0xec   : > { %v1188_v30 = vor.u32 %v1187_v18, %v1184_v9  ;;  %v1650_v32 = vshll.u32 %v5614_v5, 16  ;;  %4760 = vmatprep.subr.bf16.mxu1 %v5000_v7  ;;  %v1196_v40 = vshrl.u32 %v1064_v33, 16  ;;  %v1205_v44 = vshll.u32 %v1065_v34, 16  ;;  %v1069_v18 = vld [vmem:[#allocation2 + $0xcc] sm:$0x1] }
  0xed   : > { %4725 = vmatpush3.bf16.msra.mxu0 %v4995_v13  ;;  %v1627_v13 = vsel %vm5444_vm2, %v4227_v63, %v1626_v3  ;;  %v1180_v35 = vsel %vm5552_vm5, %v1175_v24, %v1179_v8  ;;  %v4229_v37 = vrot.slane %v1642_v28, 11  ;;  %v1649_v43 = vrot.slane %v1647_v31, 7  ;;  %v5634_v3 = vld [vmem:[#allocation2 + $0xc8] sm:$0xf]  ;;  %v1071_v28 = vld [vmem:[#allocation2 + $0xdc] sm:$0x1] }
  0xee   : > { %4726 = vmatprep.subr.bf16.mxu0 %v4997_v36  ;;  %v4256_v17 = vcombine.low %v1614_v2, %v1627_v13  ;;  %v1189_v41 = vrot.slane %v1188_v30, 4  ;;  %v1199_v63 = vshll.u32 %v1064_v33, 16  ;;  %v1198_v46 = vrot.slane %v1196_v40, 4  ;;  %v5005_v13 = vld [vmem:[%s5352_s10 + $0x108] sm:$0xff]   ;;  %v1538_v33 = vld [vmem:[#allocation2 + $0xd4] sm:$0x8] }
  0xef   : > { %v1210_v48 = vshrl.u32 %v1066_v38, 16  ;;  %v1213_v49 = vshll.u32 %v1066_v38, 16  ;;  %v1652_v6 = vor.u32 %v1650_v32, %v1649_v43  ;;  %4761 = vmatpush3.bf16.msra.mxu1 %v5000_v7  ;;  %v1207_v57 = vrot.slane %v1205_v44, 5  ;;  %v1068_v7 = vld [vmem:[#allocation2 + $0xc8] sm:$0xf] }
  0xf0   : > { %4710 = vmatprep.mubr.bf16.mxu1 %v4256_v17  ;;  %v1194_v53 = vsel %vm5552_vm5, %v1189_v41, %v1193_v19  ;;  %v1201_v56 = vrot.slane %v1199_v63, 5  ;;  %v1219_v2 = vshll.u32 %v1067_v39, 16  ;;  %4762 = vmatprep.subr.bf16.mxu1 %v5002_v29  ;;  %v1655_v10 = vshrl.u32 %v1534_v45, 16  ;;  %v1070_v19 = vld [vmem:[#allocation2 + $0xd8] sm:$0xf]  ;;  %v5006_v43 = vld [vmem:[%s5352_s10 + $0x148] sm:$0xff]  }
  0xf1   : > { %4727 = vmatpush3.bf16.msra.mxu0 %v4997_v36  ;;  %v1639_v36 = vor.u32 %v1637_v20, %v1636_v26  ;;  %v4209_v59 = vcombine.low %v1180_v35, %v1194_v53  ;;  %v1215_v1 = vrot.slane %v1213_v49, 5  ;;  %v1653_v8 = vsel %vm5444_vm2, %v4229_v37, %v1652_v6  ;;  %v5646_v38 = vld [vmem:[#allocation2 + $0xd8] sm:$0xf] }
  0xf2   : > { %4728 = vmatprep.subr.bf16.mxu0 %v4999_v62  ;;  %v1202_v9 = vor.u32 %v1201_v56, %v1198_v46  ;;  %v1660_v12 = vshrl.u32 %v5629_v50, 16  ;;  %v1221_v16 = vrot.slane %v1219_v2, 5  ;;  %v1663_v17 = vshll.u32 %v5629_v50, 16  ;;  %v1540_v46 = vld [vmem:[#allocation2 + $0xe4] sm:$0x8] }
  0xf3   : > { %v1640_v42 = vsel %vm5444_vm2, %v4228_v25, %v1639_v36  ;;  %4679 = vmatmul.mubr.bf16.gmra.mxu0 %v4209_v59  ;;  %v4230_v24 = vrot.slane %v1655_v10, 11  ;;  %v1668_v26 = vshrl.u32 %v1536_v58, 16  ;;  %4763 = vmatpush3.bf16.msra.mxu1 %v5002_v29  ;;  %v1676_v31 = vshll.u32 %v5634_v3, 16  ;;  %v5007_v56 = vld [vmem:[%s5352_s10 + $0x100] sm:$0xff]   ;;  %v5662_v10 = vld [vmem:[%s5352_s10 + $0x1b8] sm:$0xff]  }
  0xf4   : > { %v4257_v14 = vcombine.low %v1640_v42, %v1653_v8  ;;  %v1203_v20 = vrot.slane %v1202_v9, 4  ;;  %v1662_v25 = vrot.slane %v1660_v12, 7  ;;  %v1224_v32 = vshrl.u32 %v1068_v7, 16  ;;  %4764 = vmatprep.subr.bf16.mxu1 %v5004_v4 }
  0xf5   : > { %4729 = vmatpush3.bf16.msra.mxu0 %v4999_v62  ;;  %v1212_v62 = vrot.slane %v1210_v48, 4  ;;  %v4231_v36 = vrot.slane %v1668_v26, 11  ;;  %v1227_v37 = vshll.u32 %v1068_v7, 16  ;;  %v1233_v41 = vshll.u32 %v1069_v18, 16  ;;  %v5653_v48 = vld [vmem:[#allocation2 + $0xe8] sm:$0xf] }
  0xf6   : > { %4730 = vmatprep.subr.bf16.mxu0 %v5001_v22  ;;  %4711 = vmatmul.mubr.bf16.gmra.mxu1 %v4257_v14  ;;  %v1208_v34 = vsel %vm5552_vm5, %v1203_v20, %v1207_v57  ;;  %v1665_v35 = vor.u32 %v1663_v17, %v1662_v25  ;;  %v1226_v40 = vrot.slane %v1224_v32, 4  ;;  %v1238_v42 = vshrl.u32 %v1070_v19, 16  ;;  %v5667_v20 = vld [vmem:[%s5352_s10 + $0x1f8] sm:$0xff]   ;;  %v1073_v26 = vld [vmem:[#allocation2 + $0xec] sm:$0x1] }
  0xf7   : > { %v1216_v15 = vor.u32 %v1215_v1, %v1212_v62  ;;  %v1229_v45 = vrot.slane %v1227_v37, 5  ;;  %4765 = vmatpush3.bf16.msra.mxu1 %v5004_v4  ;;  %v1241_v53 = vshll.u32 %v1070_v19, 16  ;;  %v1247_v6 = vshll.u32 %v1071_v28, 16  ;;  %v5008_v1 = vld [vmem:[%s5352_s10 + $0x140] sm:$0xff]   ;;  %v1072_v19 = vld [vmem:[#allocation2 + $0xe8] sm:$0xf] }
  0xf8   : > { %v1666_v44 = vsel %vm5444_vm2, %v4230_v24, %v1665_v35  ;;  %4766 = vmatprep.subr.bf16.mxu1 %v5006_v43  ;;  %v1240_v58 = vrot.slane %v1238_v42, 4  ;;  %v1681_v59 = vshrl.u32 %v1538_v33, 16  ;;  %v1686_v62 = vshrl.u32 %v5646_v38, 16  ;;  %v1074_v28 = vld [vmem:[#allocation2 + $0xf8] sm:$0xf] }
  0xf9   : > { %4731 = vmatpush3.bf16.msra.mxu0 %v5001_v22  ;;  %v1217_v30 = vrot.slane %v1216_v15, 4  ;;  %v1673_v22 = vshrl.u32 %v5634_v3, 16  ;;  %v1230_v57 = vor.u32 %v1229_v45, %v1226_v40  ;;  %v1243_v8 = vrot.slane %v1241_v53, 5  ;;  %v1075_v32 = vld [vmem:[#allocation2 + $0xfc] sm:$0x1] }
  0xfa   : > { %4732 = vmatprep.subr.bf16.mxu0 %v5003_v52  ;;  %v1249_v4 = vrot.slane %v1247_v6, 5  ;;  %v1689_v9 = vshll.u32 %v5646_v38, 16  ;;  %v4232_v14 = vrot.slane %v1681_v59, 11  ;;  %v1688_v15 = vrot.slane %v1686_v62, 7 }
  0xfb   : > { %v1222_v29 = vsel %vm5552_vm5, %v1217_v30, %v1221_v16  ;;  %v1675_v39 = vrot.slane %v1673_v22, 7  ;;  %v1231_v7 = vrot.slane %v1230_v57, 4  ;;  %4767 = vmatpush3.bf16.msra.mxu1 %v5006_v43  ;;  %v1244_v16 = vor.u32 %v1243_v8, %v1240_v58  ;;  %v1077_v8 = vld [vmem:[#allocation2 + $0x10c] sm:$0x1] }
  0xfc   : > { %v4210_v63 = vcombine.low %v1208_v34, %v1222_v29  ;;  %v1694_v17 = vshrl.u32 %v1540_v46, 16  ;;  %v1702_v18 = vshll.u32 %v5653_v48, 16  ;;  %4768 = vmatprep.subr.bf16.mxu1 %v5008_v1  ;;  %v1691_v25 = vor.u32 %v1689_v9, %v1688_v15  ;;  %v1542_v29 = vld [vmem:[#allocation2 + $0xf4] sm:$0x8] }
  0xfd   : > { %4733 = vmatpush3.bf16.msra.mxu0 %v5003_v52  ;;  %v1678_v49 = vor.u32 %v1676_v31, %v1675_v39  ;;  %v1235_v52 = vrot.slane %v1233_v41, 5  ;;  %v1245_v30 = vrot.slane %v1244_v16, 4  ;;  %v1252_v33 = vshrl.u32 %v1072_v19, 16 }
  0xfe   : > { %4734 = vmatprep.subr.bf16.mxu0 %v5005_v13  ;;  %4682 = vmatprep.mubr.bf16.mxu0 %v4210_v63  ;;  %v4233_v22 = vrot.slane %v1694_v17, 11  ;;  %v1692_v34 = vsel %vm5444_vm2, %v4232_v14, %v1691_v25  ;;  %v1255_v35 = vshll.u32 %v1072_v19, 16  ;;  %v1266_v37 = vshrl.u32 %v1074_v28, 16  ;;  %v5676_v63 = vld [vmem:[#allocation2 + $0xf8] sm:$0xf] }
  0xff   : > { %v1679_v2 = vsel %vm5444_vm2, %v4231_v36, %v1678_v49  ;;  %v1236_v24 = vsel %vm5552_vm5, %v1231_v7, %v1235_v52  ;;  %v1261_v36 = vshll.u32 %v1073_v26, 16  ;;  %4769 = vmatpush3.bf16.msra.mxu1 %v5008_v1  ;;  %v1250_v39 = vsel %vm5552_vm5, %v1245_v30, %v1249_v4  ;;  %v1544_v49 = vld [vmem:[#allocation2 + $0x104] sm:$0x8]  ;;  %v1078_v14 = vld [vmem:[#allocation2 + $0x118] sm:$0xf] }
 0x100   : > { %v4258_v12 = vcombine.low %v1666_v44, %v1679_v2  ;;  %v1254_v41 = vrot.slane %v1252_v33, 4  ;;  %v1269_v43 = vshll.u32 %v1074_v28, 16  ;;  %4818 = vmatprep.subr.bf16.mxu1 %v5667_v20  ;;  %v4211_v44 = vcombine.low %v1236_v24, %v1250_v39  ;;  %v1076_v2 = vld [vmem:[#allocation2 + $0x108] sm:$0xf]  ;;  %v1546_v28 = vld [vmem:[#allocation2 + $0x114] sm:$0x8] }
 0x101   : > { %4735 = vmatpush3.bf16.msra.mxu0 %v5005_v13  ;;  %v1699_v13 = vshrl.u32 %v5653_v48, 16  ;;  %v1257_v45 = vrot.slane %v1255_v35, 5  ;;  %v1263_v42 = vrot.slane %v1261_v36, 5  ;;  %v1268_v46 = vrot.slane %v1266_v37, 4  ;;  %v5689_v33 = vld [vmem:[#allocation2 + $0x118] sm:$0xf] }
 0x102   : > { %4736 = vmatprep.subr.bf16.mxu0 %v5007_v56  ;;  %4714 = vmatprep.mubr.bf16.mxu1 %v4258_v12  ;;  %v1271_v53 = vrot.slane %v1269_v43, 5  ;;  %v1275_v6 = vshll.u32 %v1075_v32, 16  ;;  %v1707_v57 = vshrl.u32 %v1542_v29, 16  ;;  %v1712_v62 = vshrl.u32 %v5676_v63, 16  ;;  %v1548_v29 = vld [vmem:[#allocation2 + $0x124] sm:$0x8] }
 0x103   : > { %v1701_v31 = vrot.slane %v1699_v13, 7  ;;  %4683 = vmatmul.mubr.bf16.gmra.mxu0 %v4211_v44  ;;  %v1258_v59 = vor.u32 %v1257_v45, %v1254_v41  ;;  %v1715_v1 = vshll.u32 %v5676_v63, 16  ;;  %v1720_v7 = vshrl.u32 %v1544_v49, 16  ;;  %v5693_v39 = vld [vmem:[#allocation2 + $0x128] sm:$0xf] }
 0x104   : > { %v1272_v4 = vor.u32 %v1271_v53, %v1268_v46  ;;  %v1277_v9 = vrot.slane %v1275_v6, 5  ;;  %v4234_v12 = vrot.slane %v1707_v57, 11  ;;  %v1714_v16 = vrot.slane %v1712_v62, 7 }
 0x105   : > { %4737 = vmatpush3.bf16.msra.mxu0 %v5007_v56  ;;  %v1704_v40 = vor.u32 %v1702_v18, %v1701_v31  ;;  %v5681_v56 = vld [vmem:[#allocation2 + $0x108] sm:$0xf]  ;;  %v1259_v15 = vrot.slane %v1258_v59, 4  ;;  %v1079_v18 = vld [vmem:[#allocation2 + $0x11c] sm:$0x1]  ;;  %v4235_v24 = vrot.slane %v1720_v7, 11 }
 0x106   : > { %4786 = vmatprep.subr.bf16.mxu0 %v5662_v10  ;;  %v1725_v17 = vshrl.u32 %v5681_v56, 16  ;;  %v1728_v13 = vshll.u32 %v5681_v56, 16  ;;  %v1273_v19 = vrot.slane %v1272_v4, 4  ;;  %v1280_v25 = vshrl.u32 %v1076_v2, 16 }
 0x107   : > { %v1705_v52 = vsel %vm5444_vm2, %v4233_v22, %v1704_v40  ;;  %v1283_v26 = vshll.u32 %v1076_v2, 16  ;;  %v1264_v30 = vsel %vm5552_vm5, %v1259_v15, %v1263_v42  ;;  %v1717_v22 = vor.u32 %v1715_v1, %v1714_v16  ;;  %v2195_v15 = vld [vmem:[#allocation2 + $0x1c] sm:$0x1] }
 0x108   : > { %v4259_v58 = vcombine.low %v1692_v34, %v1705_v52  ;;  %v1727_v31 = vrot.slane %v1725_v17, 7  ;;  %v1289_v32 = vshll.u32 %v1077_v8, 16  ;;  %v1278_v34 = vsel %vm5552_vm5, %v1273_v19, %v1277_v9  ;;  %v2196_v19 = vld [vmem:[#allocation2 + $0x28] sm:$0xf] }
 0x109   : > { %v1282_v35 = vrot.slane %v1280_v25, 4  ;;  %v1285_v36 = vrot.slane %v1283_v26, 5  ;;  %v1294_v37 = vshrl.u32 %v1078_v14, 16  ;;  %v4212_v40 = vcombine.low %v1264_v30, %v1278_v34  ;;  %v2197_v25 = vld [vmem:[#allocation2 + $0x2c] sm:$0x1] }
 0x10a   : > { %4715 = vmatmul.mubr.bf16.gmra.mxu1 %v4259_v58  ;;  %v1718_v41 = vsel %vm5444_vm2, %v4234_v12, %v1717_v22  ;;  %v1730_v43 = vor.u32 %v1728_v13, %v1727_v31  ;;  %v1291_v44 = vrot.slane %v1289_v32, 5  ;;  %v1297_v46 = vshll.u32 %v1078_v14, 16  ;;  %v2194_v14 = vld [vmem:[#allocation2 + $0x18] sm:$0xf] }
 0x10b   : > { %v1286_v45 = vor.u32 %v1285_v36, %v1282_v35  ;;  %v1296_v42 = vrot.slane %v1294_v37, 4  ;;  %v1303_v49 = vshll.u32 %v1079_v18, 16  ;;  %4686 = vmatprep.mubr.bf16.mxu0 %v4212_v40  ;;  %v1733_v53 = vshrl.u32 %v1546_v28, 16  ;;  %v2198_v35 = vld [vmem:[#allocation2 + $0x38] sm:$0xf] }
 0x10c   : > { %v1731_v52 = vsel %vm5444_vm2, %v4235_v24, %v1730_v43  ;;  %v1738_v6 = vshrl.u32 %v5689_v33, 16  ;;  %v1741_v57 = vshll.u32 %v5689_v33, 16  ;;  %v1299_v62 = vrot.slane %v1297_v46, 5  ;;  %v2199_v36 = vld [vmem:[#allocation2 + $0x3c] sm:$0x1] }
 0x10d   : > { %v4260_v58 = vcombine.low %v1718_v41, %v1731_v52  ;;  %v1287_v59 = vrot.slane %v1286_v45, 4  ;;  %v4236_v1 = vrot.slane %v1733_v53, 11  ;;  %v1746_v8 = vshrl.u32 %v1548_v29, 16  ;;  %v2200_v43 = vld [vmem:[#allocation2 + $0x48] sm:$0xf] }
 0x10e   : > { %v1740_v2 = vrot.slane %v1738_v6, 7  ;;  %v1751_v4 = vshrl.u32 %v5693_v39, 16  ;;  %v1300_v9 = vor.u32 %v1299_v62, %v1296_v42  ;;  %v1305_v12 = vrot.slane %v1303_v49, 5  ;;  %v2201_v49 = vld [vmem:[#allocation2 + $0x4c] sm:$0x1] }
 0x10f   : > { %4718 = vmatprep.mubr.bf16.mxu1 %v4260_v58  ;;  %v1754_v7 = vshll.u32 %v5693_v39, 16  ;;  %v1292_v16 = vsel %vm5552_vm5, %v1287_v59, %v1291_v44  ;;  %v4237_v13 = vrot.slane %v1746_v8, 11  ;;  %v2227_v26 = vshrl.u32 %v2194_v14, 16 }
 0x110   : > { %v1743_v17 = vor.u32 %v1741_v57, %v1740_v2  ;;  %v1753_v18 = vrot.slane %v1751_v4, 7  ;;  %v1301_v24 = vrot.slane %v1300_v9, 4  ;;  %v2230_v28 = vshll.u32 %v2194_v14, 16 }
 0x111   : > { %v2236_v30 = vshll.u32 %v2195_v15, 16  ;;  %v2241_v32 = vshrl.u32 %v2196_v19, 16  ;;  %v2244_v34 = vshll.u32 %v2196_v19, 16  ;;  %v2229_v29 = vrot.slane %v2227_v26, 4  ;;  %v2205_v26 = vld [vmem:[#allocation2 + $0x6c] sm:$0x1] }
 0x112   : > { %v1744_v22 = vsel %vm5444_vm2, %v4236_v1, %v1743_v17  ;;  %v1756_v31 = vor.u32 %v1754_v7, %v1753_v18  ;;  %v1306_v37 = vsel %vm5552_vm5, %v1301_v24, %v1305_v12  ;;  %v2232_v40 = vrot.slane %v2230_v28, 5  ;;  %v2202_v18 = vld [vmem:[#allocation2 + $0x58] sm:$0xf]  ;;  %v2203_v24 = vld [vmem:[#allocation2 + $0x5c] sm:$0x1] }
 0x113   : > { %v2238_v41 = vrot.slane %v2236_v30, 5  ;;  %v4213_v44 = vcombine.low %v1292_v16, %v1306_v37  ;;  %v2243_v42 = vrot.slane %v2241_v32, 4  ;;  %v2246_v46 = vrot.slane %v2244_v34, 5  ;;  %v2206_v32 = vld [vmem:[#allocation2 + $0x78] sm:$0xf] }
 0x114   : > { %v1757_v45 = vsel %vm5444_vm2, %v4237_v13, %v1756_v31  ;;  %v2233_v53 = vor.u32 %v2232_v40, %v2229_v29  ;;  %v2250_v6 = vshll.u32 %v2197_v25, 16  ;;  %v2255_v57 = vshrl.u32 %v2198_v35, 16  ;;  %v2204_v25 = vld [vmem:[#allocation2 + $0x68] sm:$0xf]  ;;  %v2207_v34 = vld [vmem:[#allocation2 + $0x7c] sm:$0x1] }
 0x115   : > { %v4261_v52 = vcombine.low %v1744_v22, %v1757_v45  ;;  %4687 = vmatmul.mubr.bf16.gmra.mxu0 %v4213_v44  ;;  %v2247_v58 = vor.u32 %v2246_v46, %v2243_v42  ;;  %v2258_v59 = vshll.u32 %v2198_v35, 16  ;;  %v2264_v62 = vshll.u32 %v2199_v36, 16  ;;  %v2208_v40 = vld [vmem:[#allocation2 + $0x88] sm:$0xf]  ;;  %v2209_v44 = vld [vmem:[#allocation2 + $0x8c] sm:$0x1] }
 0x116   : > { %v2269_v1 = vshrl.u32 %v2200_v43, 16  ;;  %4738 = vmatprep.mubr.bf16.mxu0 %v4286_v55  ;;  %v2234_v2 = vrot.slane %v2233_v53, 4  ;;  %v2252_v8 = vrot.slane %v2250_v6, 5  ;;  %v2257_v4 = vrot.slane %v2255_v57, 4  ;;  %v5014_v42 = vld [vmem:[%s5352_s10 + $0x1f0] sm:$0xff]  }
 0x117   : > { %4719 = vmatmul.mubr.bf16.gmra.mxu1 %v4261_v52  ;;  %v2272_v9 = vshll.u32 %v2200_v43, 16  ;;  %v2248_v12 = vrot.slane %v2247_v58, 4  ;;  %v2260_v7 = vrot.slane %v2258_v59, 5  ;;  %v2266_v14 = vrot.slane %v2264_v62, 5  ;;  %v5017_v59 = vld [vmem:[%s5352_s10 + $0x1a8] sm:$0xff]  }
 0x118   : > { %v2271_v15 = vrot.slane %v2269_v1, 4  ;;  %v2239_v16 = vsel %vm5552_vm5, %v2234_v2, %v2238_v41  ;;  %v2278_v13 = vshll.u32 %v2201_v49, 16  ;;  %v4288_v55 = vcombine.low %v5589_v11, %v5594_v23 }
 0x119   : > { %v2274_v17 = vrot.slane %v2272_v9, 5  ;;  %v2253_v19 = vsel %vm5552_vm5, %v2248_v12, %v2252_v8  ;;  %v2261_v47 = vor.u32 %v2260_v7, %v2257_v4  ;;  %v2283_v31 = vshrl.u32 %v2202_v18, 16 }
 0x11a   : > { %v4318_v28 = vcombine.low %v2239_v16, %v2253_v19  ;;  %v2280_v22 = vrot.slane %v2278_v13, 5  ;;  %v2286_v36 = vshll.u32 %v2202_v18, 16  ;;  %v2292_v37 = vshll.u32 %v2203_v24, 16  ;;  %v5019_v13 = vld [vmem:[%s5352_s10 + $0x1a0] sm:$0xff]   ;;  %v2211_v24 = vld [vmem:[#allocation2 + $0xbc] sm:$0x1] }
 0x11b   : > { %v2275_v30 = vor.u32 %v2274_v17, %v2271_v15  ;;  %v2262_v35 = vrot.slane %v2261_v47, 4  ;;  %v2297_v29 = vshrl.u32 %v2204_v25, 16  ;;  %v2285_v43 = vrot.slane %v2283_v31, 4 }
 0x11c   : > { %4770 = vmatprep.mubr.bf16.mxu1 %v4318_v28  ;;  %v2300_v11 = vshll.u32 %v2204_v25, 16  ;;  %v2306_v23 = vshll.u32 %v2205_v26, 16  ;;  %v2288_v46 = vrot.slane %v2286_v36, 5  ;;  %v2294_v49 = vrot.slane %v2292_v37, 5  ;;  %v2212_v25 = vld [vmem:[#allocation2 + $0xc8] sm:$0xf] }
 0x11d   : > { %v2276_v41 = vrot.slane %v2275_v30, 4  ;;  %4739 = vmatmul.mubr.bf16.vlgmr.msra.gmra.mxu0 %v4287_v60  ;;  %v2267_v45 = vsel %vm5552_vm5, %v2262_v35, %v2266_v14  ;;  %v2299_v52 = vrot.slane %v2297_v29, 4  ;;  %v2311_v58 = vshrl.u32 %v2206_v32, 16  ;;  %v5018_v14 = vld [vmem:[%s5352_s10 + $0x1e8] sm:$0xff]   ;;  %v2215_v29 = vld [vmem:[#allocation2 + $0xdc] sm:$0x1] }
 0x11e   : > { %4787 = vmatpush3.bf16.msra.mxu0 %v5662_v10  ;;  %4742 = vmatprep.mubr.bf16.mxu0 %v4288_v55  ;;  %v2302_v6 = vrot.slane %v2300_v11, 5  ;;  %v2308_v57 = vrot.slane %v2306_v23, 5  ;;  %v2289_v27 = vor.u32 %v2288_v46, %v2285_v43  ;;  %v2314_v60 = vshll.u32 %v2206_v32, 16  ;;  %v2213_v26 = vld [vmem:[#allocation2 + $0xcc] sm:$0x1] }
 0x11f   : > { %v2281_v53 = vsel %vm5552_vm5, %v2276_v41, %v2280_v22  ;;  %4788 = vmatprep.subr.bf16.mxu0 %v5013_v51  ;;  %v2320_v62 = vshll.u32 %v2207_v34, 16  ;;  %v2313_v2 = vrot.slane %v2311_v58, 4  ;;  %v2325_v8 = vshrl.u32 %v2208_v40, 16  ;;  %v2214_v32 = vld [vmem:[#allocation2 + $0xd8] sm:$0xf] }
 0x120   : > { %v4319_v21 = vcombine.low %v2267_v45, %v2281_v53  ;;  %v2303_v1 = vor.u32 %v2302_v6, %v2299_v52  ;;  %v2328_v4 = vshll.u32 %v2208_v40, 16  ;;  %v2290_v9 = vrot.slane %v2289_v27, 4  ;;  %v2216_v11 = vld [vmem:[#allocation2 + $0xe8] sm:$0xf]  ;;  %v2217_v46 = vld [vmem:[#allocation2 + $0xec] sm:$0x1] }
 0x121   : > { %v4289_v10 = vcombine.low %v5607_v54, %v5614_v5  ;;  %v2316_v12 = vrot.slane %v2314_v60, 5  ;;  %v2334_v7 = vshll.u32 %v2209_v44, 16  ;;  %v2327_v16 = vrot.slane %v2325_v8, 4  ;;  %v2210_v5 = vld [vmem:[#allocation2 + $0xb8] sm:$0xf] }
 0x122   : > { %4771 = vmatmul.mubr.bf16.vlgmr.msra.gmra.mxu1 %v4319_v21  ;;  %4789 = vmatpush3.bf16.msra.mxu0 %v5013_v51  ;;  %v2304_v15 = vrot.slane %v2303_v1, 4  ;;  %v2330_v17 = vrot.slane %v2328_v4, 5  ;;  %v4290_v18 = vcombine.low %v5629_v50, %v5634_v3  ;;  %v2295_v19 = vsel %vm5552_vm5, %v2290_v9, %v2294_v49  ;;  %v5023_v49 = vld [vmem:[%s5352_s10 + $0x198] sm:$0xff]  }
 0x123   : > { %4819 = vmatpush3.bf16.msra.mxu1 %v5667_v20  ;;  %v2317_v47 = vor.u32 %v2316_v12, %v2313_v2  ;;  %v2322_v55 = vrot.slane %v2320_v62, 5  ;;  %v2336_v54 = vrot.slane %v2334_v7, 5  ;;  %4790 = vmatprep.subr.bf16.mxu0 %v5017_v59  ;;  %v4291_v28 = vcombine.low %v5646_v38, %v5653_v48  ;;  %v5020_v48 = vld [vmem:[%s5352_s10 + $0x1e0] sm:$0xff]   ;;  %v5024_v58 = vld [vmem:[%s5352_s10 + $0x1d8] sm:$0xff]   ;;  %v5025_v62 = vld [vmem:[%s5352_s10 + $0x190] sm:$0xff]  }
 0x124   : > { %4820 = vmatprep.subr.bf16.mxu1 %v5014_v42  ;;  %v2309_v20 = vsel %vm5552_vm5, %v2304_v15, %v2308_v57  ;;  %v2331_v51 = vor.u32 %v2330_v17, %v2327_v16  ;;  %v4292_v50 = vcombine.low %v5676_v63, %v5681_v56  ;;  %v2339_v22 = vshrl.u32 %v2210_v5, 16  ;;  %v5026_v17 = vld [vmem:[%s5352_s10 + $0x1d0] sm:$0xff]  }
 0x125   : > { %v4320_v3 = vcombine.low %v2295_v19, %v2309_v20  ;;  %4743 = vmatmul.mubr.bf16.gmra.mxu0 %v4289_v10  ;;  %v2318_v30 = vrot.slane %v2317_v47, 4  ;;  %v2342_v31 = vshll.u32 %v2210_v5, 16  ;;  %v2348_v35 = vshll.u32 %v2211_v24, 16  ;;  %v2218_v47 = vld [vmem:[#allocation2 + $0xf8] sm:$0xf] }
 0x126   : > { %v2332_v34 = vrot.slane %v2331_v51, 4  ;;  %4791 = vmatpush3.bf16.msra.mxu0 %v5017_v59  ;;  %v2353_v36 = vshrl.u32 %v2212_v25, 16  ;;  %v2356_v37 = vshll.u32 %v2212_v25, 16  ;;  %v2341_v40 = vrot.slane %v2339_v22, 4  ;;  %4746 = vmatprep.mubr.bf16.mxu0 %v4290_v18  ;;  %v2220_v51 = vld [vmem:[#allocation2 + $0x108] sm:$0xf] }
 0x127   : > { %4821 = vmatpush3.bf16.msra.mxu1 %v5014_v42  ;;  %4774 = vmatprep.mubr.bf16.mxu1 %v4320_v3  ;;  %v2323_v38 = vsel %vm5552_vm5, %v2318_v30, %v2322_v55  ;;  %v2344_v41 = vrot.slane %v2342_v31, 5  ;;  %v2362_v43 = vshll.u32 %v2213_v26, 16  ;;  %v2350_v44 = vrot.slane %v2348_v35, 5  ;;  %v2219_v55 = vld [vmem:[#allocation2 + $0xfc] sm:$0x1] }
 0x128   : > { %4822 = vmatprep.subr.bf16.mxu1 %v5018_v14  ;;  %v2337_v23 = vsel %vm5552_vm5, %v2332_v34, %v2336_v54  ;;  %4792 = vmatprep.subr.bf16.mxu0 %v5019_v13  ;;  %v2355_v45 = vrot.slane %v2353_v36, 4  ;;  %v2358_v42 = vrot.slane %v2356_v37, 5  ;;  %v2367_v57 = vshrl.u32 %v2214_v32, 16  ;;  %v2221_v24 = vld [vmem:[#allocation2 + $0x10c] sm:$0x1] }
 0x129   : > { %v4321_v52 = vcombine.low %v2323_v38, %v2337_v23  ;;  %v2345_v53 = vor.u32 %v2344_v41, %v2341_v40  ;;  %v2364_v6 = vrot.slane %v2362_v43, 5  ;;  %v2370_v21 = vshll.u32 %v2214_v32, 16  ;;  %v2222_v31 = vld [vmem:[#allocation2 + $0x118] sm:$0xf]  ;;  %v2223_v35 = vld [vmem:[#allocation2 + $0x11c] sm:$0x1] }
 0x12a   : > { %4793 = vmatpush3.bf16.msra.mxu0 %v5019_v13  ;;  %v2359_v59 = vor.u32 %v2358_v42, %v2355_v45  ;;  %v2376_v27 = vshll.u32 %v2215_v29, 16  ;;  %v2381_v60 = vshrl.u32 %v2216_v11, 16  ;;  %v2369_v2 = vrot.slane %v2367_v57, 4  ;;  %v5029_v13 = vld [vmem:[%s5352_s10 + $0x188] sm:$0xff]   ;;  %v5031_v38 = vld [vmem:[%s5352_s10 + $0x180] sm:$0xff]  }
 0x12b   : > { %4823 = vmatpush3.bf16.msra.mxu1 %v5018_v14  ;;  %v2346_v1 = vrot.slane %v2345_v53, 4  ;;  %v2384_v8 = vshll.u32 %v2216_v11, 16  ;;  %v2390_v4 = vshll.u32 %v2217_v46, 16  ;;  %v2372_v10 = vrot.slane %v2370_v21, 5  ;;  %4794 = vmatprep.subr.bf16.mxu0 %v5023_v49  ;;  %v5030_v29 = vld [vmem:[%s5352_s10 + $0x1c8] sm:$0xff]   ;;  %v5773_v21 = vld [vmem:[%s5352_s10 + $0x238] sm:$0xff]  }
 0x12c   : > { %4775 = vmatmul.mubr.bf16.gmra.mxu1 %v4321_v52  ;;  %4824 = vmatprep.subr.bf16.mxu1 %v5020_v48  ;;  %v2360_v9 = vrot.slane %v2359_v59, 4  ;;  %v2378_v12 = vrot.slane %v2376_v27, 5  ;;  %v2383_v7 = vrot.slane %v2381_v60, 4  ;;  %v4293_v54 = vcombine.low %v5689_v33, %v5693_v39  ;;  %v2225_v43 = vld [vmem:[#allocation2 + $0x12c] sm:$0x1]  ;;  %v5032_v59 = vld [vmem:[%s5352_s10 + $0x1c0] sm:$0xff]  }
 0x12d   : > { %v2351_v14 = vsel %vm5552_vm5, %v2346_v1, %v2350_v44  ;;  %4747 = vmatmul.mubr.bf16.gmra.mxu0 %v4291_v28  ;;  %v2386_v15 = vrot.slane %v2384_v8, 5  ;;  %v2392_v16 = vrot.slane %v2390_v4, 5  ;;  %v2373_v19 = vor.u32 %v2372_v10, %v2369_v2 }
 0x12e   : > { %v2365_v18 = vsel %vm5552_vm5, %v2360_v9, %v2364_v6  ;;  %4795 = vmatpush3.bf16.msra.mxu0 %v5023_v49  ;;  %v2395_v25 = vshrl.u32 %v2218_v47, 16  ;;  %v2398_v26 = vshll.u32 %v2218_v47, 16  ;;  %4750 = vmatprep.mubr.bf16.mxu0 %v4292_v50  ;;  %v2404_v3 = vshll.u32 %v2219_v55, 16  ;;  %v2224_v50 = vld [vmem:[#allocation2 + $0x128] sm:$0xf] }
 0x12f   : > { %4825 = vmatpush3.bf16.msra.mxu1 %v5020_v48  ;;  %v4322_v5 = vcombine.low %v2351_v14, %v2365_v18  ;;  %v2387_v20 = vor.u32 %v2386_v15, %v2383_v7  ;;  %4796 = vmatprep.subr.bf16.mxu0 %v5025_v62  ;;  %v2374_v28 = vrot.slane %v2373_v19, 4  ;;  %v2409_v30 = vshrl.u32 %v2220_v51, 16  ;;  %v2661_v9 = vld [vmem:[#allocation2 + $0x24] sm:$0x8]  ;;  %v2662_v7 = vld [vmem:[#allocation2 + $0x28] sm:$0xf] }
 0x130   : > { %4826 = vmatprep.subr.bf16.mxu1 %v5024_v58  ;;  %v2412_v22 = vshll.u32 %v2220_v51, 16  ;;  %v2397_v39 = vrot.slane %v2395_v25, 4  ;;  %v2400_v32 = vrot.slane %v2398_v26, 5  ;;  %v2418_v34 = vshll.u32 %v2221_v24, 16  ;;  %v2663_v14 = vld [vmem:[#allocation2 + $0x34] sm:$0x8] }
 0x131   : > { %4778 = vmatprep.mubr.bf16.mxu1 %v4322_v5  ;;  %v2388_v33 = vrot.slane %v2387_v20, 4  ;;  %v2379_v36 = vsel %vm5552_vm5, %v2374_v28, %v2378_v12  ;;  %v2406_v37 = vrot.slane %v2404_v3, 5  ;;  %v2411_v63 = vrot.slane %v2409_v30, 4  ;;  %v2664_v15 = vld [vmem:[#allocation2 + $0x38] sm:$0xf] }
 0x132   : > { %4797 = vmatpush3.bf16.msra.mxu0 %v5025_v62  ;;  %v2414_v56 = vrot.slane %v2412_v22, 5  ;;  %v2401_v40 = vor.u32 %v2400_v32, %v2397_v39  ;;  %v2420_v41 = vrot.slane %v2418_v34, 5  ;;  %v2423_v11 = vshrl.u32 %v2222_v31, 16  ;;  %v2665_v19 = vld [vmem:[#allocation2 + $0x44] sm:$0x8] }
 0x133   : > { %4827 = vmatpush3.bf16.msra.mxu1 %v5024_v58  ;;  %v2393_v48 = vsel %vm5552_vm5, %v2388_v33, %v2392_v16  ;;  %4798 = vmatprep.subr.bf16.mxu0 %v5029_v13  ;;  %v2426_v45 = vshll.u32 %v2222_v31, 16  ;;  %v2432_v42 = vshll.u32 %v2223_v35, 16  ;;  %v2437_v52 = vshrl.u32 %v2224_v50, 16  ;;  %v5779_v20 = vld [vmem:[#allocation2 + $0x48] sm:$0xf] }
 0x134   : > { %4828 = vmatprep.subr.bf16.mxu1 %v5026_v17  ;;  %v4323_v23 = vcombine.low %v2379_v36, %v2393_v48  ;;  %v2415_v44 = vor.u32 %v2414_v56, %v2411_v63  ;;  %v2402_v46 = vrot.slane %v2401_v40, 4  ;;  %v2425_v49 = vrot.slane %v2423_v11, 4  ;;  %v2667_v28 = vld [vmem:[#allocation2 + $0x54] sm:$0x8]  ;;  %v2668_v3 = vld [vmem:[#allocation2 + $0x58] sm:$0xf] }
 0x135   : > { %4751 = vmatmul.mubr.bf16.gmra.mxu0 %v4293_v54  ;;  %v2440_v53 = vshll.u32 %v2224_v50, 16  ;;  %v2428_v57 = vrot.slane %v2426_v45, 5  ;;  %v2446_v58 = vshll.u32 %v2225_v43, 16  ;;  %v2439_v60 = vrot.slane %v2437_v52, 4  ;;  %v2669_v48 = vld [vmem:[#allocation2 + $0x64] sm:$0x8] }
 0x136   : > { %4779 = vmatmul.mubr.bf16.gmra.mxu1 %v4323_v23  ;;  %v2416_v6 = vrot.slane %v2415_v44, 4  ;;  %4799 = vmatpush3.bf16.msra.mxu0 %v5029_v13  ;;  %v2407_v27 = vsel %vm5552_vm5, %v2402_v46, %v2406_v37  ;;  %v2434_v8 = vrot.slane %v2432_v42, 5  ;;  %v2699_v13 = vshrl.u32 %v2662_v7, 16  ;;  %v5791_v40 = vld [vmem:[#allocation2 + $0x68] sm:$0xf] }
 0x137   : > { %4829 = vmatpush3.bf16.msra.mxu1 %v5026_v17  ;;  %v2442_v62 = vrot.slane %v2440_v53, 5  ;;  %4800 = vmatprep.subr.bf16.mxu0 %v5031_v38  ;;  %v2429_v2 = vor.u32 %v2428_v57, %v2425_v49  ;;  %v2448_v4 = vrot.slane %v2446_v58, 5  ;;  %v2694_v17 = vshrl.u32 %v2661_v9, 16  ;;  %v2671_v44 = vld [vmem:[#allocation2 + $0x74] sm:$0x8] }
 0x138   : > { %v2421_v1 = vsel %vm5552_vm5, %v2416_v6, %v2420_v41  ;;  %4830 = vmatprep.subr.bf16.mxu1 %v5030_v29  ;;  %v2702_v18 = vshll.u32 %v2662_v7, 16  ;;  %v2707_v55 = vshrl.u32 %v2663_v14, 16  ;;  %v2712_v54 = vshrl.u32 %v2664_v15, 16  ;;  %v2672_v45 = vld [vmem:[#allocation2 + $0x78] sm:$0xf] }
 0x139   : > { %v4324_v10 = vcombine.low %v2407_v27, %v2421_v1  ;;  %v2443_v12 = vor.u32 %v2442_v62, %v2439_v60  ;;  %v2430_v16 = vrot.slane %v2429_v2, 4  ;;  %v2715_v5 = vshll.u32 %v2664_v15, 16  ;;  %v2673_v53 = vld [vmem:[#allocation2 + $0x84] sm:$0x8]  ;;  %v5797_v6 = vld [vmem:[#allocation2 + $0x88] sm:$0xf] }
 0x13a   : > { %4801 = vmatpush3.bf16.msra.mxu0 %v5031_v38  ;;  %v4334_v24 = vrot.slane %v2694_v17, 11  ;;  %v2701_v25 = vrot.slane %v2699_v13, 7  ;;  %v4398_v26 = vcombine.low %v2662_v7, %v2664_v15  ;;  %v4335_v22 = vrot.slane %v2707_v55, 11  ;;  %v2675_v60 = vld [vmem:[#allocation2 + $0x94] sm:$0x8] }
 0x13b   : > { %4782 = vmatprep.mubr.bf16.mxu1 %v4324_v10  ;;  %v2444_v47 = vrot.slane %v2443_v12, 4  ;;  %4831 = vmatpush3.bf16.msra.mxu1 %v5030_v29  ;;  %v2435_v51 = vsel %vm5552_vm5, %v2430_v16, %v2434_v8  ;;  %v2714_v31 = vrot.slane %v2712_v54, 7  ;;  %v2720_v33 = vshrl.u32 %v2665_v19, 16  ;;  %v5036_v1 = vld [vmem:[%s5352_s10 + $0x230] sm:$0xff]   ;;  %v5803_v9 = vld [vmem:[#allocation2 + $0x98] sm:$0xf] }
 0x13c   : > { %4832 = vmatprep.subr.bf16.mxu1 %v5032_v59  ;;  %4850 = vmatprep.subr.bf16.mxu0 %v5773_v21  ;;  %v2704_v32 = vor.u32 %v2702_v18, %v2701_v25  ;;  %v2725_v34 = vshrl.u32 %v5779_v20, 16  ;;  %v2728_v35 = vshll.u32 %v5779_v20, 16  ;;  %v2733_v63 = vshrl.u32 %v2667_v28, 16  ;;  %v2677_v54 = vld [vmem:[#allocation2 + $0xc4] sm:$0x8]  ;;  %v5039_v25 = vld [vmem:[%s5352_s10 + $0x228] sm:$0xff]  }
 0x13d   : > { %v2449_v30 = vsel %vm5552_vm5, %v2444_v47, %v2448_v4  ;;  %v2717_v36 = vor.u32 %v2715_v5, %v2714_v31  ;;  %v4336_v37 = vrot.slane %v2720_v33, 11  ;;  %v2738_v56 = vshrl.u32 %v2668_v3, 16  ;;  %v2679_v31 = vld [vmem:[#allocation2 + $0xd4] sm:$0x8]  ;;  %v5823_v33 = vld [vmem:[#allocation2 + $0xd8] sm:$0xf] }
 0x13e   : > { %v4325_v39 = vcombine.low %v2435_v51, %v2449_v30  ;;  %v2705_v50 = vsel %vm5444_vm2, %v4334_v24, %v2704_v32  ;;  %v2727_v29 = vrot.slane %v2725_v34, 7  ;;  %v2741_v38 = vshll.u32 %v2668_v3, 16 }
 0x13f   : > { %4833 = vmatpush3.bf16.msra.mxu1 %v5032_v59  ;;  %v2718_v41 = vsel %vm5444_vm2, %v4335_v22, %v2717_v36  ;;  %v4337_v43 = vrot.slane %v2733_v63, 11  ;;  %v2740_v11 = vrot.slane %v2738_v56, 7  ;;  %v4399_v23 = vcombine.low %v5779_v20, %v2668_v3  ;;  %v5826_v36 = vld [vmem:[#allocation2 + $0xe8] sm:$0xf] }
 0x140   : > { %4783 = vmatmul.mubr.bf16.gmra.mxu1 %v4325_v39  ;;  %4882 = vmatprep.subr.bf16.mxu1 %v5773_v21  ;;  %v4366_v42 = vcombine.low %v2705_v50, %v2718_v41  ;;  %v2730_v46 = vor.u32 %v2728_v35, %v2727_v29  ;;  %v2746_v49 = vshrl.u32 %v2669_v48, 16  ;;  %v2751_v52 = vshrl.u32 %v5791_v40, 16  ;;  %v2683_v29 = vld [vmem:[#allocation2 + $0xf4] sm:$0x8]  ;;  %v5040_v48 = vld [vmem:[%s5352_s10 + $0x220] sm:$0xff]  }
 0x141   : > { %4834 = vmatprep.mubr.bf16.mxu1 %v4398_v26  ;;  %v2743_v57 = vor.u32 %v2741_v38, %v2740_v11  ;;  %v2754_v58 = vshll.u32 %v5791_v40, 16  ;;  %v2759_v59 = vshrl.u32 %v2671_v44, 16  ;;  %v2764_v27 = vshrl.u32 %v2672_v45, 16  ;;  %v5815_v26 = vld [vmem:[#allocation2 + $0xc8] sm:$0xf] }
 0x142   : > { %4802 = vmatprep.mubr.bf16.mxu0 %v4366_v42  ;;  %v2731_v62 = vsel %vm5444_vm2, %v4336_v37, %v2730_v46  ;;  %v4338_v2 = vrot.slane %v2746_v49, 11  ;;  %v2753_v8 = vrot.slane %v2751_v52, 7  ;;  %v2767_v4 = vshll.u32 %v2672_v45, 16  ;;  %v5834_v11 = vld [vmem:[#allocation2 + $0xf8] sm:$0xf] }
 0x143   : > { %v2744_v10 = vsel %vm5444_vm2, %v4337_v43, %v2743_v57  ;;  %v4339_v12 = vrot.slane %v2759_v59, 11  ;;  %v2766_v7 = vrot.slane %v2764_v27, 7  ;;  %v4400_v14 = vcombine.low %v5791_v40, %v2672_v45  ;;  %v2685_v27 = vld [vmem:[#allocation2 + $0x104] sm:$0x8] }
 0x144   : > { %v4367_v15 = vcombine.low %v2731_v62, %v2744_v10  ;;  %v2756_v16 = vor.u32 %v2754_v58, %v2753_v8  ;;  %v2772_v17 = vshrl.u32 %v2673_v53, 16  ;;  %v2777_v13 = vshrl.u32 %v5797_v6, 16  ;;  %v5043_v8 = vld [vmem:[%s5352_s10 + $0x218] sm:$0xff]  }
 0x145   : > { %v2769_v18 = vor.u32 %v2767_v4, %v2766_v7  ;;  %v2780_v19 = vshll.u32 %v5797_v6, 16  ;;  %v2785_v47 = vshrl.u32 %v2675_v60, 16  ;;  %v2790_v55 = vshrl.u32 %v5803_v9, 16  ;;  %v5847_v4 = vld [vmem:[#allocation2 + $0x108] sm:$0xf] }
 0x146   : > { %4803 = vmatmul.mubr.bf16.vlgmr.msra.gmra.mxu0 %v4367_v15  ;;  %v2757_v5 = vsel %vm5444_vm2, %v4338_v2, %v2756_v16  ;;  %v4340_v20 = vrot.slane %v2772_v17, 11  ;;  %v2779_v51 = vrot.slane %v2777_v13, 7  ;;  %v2793_v24 = vshll.u32 %v5803_v9, 16  ;;  %v2688_v15 = vld [vmem:[#allocation2 + $0x118] sm:$0xf] }
 0x147   : > { %4851 = vmatpush3.bf16.msra.mxu0 %v5773_v21  ;;  %v2770_v28 = vsel %vm5444_vm2, %v4339_v12, %v2769_v18  ;;  %v4341_v3 = vrot.slane %v2785_v47, 11  ;;  %v2792_v30 = vrot.slane %v2790_v55, 7  ;;  %v4401_v22 = vcombine.low %v5797_v6, %v5803_v9  ;;  %v5854_v47 = vld [vmem:[#allocation2 + $0x128] sm:$0xf] }
 0x148   : > { %4835 = vmatmul.mubr.bf16.vlgmr.msra.gmra.mxu1 %v4399_v23  ;;  %4852 = vmatprep.subr.bf16.mxu0 %v5036_v1  ;;  %v4368_v39 = vcombine.low %v2757_v5, %v2770_v28  ;;  %v2782_v32 = vor.u32 %v2780_v19, %v2779_v51  ;;  %v2798_v34 = vshrl.u32 %v2677_v54, 16  ;;  %v2803_v35 = vshrl.u32 %v5815_v26, 16  ;;  %v2689_v19 = vld [vmem:[#allocation2 + $0x124] sm:$0x8]  ;;  %v2691_v51 = vld [vmem:[#allocation2 + $0x134] sm:$0x8] }
 0x149   : > { %4890 = vmatpush3.bf16.msra.mxu1 %v5773_v21  ;;  %v2681_v21 = vld [vmem:[#allocation2 + $0xe4] sm:$0x8]  ;;  %4838 = vmatprep.mubr.bf16.mxu1 %v4400_v14  ;;  %v2795_v37 = vor.u32 %v2793_v24, %v2792_v30  ;;  %v2806_v63 = vshll.u32 %v5815_v26, 16  ;;  %v2811_v56 = vshrl.u32 %v2679_v31, 16  ;;  %v2816_v50 = vshrl.u32 %v5823_v33, 16 }
 0x14a   : > { %4883 = vmatprep.subr.bf16.mxu1 %v5036_v1  ;;  %4806 = vmatprep.mubr.bf16.mxu0 %v4368_v39  ;;  %v2783_v38 = vsel %vm5444_vm2, %v4340_v20, %v2782_v32  ;;  %v4342_v40 = vrot.slane %v2798_v34, 11  ;;  %v2805_v41 = vrot.slane %v2803_v35, 7  ;;  %v2819_v43 = vshll.u32 %v5823_v33, 16  ;;  %v2687_v14 = vld [vmem:[#allocation2 + $0x114] sm:$0x8] }
 0x14b   : > { %4853 = vmatpush3.bf16.msra.mxu0 %v5036_v1  ;;  %v2796_v23 = vsel %vm5444_vm2, %v4341_v3, %v2795_v37  ;;  %v4343_v44 = vrot.slane %v2811_v56, 11  ;;  %v2818_v45 = vrot.slane %v2816_v50, 7  ;;  %v4402_v42 = vcombine.low %v5815_v26, %v5823_v33  ;;  %v5860_v30 = vld [vmem:[#allocation2 + $0x138] sm:$0xf]  ;;  %v3337_v50 = vld [vmem:[#allocation2 + $0x28] sm:$0xf] }
 0x14c   : > { %v4369_v46 = vcombine.low %v2783_v38, %v2796_v23  ;;  %4854 = vmatprep.subr.bf16.mxu0 %v5039_v25  ;;  %v2808_v49 = vor.u32 %v2806_v63, %v2805_v41  ;;  %v2824_v52 = vshrl.u32 %v2681_v21, 16  ;;  %v2829_v53 = vshrl.u32 %v5826_v36, 16  ;;  %v3338_v41 = vld [vmem:[#allocation2 + $0x2c] sm:$0x1] }
 0x14d   : > { %4891 = vmatpush3.bf16.msra.mxu1 %v5036_v1  ;;  %v2821_v6 = vor.u32 %v2819_v43, %v2818_v45  ;;  %v2832_v57 = vshll.u32 %v5826_v36, 16  ;;  %v2837_v58 = vshrl.u32 %v2683_v29, 16  ;;  %v2842_v59 = vshrl.u32 %v5834_v11, 16  ;;  %v3339_v45 = vld [vmem:[#allocation2 + $0x38] sm:$0xf] }
 0x14e   : > { %4884 = vmatprep.subr.bf16.mxu1 %v5039_v25  ;;  %4807 = vmatmul.mubr.bf16.gmra.mxu0 %v4369_v46  ;;  %v2809_v60 = vsel %vm5444_vm2, %v4342_v40, %v2808_v49  ;;  %v4344_v62 = vrot.slane %v2824_v52, 11  ;;  %v2831_v1 = vrot.slane %v2829_v53, 7  ;;  %v2845_v2 = vshll.u32 %v5834_v11, 16  ;;  %v5047_v52 = vld [vmem:[%s5352_s10 + $0x208] sm:$0xff]  }
 0x14f   : > { %4855 = vmatpush3.bf16.msra.mxu0 %v5039_v25  ;;  %v2822_v9 = vsel %vm5444_vm2, %v4343_v44, %v2821_v6  ;;  %v4345_v10 = vrot.slane %v2837_v58, 11  ;;  %v2844_v12 = vrot.slane %v2842_v59, 7  ;;  %v4403_v7 = vcombine.low %v5826_v36, %v5834_v11 }
 0x150   : > { %4839 = vmatmul.mubr.bf16.gmra.mxu1 %v4401_v22  ;;  %4856 = vmatprep.subr.bf16.mxu0 %v5040_v48  ;;  %v4370_v16 = vcombine.low %v2809_v60, %v2822_v9  ;;  %v2834_v17 = vor.u32 %v2832_v57, %v2831_v1  ;;  %v2850_v13 = vshrl.u32 %v2685_v27, 16  ;;  %v2855_v18 = vshrl.u32 %v5847_v4, 16  ;;  %v3353_v57 = vld [vmem:[#allocation2 + $0xc8] sm:$0xf]  ;;  %v3355_v9 = vld [vmem:[#allocation2 + $0xd8] sm:$0xf] }
 0x151   : > { %4892 = vmatpush3.bf16.msra.mxu1 %v5039_v25  ;;  %4842 = vmatprep.mubr.bf16.mxu1 %v4402_v42  ;;  %v2847_v55 = vor.u32 %v2845_v2, %v2844_v12  ;;  %v2858_v54 = vshll.u32 %v5847_v4, 16  ;;  %v2863_v5 = vshrl.u32 %v2687_v14, 16  ;;  %v2868_v20 = vshrl.u32 %v2688_v15, 16  ;;  %v5044_v25 = vld [vmem:[%s5352_s10 + $0x210] sm:$0xff]   ;;  %v3340_v42 = vld [vmem:[#allocation2 + $0x3c] sm:$0x1] }
 0x152   : > { %4885 = vmatprep.subr.bf16.mxu1 %v5040_v48  ;;  %4810 = vmatprep.mubr.bf16.mxu0 %v4370_v16  ;;  %v2835_v24 = vsel %vm5444_vm2, %v4344_v62, %v2834_v17  ;;  %v4346_v26 = vrot.slane %v2850_v13, 11  ;;  %v2857_v28 = vrot.slane %v2855_v18, 7  ;;  %v2871_v3 = vshll.u32 %v2688_v15, 16  ;;  %v3354_v62 = vld [vmem:[#allocation2 + $0xcc] sm:$0x1]  ;;  %v5048_v17 = vld [vmem:[%s5352_s10 + $0x200] sm:$0xff]  }
 0x153   : > { %4857 = vmatpush3.bf16.msra.mxu0 %v5040_v48  ;;  %v2848_v22 = vsel %vm5444_vm2, %v4345_v10, %v2847_v55  ;;  %v4347_v31 = vrot.slane %v2863_v5, 11  ;;  %v2870_v33 = vrot.slane %v2868_v20, 7  ;;  %v4404_v39 = vcombine.low %v5847_v4, %v2688_v15  ;;  %v3356_v15 = vld [vmem:[#allocation2 + $0xdc] sm:$0x1]  ;;  %v3341_v20 = vld [vmem:[#allocation2 + $0x48] sm:$0xf] }
 0x154   : > { %v4371_v32 = vcombine.low %v2835_v24, %v2848_v22  ;;  %4858 = vmatprep.subr.bf16.mxu0 %v5043_v8  ;;  %v2860_v34 = vor.u32 %v2858_v54, %v2857_v28  ;;  %v2876_v35 = vshrl.u32 %v2689_v19, 16  ;;  %v2881_v21 = vshrl.u32 %v5854_v47, 16 }
 0x155   : > { %4893 = vmatpush3.bf16.msra.mxu1 %v5040_v48  ;;  %v2873_v36 = vor.u32 %v2871_v3, %v2870_v33  ;;  %v2884_v37 = vshll.u32 %v5854_v47, 16  ;;  %v2889_v63 = vshrl.u32 %v2691_v51, 16  ;;  %v2894_v56 = vshrl.u32 %v5860_v30, 16 }
 0x156   : > { %4886 = vmatprep.subr.bf16.mxu1 %v5043_v8  ;;  %4811 = vmatmul.mubr.bf16.gmra.mxu0 %v4371_v32  ;;  %v2861_v29 = vsel %vm5444_vm2, %v4346_v26, %v2860_v34  ;;  %v4348_v38 = vrot.slane %v2876_v35, 11  ;;  %v2883_v48 = vrot.slane %v2881_v21, 7  ;;  %v2897_v40 = vshll.u32 %v5860_v30, 16  ;;  %v3342_v26 = vld [vmem:[#allocation2 + $0x4c] sm:$0x1] }
 0x157   : > { %4859 = vmatpush3.bf16.msra.mxu0 %v5043_v8  ;;  %v2874_v43 = vsel %vm5444_vm2, %v4347_v31, %v2873_v36  ;;  %v4349_v11 = vrot.slane %v2889_v63, 11  ;;  %v2896_v23 = vrot.slane %v2894_v56, 7  ;;  %v4405_v44 = vcombine.low %v5854_v47, %v5860_v30  ;;  %v3343_v31 = vld [vmem:[#allocation2 + $0x58] sm:$0xf]  ;;  %v3344_v36 = vld [vmem:[#allocation2 + $0x5c] sm:$0x1] }
 0x158   : > { %4843 = vmatmul.mubr.bf16.gmra.mxu1 %v4403_v7  ;;  %4860 = vmatprep.subr.bf16.mxu0 %v5044_v25  ;;  %v4372_v46 = vcombine.low %v2861_v29, %v2874_v43  ;;  %v2886_v49 = vor.u32 %v2884_v37, %v2883_v48  ;;  %v3370_v53 = vshrl.u32 %v3337_v50, 16  ;;  %v3373_v6 = vshll.u32 %v3337_v50, 16  ;;  %v3357_v56 = vld [vmem:[#allocation2 + $0xe8] sm:$0xf] }
 0x159   : > { %4894 = vmatpush3.bf16.msra.mxu1 %v5043_v8  ;;  %4846 = vmatprep.mubr.bf16.mxu1 %v4404_v39  ;;  %v2899_v58 = vor.u32 %v2897_v40, %v2896_v23  ;;  %v3379_v59 = vshll.u32 %v3338_v41, 16  ;;  %v3384_v27 = vshrl.u32 %v3339_v45, 16  ;;  %v3387_v60 = vshll.u32 %v3339_v45, 16  ;;  %v3358_v23 = vld [vmem:[#allocation2 + $0xec] sm:$0x1] }
 0x15a   : > { %4887 = vmatprep.subr.bf16.mxu1 %v5044_v25  ;;  %4814 = vmatprep.mubr.bf16.mxu0 %v4372_v46  ;;  %v2887_v1 = vsel %vm5444_vm2, %v4348_v38, %v2886_v49  ;;  %v3372_v2 = vrot.slane %v3370_v53, 4  ;;  %v3375_v8 = vrot.slane %v3373_v6, 5  ;;  %v3393_v4 = vshll.u32 %v3340_v42, 16  ;;  %v3359_v6 = vld [vmem:[#allocation2 + $0xf8] sm:$0xf] }
 0x15b   : > { %4861 = vmatpush3.bf16.msra.mxu0 %v5044_v25  ;;  %v2900_v10 = vsel %vm5444_vm2, %v4349_v11, %v2899_v58  ;;  %v3381_v12 = vrot.slane %v3379_v59, 5  ;;  %v3386_v7 = vrot.slane %v3384_v27, 4  ;;  %v3389_v14 = vrot.slane %v3387_v60, 5 }
 0x15c   : > { %v4373_v16 = vcombine.low %v2887_v1, %v2900_v10  ;;  %4862 = vmatprep.subr.bf16.mxu0 %v5047_v52  ;;  %v3376_v13 = vor.u32 %v3375_v8, %v3372_v2  ;;  %v3395_v18 = vrot.slane %v3393_v4, 5  ;;  %v3482_v19 = vshrl.u32 %v3353_v57, 16  ;;  %v3345_v1 = vld [vmem:[#allocation2 + $0x68] sm:$0xf] }
 0x15d   : > { %4895 = vmatpush3.bf16.msra.mxu1 %v5044_v25  ;;  %v3390_v47 = vor.u32 %v3389_v14, %v3386_v7  ;;  %v3485_v55 = vshll.u32 %v3353_v57, 16  ;;  %v3491_v54 = vshll.u32 %v3354_v62, 16  ;;  %v3496_v5 = vshrl.u32 %v3355_v9, 16  ;;  %v3360_v57 = vld [vmem:[#allocation2 + $0xfc] sm:$0x1] }
 0x15e   : > { %4888 = vmatprep.subr.bf16.mxu1 %v5047_v52  ;;  %4815 = vmatmul.mubr.bf16.gmra.mxu0 %v4373_v16  ;;  %v3377_v61 = vrot.slane %v3376_v13, 4  ;;  %v3484_v51 = vrot.slane %v3482_v19, 4  ;;  %v3499_v24 = vshll.u32 %v3355_v9, 16  ;;  %v3505_v25 = vshll.u32 %v3356_v15, 16  ;;  %v3346_v15 = vld [vmem:[#allocation2 + $0x6c] sm:$0x1] }
 0x15f   : > { %4863 = vmatpush3.bf16.msra.mxu0 %v5047_v52  ;;  %v3391_v28 = vrot.slane %v3390_v47, 4  ;;  %v3487_v3 = vrot.slane %v3485_v55, 5  ;;  %v3493_v30 = vrot.slane %v3491_v54, 5  ;;  %v3498_v22 = vrot.slane %v3496_v5, 4  ;;  %v3348_v5 = vld [vmem:[#allocation2 + $0x7c] sm:$0x1] }
 0x160   : > { %4847 = vmatmul.mubr.bf16.gmra.mxu1 %v4405_v44  ;;  %4864 = vmatprep.subr.bf16.mxu0 %v5048_v17  ;;  %v3382_v33 = vsel %vm5552_vm5, %v3377_v61, %v3381_v12  ;;  %v3501_v39 = vrot.slane %v3499_v24, 5  ;;  %v3507_v32 = vrot.slane %v3505_v25, 5  ;;  %v3398_v34 = vshrl.u32 %v3341_v20, 16 }
 0x161   : > { %4896 = vmatpush3.bf16.msra.mxu1 %v5047_v52  ;;  %v3396_v35 = vsel %vm5552_vm5, %v3391_v28, %v3395_v18  ;;  %v3488_v21 = vor.u32 %v3487_v3, %v3484_v51  ;;  %v3401_v37 = vshll.u32 %v3341_v20, 16  ;;  %v3407_v63 = vshll.u32 %v3342_v26, 16  ;;  %v3347_v18 = vld [vmem:[#allocation2 + $0x78] sm:$0xf]  ;;  %v3361_v26 = vld [vmem:[#allocation2 + $0x108] sm:$0xf] }
 0x162   : > { %4889 = vmatprep.subr.bf16.mxu1 %v5048_v17  ;;  %v4430_v50 = vcombine.low %v3382_v33, %v3396_v35  ;;  %v3502_v29 = vor.u32 %v3501_v39, %v3498_v22  ;;  %v3400_v38 = vrot.slane %v3398_v34, 4  ;;  %v3412_v48 = vshrl.u32 %v3343_v31, 16  ;;  %v3363_v35 = vld [vmem:[#allocation2 + $0x118] sm:$0xf] }
 0x163   : > { %4865 = vmatpush3.bf16.msra.mxu0 %v5048_v17  ;;  %v3489_v40 = vrot.slane %v3488_v21, 4  ;;  %v3403_v41 = vrot.slane %v3401_v37, 5  ;;  %v3409_v43 = vrot.slane %v3407_v63, 5  ;;  %v3415_v11 = vshll.u32 %v3343_v31, 16  ;;  %v3362_v31 = vld [vmem:[#allocation2 + $0x10c] sm:$0x1] }
 0x164   : > { %4866 = vmatprep.mubr.bf16.mxu0 %v4430_v50  ;;  %v3503_v44 = vrot.slane %v3502_v29, 4  ;;  %v3414_v45 = vrot.slane %v3412_v48, 4  ;;  %v3421_v42 = vshll.u32 %v3344_v36, 16  ;;  %v3510_v46 = vshrl.u32 %v3357_v56, 16  ;;  %v3364_v50 = vld [vmem:[#allocation2 + $0x11c] sm:$0x1] }
 0x165   : > { %4897 = vmatpush3.bf16.msra.mxu1 %v5048_v17  ;;  %v3494_v49 = vsel %vm5552_vm5, %v3489_v40, %v3493_v30  ;;  %v3404_v52 = vor.u32 %v3403_v41, %v3400_v38  ;;  %v3417_v53 = vrot.slane %v3415_v11, 5  ;;  %v3513_v58 = vshll.u32 %v3357_v56, 16  ;;  %v3349_v11 = vld [vmem:[#allocation2 + $0x88] sm:$0xf] }
 0x166   : > { %v3508_v59 = vsel %vm5552_vm5, %v3503_v44, %v3507_v32  ;;  %v3423_v27 = vrot.slane %v3421_v42, 5  ;;  %v3512_v60 = vrot.slane %v3510_v46, 4  ;;  %v3519_v62 = vshll.u32 %v3358_v23, 16  ;;  %v3350_v46 = vld [vmem:[#allocation2 + $0x8c] sm:$0x1] }
 0x167   : > { %v4434_v2 = vcombine.low %v3494_v49, %v3508_v59  ;;  %v3405_v8 = vrot.slane %v3404_v52, 4  ;;  %v3418_v4 = vor.u32 %v3417_v53, %v3414_v45  ;;  %v3515_v9 = vrot.slane %v3513_v58, 5  ;;  %v3351_v49 = vld [vmem:[#allocation2 + $0x98] sm:$0xf] }
 0x168   : > { %v3521_v10 = vrot.slane %v3519_v62, 5  ;;  %v3524_v12 = vshrl.u32 %v3359_v6, 16  ;;  %v3527_v7 = vshll.u32 %v3359_v6, 16  ;;  %v3533_v14 = vshll.u32 %v3360_v57, 16 }
 0x169   : > { %4874 = vmatprep.mubr.bf16.mxu1 %v4434_v2  ;;  %v3410_v16 = vsel %vm5552_vm5, %v3405_v8, %v3409_v43  ;;  %v3419_v17 = vrot.slane %v3418_v4, 4  ;;  %v3516_v13 = vor.u32 %v3515_v9, %v3512_v60  ;;  %v3426_v19 = vshrl.u32 %v3345_v1, 16  ;;  %v3352_v8 = vld [vmem:[#allocation2 + $0x9c] sm:$0x1] }
 0x16a   : > { %v3526_v47 = vrot.slane %v3524_v12, 4  ;;  %v3529_v55 = vrot.slane %v3527_v7, 5  ;;  %v3535_v54 = vrot.slane %v3533_v14, 5  ;;  %v3429_v20 = vshll.u32 %v3345_v1, 16 }
 0x16b   : > { %v3424_v61 = vsel %vm5552_vm5, %v3419_v17, %v3423_v27  ;;  %v3517_v51 = vrot.slane %v3516_v13, 4  ;;  %v3428_v24 = vrot.slane %v3426_v19, 4  ;;  %v3435_v25 = vshll.u32 %v3346_v15, 16 }
 0x16c   : > { %v4431_v28 = vcombine.low %v3410_v16, %v3424_v61  ;;  %v3530_v3 = vor.u32 %v3529_v55, %v3526_v47  ;;  %v3431_v30 = vrot.slane %v3429_v20, 5  ;;  %v3440_v22 = vshrl.u32 %v3347_v18, 16  ;;  %v3365_v16 = vld [vmem:[#allocation2 + $0x128] sm:$0xf]  ;;  %v3366_v55 = vld [vmem:[#allocation2 + $0x12c] sm:$0x1] }
 0x16d   : > { %v3522_v33 = vsel %vm5552_vm5, %v3517_v51, %v3521_v10  ;;  %v3437_v39 = vrot.slane %v3435_v25, 5  ;;  %v3443_v32 = vshll.u32 %v3347_v18, 16  ;;  %v3449_v34 = vshll.u32 %v3348_v5, 16 }
 0x16e   : > { %4867 = vmatmul.mubr.bf16.vlgmr.msra.gmra.mxu0 %v4431_v28  ;;  %v3531_v21 = vrot.slane %v3530_v3, 4  ;;  %v3432_v36 = vor.u32 %v3431_v30, %v3428_v24  ;;  %v3442_v37 = vrot.slane %v3440_v22, 4  ;;  %v3538_v63 = vshrl.u32 %v3361_v26, 16 }
 0x16f   : > { %v3445_v56 = vrot.slane %v3443_v32, 5  ;;  %v3541_v29 = vshll.u32 %v3361_v26, 16  ;;  %v3547_v38 = vshll.u32 %v3362_v31, 16  ;;  %v3552_v43 = vshrl.u32 %v3363_v35, 16 }
 0x170   : > { %v3536_v48 = vsel %vm5552_vm5, %v3531_v21, %v3535_v54  ;;  %v3433_v40 = vrot.slane %v3432_v36, 4  ;;  %v3540_v41 = vrot.slane %v3538_v63, 4  ;;  %v3451_v45 = vrot.slane %v3449_v34, 5  ;;  %v3367_v54 = vld [vmem:[#allocation2 + $0x138] sm:$0xf] }
 0x171   : > { %v4435_v23 = vcombine.low %v3522_v33, %v3536_v48  ;;  %v3446_v44 = vor.u32 %v3445_v56, %v3442_v37  ;;  %v3543_v42 = vrot.slane %v3541_v29, 5  ;;  %v3554_v53 = vrot.slane %v3552_v43, 4 }
 0x172   : > { %v3438_v52 = vsel %vm5552_vm5, %v3433_v40, %v3437_v39  ;;  %v3555_v6 = vshll.u32 %v3363_v35, 16  ;;  %v3561_v57 = vshll.u32 %v3364_v50, 16  ;;  %v3454_v27 = vshrl.u32 %v3349_v11, 16  ;;  %v3368_v39 = vld [vmem:[#allocation2 + $0x13c] sm:$0x1] }
 0x173   : > { %4875 = vmatmul.mubr.bf16.vlgmr.msra.gmra.mxu1 %v4435_v23  ;;  %v3447_v58 = vrot.slane %v3446_v44, 4  ;;  %v3544_v59 = vor.u32 %v3543_v42, %v3540_v41  ;;  %v3457_v60 = vshll.u32 %v3349_v11, 16  ;;  %v3549_v1 = vrot.slane %v3547_v38, 5 }
 0x174   : > { %v3557_v2 = vrot.slane %v3555_v6, 5  ;;  %v3463_v4 = vshll.u32 %v3350_v46, 16  ;;  %v3468_v9 = vshrl.u32 %v3351_v49, 16  ;;  %v3456_v14 = vrot.slane %v3454_v27, 4 }
 0x175   : > { %v3452_v12 = vsel %vm5552_vm5, %v3447_v58, %v3451_v45  ;;  %v3545_v7 = vrot.slane %v3544_v59, 4  ;;  %v3459_v15 = vrot.slane %v3457_v60, 5  ;;  %v3563_v19 = vrot.slane %v3561_v57, 5 }
 0x176   : > { %v4432_v13 = vcombine.low %v3438_v52, %v3452_v12  ;;  %v3558_v18 = vor.u32 %v3557_v2, %v3554_v53  ;;  %v3465_v47 = vrot.slane %v3463_v4, 5  ;;  %v3470_v61 = vrot.slane %v3468_v9, 4 }
 0x177   : > { %v3460_v20 = vor.u32 %v3459_v15, %v3456_v14  ;;  %v3471_v51 = vshll.u32 %v3351_v49, 16  ;;  %v3477_v24 = vshll.u32 %v3352_v8, 16  ;;  %v3550_v26 = vsel %vm5552_vm5, %v3545_v7, %v3549_v1 }
 0x178   : > { %4870 = vmatprep.mubr.bf16.mxu0 %v4432_v13  ;;  %v3559_v28 = vrot.slane %v3558_v18, 4  ;;  %v3566_v3 = vshrl.u32 %v3365_v16, 16  ;;  %v3569_v30 = vshll.u32 %v3365_v16, 16  ;;  %v3575_v32 = vshll.u32 %v3366_v55, 16 }
 0x179   : > { %v3461_v31 = vrot.slane %v3460_v20, 4  ;;  %v3473_v33 = vrot.slane %v3471_v51, 5  ;;  %v3580_v34 = vshrl.u32 %v3367_v54, 16  ;;  %v3479_v36 = vrot.slane %v3477_v24, 5 }
 0x17a   : > { %v3564_v21 = vsel %vm5552_vm5, %v3559_v28, %v3563_v19  ;;  %v3568_v37 = vrot.slane %v3566_v3, 4  ;;  %v3571_v63 = vrot.slane %v3569_v30, 5  ;;  %v3583_v43 = vshll.u32 %v3367_v54, 16 }
 0x17b   : > { %v4436_v50 = vcombine.low %v3550_v26, %v3564_v21  ;;  %v3466_v29 = vsel %vm5552_vm5, %v3461_v31, %v3465_v47  ;;  %v3474_v38 = vor.u32 %v3473_v33, %v3470_v61  ;;  %v3582_v48 = vrot.slane %v3580_v34, 4 }
 0x17c   : > { %v3572_v41 = vor.u32 %v3571_v63, %v3568_v37  ;;  %v3589_v11 = vshll.u32 %v3368_v39, 16  ;;  %v3577_v6 = vrot.slane %v3575_v32, 5  ;;  %v3585_v57 = vrot.slane %v3583_v43, 5 }
 0x17d   : > { %4878 = vmatprep.mubr.bf16.mxu1 %v4436_v50  ;;  %v3475_v45 = vrot.slane %v3474_v38, 4 }
 0x17e   : > { %v3573_v53 = vrot.slane %v3572_v41, 4  ;;  %v3586_v8 = vor.u32 %v3585_v57, %v3582_v48 }
 0x17f   : > { %v3480_v27 = vsel %vm5552_vm5, %v3475_v45, %v3479_v36 }
 0x180   : > { %v4612_v62 = vpop.f32.mrf.mxu0  ;;  %v4433_v2 = vcombine.low %v3466_v29, %v3480_v27  ;;  %v3578_v12 = vsel %vm5552_vm5, %v3573_v53, %v3577_v6  ;;  %v3587_v7 = vrot.slane %v3586_v8, 4 }
 0x181   : > { %v4644_v10 = vpop.f32.mrf.mxu1 }
 0x182   : > { %v808_v17 = vpop.f32.mrf.mxu0  ;;  %v994_v23 = vadd.f32 %v4644_v10, %v4612_v62  ;;  %v3591_v62 = vrot.slane %v3589_v11, 5  ;;  %4871 = vmatmul.mubr.bf16.gmra.mxu0 %v4433_v2 }
 0x183   : > { %v985_v5 = vpop.f32.mrf.mxu1 }
 0x184   : > { %v4613_v25 = vpop.f32.mrf.mxu0  ;;  %v986_v42 = vadd.f32 %v985_v5, %v808_v17  ;;  %v3592_v17 = vsel %vm5552_vm5, %v3587_v7, %v3591_v62 }
 0x185   : > { %v4645_v22 = vpop.f32.mrf.mxu1  ;;  %v4437_v18 = vcombine.low %v3578_v12, %v3592_v17 }
 0x186   : > { %v811_v35 = vpop.f32.mrf.mxu0  ;;  %v997_v46 = vadd.f32 %v4645_v22, %v4613_v25 }
 0x187   : > { %v988_v56 = vpop.f32.mrf.mxu1  ;;  %4879 = vmatmul.mubr.bf16.gmra.mxu1 %v4437_v18 }
 0x188   : > { %v4616_v40 = vpop.f32.mrf.mxu0  ;;  %v989_v49 = vadd.f32 %v988_v56, %v811_v35 }
 0x189   : > { %v4648_v44 = vpop.f32.mrf.mxu1 }
 0x18a   : > { %v824_v52 = vpop.f32.mrf.mxu0  ;;  %v1010_v58 = vadd.f32 %v4648_v44, %v4616_v40 }
 0x18b   : > { %v1001_v59 = vpop.f32.mrf.mxu1 }
 0x18c   : > { %v1002_v60 = vadd.f32 %v1001_v59, %v824_v52  ;;  %v4617_v1 = vpop.f32.mrf.mxu0 }
 0x18d   : > { %v4649_v4 = vpop.f32.mrf.mxu1 }
 0x18e   : > { %v1013_v9 = vadd.f32 %v4649_v4, %v4617_v1  ;;  %v827_v10 = vpop.f32.mrf.mxu0 }
 0x18f   : > { %v1004_v14 = vpop.f32.mrf.mxu1 }
 0x190   : > { %v1005_v15 = vadd.f32 %v1004_v14, %v827_v10  ;;  %v4620_v16 = vpop.f32.mrf.mxu0 }
 0x191   : > { %v4652_v13 = vpop.f32.mrf.mxu1 }
 0x192   : > { %v1026_v19 = vadd.f32 %v4652_v13, %v4620_v16  ;;  %v840_v47 = vpop.f32.mrf.mxu0 }
 0x193   : > { %v1017_v55 = vpop.f32.mrf.mxu1 }
 0x194   : > { %v1018_v54 = vadd.f32 %v1017_v55, %v840_v47  ;;  %v4621_v5 = vpop.f32.mrf.mxu0 }
 0x195   : > { %v4653_v20 = vpop.f32.mrf.mxu1 }
 0x196   : > { %v1029_v61 = vadd.f32 %v4653_v20, %v4621_v5  ;;  %v843_v51 = vpop.f32.mrf.mxu0 }
 0x197   : > { %v1020_v24 = vpop.f32.mrf.mxu1 }
 0x198   : > { %v1021_v25 = vadd.f32 %v1020_v24, %v843_v51  ;;  %v4624_v26 = vpop.f32.mrf.mxu0 }
 0x199   : > { %v4656_v28 = vpop.f32.mrf.mxu1 }
 0x19a   : > { %v1042_v3 = vadd.f32 %v4656_v28, %v4624_v26  ;;  %v856_v30 = vpop.f32.mrf.mxu0 }
 0x19b   : > { %v1033_v22 = vpop.f32.mrf.mxu1 }
 0x19c   : > { %v1034_v0 = vadd.f32 %v1033_v22, %v856_v30  ;;  %v4625_v31 = vpop.f32.mrf.mxu0 }
 0x19d   : > { %v4657_v33 = vpop.f32.mrf.mxu1 }
 0x19e   : > { %v1045_v39 = vadd.f32 %v4657_v33, %v4625_v31  ;;  %v859_v32 = vpop.f32.mrf.mxu0 }
 0x19f   : > { %v1036_v34 = vpop.f32.mrf.mxu1 }
 0x1a0   : > { %v1037_v35 = vadd.f32 %v1036_v34, %v859_v32 }
 0x1a2   : > { %v4708_v37 = vpop.f32.mrf.mxu1 }
 0x1a4   : > { %v1889_v29 = vpop.f32.mrf.mxu1 }
 0x1a6   : > { %v4709_v41 = vpop.f32.mrf.mxu1 }
 0x1a8   : > { %v4676_v21 = vpop.f32.mrf.mxu0  ;;  %v1892_v45 = vpop.f32.mrf.mxu1 }
 0x1a9   : > { %v1503_v36 = vadd.f32 %v4676_v21, %v994_v23 }
 0x1aa   : > { %v1438_v63 = vpop.f32.mrf.mxu0 }
 0x1ab   : > { %v1954_v56 = vadd.f32 %v4708_v37, %v1503_v36  ;;  %v1501_v50 = vadd.f32 %v1438_v63, %v986_v42 }
 0x1ac   : > { %v4677_v38 = vpop.f32.mrf.mxu0 }
 0x1ad   : > { %v1952_v48 = vadd.f32 %v1889_v29, %v1501_v50  ;;  %v1504_v40 = vadd.f32 %v4677_v38, %v997_v46 }
 0x1ae   : > { %v1441_v43 = vpop.f32.mrf.mxu0 }
 0x1af   : > { %v1955_v11 = vadd.f32 %v4709_v41, %v1504_v40  ;;  %v1502_v44 = vadd.f32 %v1441_v43, %v989_v49 }
 0x1b1   : > { %v1953_v52 = vadd.f32 %v1892_v45, %v1502_v44 }
 0x1b3   : > { %v4680_v53 = vpop.f32.mrf.mxu0 }
 0x1b4   : > { %v1507_v6 = vadd.f32 %v4680_v53, %v1010_v58 }
 0x1b5   : > { %v1454_v59 = vpop.f32.mrf.mxu0 }
 0x1b6   : > { %v4712_v57 = vpop.f32.mrf.mxu1  ;;  %v1505_v23 = vadd.f32 %v1454_v59, %v1002_v60 }
 0x1b7   : > { %v1958_v27 = vadd.f32 %v4712_v57, %v1507_v6  ;;  %v4681_v2 = vpop.f32.mrf.mxu0 }
 0x1b8   : > { %v1905_v1 = vpop.f32.mrf.mxu1  ;;  %v1508_v42 = vadd.f32 %v4681_v2, %v1013_v9 }
 0x1b9   : > { %v5913_v8 = vadd.f32 %v1905_v1, %v1505_v23  ;;  %v1457_v4 = vpop.f32.mrf.mxu0 }
 0x1ba   : > { %v4713_v62 = vpop.f32.mrf.mxu1  ;;  %v1506_v10 = vadd.f32 %v1457_v4, %v1005_v15 }
 0x1bb   : > { %v5915_v46 = vadd.f32 %v4713_v62, %v1508_v42 }
 0x1bc   : > { %v1908_v12 = vpop.f32.mrf.mxu1 }
 0x1bd   : > { %v5917_v49 = vadd.f32 %v1908_v12, %v1506_v10 }
 0x1c3   : > { %v4684_v7 = vpop.f32.mrf.mxu0 }
 0x1c4   : > { %v1511_v14 = vadd.f32 %v4684_v7, %v1026_v19 }
 0x1c5   : > { %v1470_v16 = vpop.f32.mrf.mxu0 }
 0x1c6   : > { %v1509_v60 = vadd.f32 %v1470_v16, %v1018_v54 }
 0x1c7   : > { %v4685_v18 = vpop.f32.mrf.mxu0 }
 0x1c8   : > { %v1512_v9 = vadd.f32 %v4685_v18, %v1029_v61 }
 0x1c9   : > { %v1473_v5 = vpop.f32.mrf.mxu0 }
 0x1ca   : > { %v4716_v58 = vpop.f32.mrf.mxu1  ;;  %v1510_v15 = vadd.f32 %v1473_v5, %v1021_v25 }
 0x1cb   : > { %v5919_v17 = vadd.f32 %v4716_v58, %v1511_v14 }
 0x1cc   : > { %v1921_v13 = vpop.f32.mrf.mxu1 }
 0x1cd   : > { %v5921_v47 = vadd.f32 %v1921_v13, %v1509_v60 }
 0x1ce   : > { %v4717_v55 = vpop.f32.mrf.mxu1 }
 0x1cf   : > { %v5923_v20 = vadd.f32 %v4717_v55, %v1512_v9 }
 0x1d0   : > { %v1924_v51 = vpop.f32.mrf.mxu1 }
 0x1d1   : > { %v5925_v24 = vadd.f32 %v1924_v51, %v1510_v15 }
 0x1d5   : > { %v4688_v26 = vpop.f32.mrf.mxu0 }
 0x1d6   : > { %v1515_v19 = vadd.f32 %v4688_v26, %v1042_v3 }
 0x1d7   : > { %v4720_v28 = vpop.f32.mrf.mxu1  ;;  %v1486_v30 = vpop.f32.mrf.mxu0 }
 0x1d8   : > { %v5927_v22 = vadd.f32 %v4720_v28, %v1515_v19  ;;  %v1513_v54 = vadd.f32 %v1486_v30, %v1034_v0 }
 0x1d9   : > { %v1937_v31 = vpop.f32.mrf.mxu1  ;;  %v4689_v33 = vpop.f32.mrf.mxu0 }
 0x1da   : > { %v5929_v32 = vadd.f32 %v1937_v31, %v1513_v54  ;;  %v1516_v61 = vadd.f32 %v4689_v33, %v1045_v39 }
 0x1db   : > { %v4721_v34 = vpop.f32.mrf.mxu1  ;;  %v1489_v21 = vpop.f32.mrf.mxu0 }
 0x1dc   : > { %v5931_v36 = vadd.f32 %v4721_v34, %v1516_v61  ;;  %v1514_v25 = vadd.f32 %v1489_v21, %v1037_v35 }
 0x1dd   : > { %v1940_v37 = vpop.f32.mrf.mxu1  ;;  %v4740_v63 = vpop.f32.mrf.mxu0 }
 0x1de   : > { %v5933_v50 = vadd.f32 %v1940_v37, %v1514_v25  ;;  %v2180_v3 = vadd.f32 %v4740_v63, %v1954_v56 }
 0x1df   : > { %v2115_v29 = vpop.f32.mrf.mxu0 }
 0x1e0   : > { %6270 = vst [vmem:[#allocation11_spill] sm:$0xff] %v5933_v50  ;;  %v2178_v38 = vadd.f32 %v2115_v29, %v1952_v48 }
 0x1e1   : > { %v4741_v41 = vpop.f32.mrf.mxu0 }
 0x1e2   : > { %v4772_v40 = vpop.f32.mrf.mxu1  ;;  %v2181_v43 = vadd.f32 %v4741_v41, %v1955_v11 }
 0x1e3   : > { %v5935_v0 = vadd.f32 %v4772_v40, %v2180_v3  ;;  %v2118_v45 = vpop.f32.mrf.mxu0 }
 0x1e4   : > { %v2581_v44 = vpop.f32.mrf.mxu1  ;;  %v2179_v53 = vadd.f32 %v2118_v45, %v1953_v52 }
 0x1e5   : > { %v5937_v39 = vadd.f32 %v2581_v44, %v2178_v38  ;;  %v4744_v57 = vpop.f32.mrf.mxu0 }
 0x1e6   : > { %v4773_v6 = vpop.f32.mrf.mxu1  ;;  %v2184_v48 = vadd.f32 %v4744_v57, %v1958_v27 }
 0x1e7   : > { %v5939_v35 = vadd.f32 %v4773_v6, %v2181_v43  ;;  %v5941_v23 = vpop.f32.mrf.mxu0 }
 0x1e8   : > { %v2584_v59 = vpop.f32.mrf.mxu1 }
 0x1e9   : > { %v5943_v56 = vadd.f32 %v2584_v59, %v2179_v53  ;;  %v5945_v1 = vpop.f32.mrf.mxu0 }
 0x1eb   : > { %v5947_v42 = vpop.f32.mrf.mxu0 }
 0x1ec   : > { %v4776_v2 = vpop.f32.mrf.mxu1 }
 0x1ed   : > { %v5949_v11 = vadd.f32 %v4776_v2, %v2184_v48  ;;  %v4748_v52 = vpop.f32.mrf.mxu0 }
 0x1ee   : > { %v5951_v62 = vpop.f32.mrf.mxu1 }
 0x1ef   : > { %v2147_v10 = vpop.f32.mrf.mxu0 }
 0x1f0   : > { %v5953_v4 = vpop.f32.mrf.mxu1 }
 0x1f1   : > { %v4749_v12 = vpop.f32.mrf.mxu0 }
 0x1f2   : > { %v5955_v7 = vpop.f32.mrf.mxu1 }
 0x1f3   : > { %v2150_v14 = vpop.f32.mrf.mxu0 }
 0x1f5   : > { %v5957_v27 = vpop.f32.mrf.mxu0 }
 0x1f6   : > { %v4780_v58 = vpop.f32.mrf.mxu1 }
 0x1f7   : > { %v5959_v18 = vpop.f32.mrf.mxu0 }
 0x1f8   : > { %v2613_v16 = vpop.f32.mrf.mxu1 }
 0x1f9   : > { %v5963_v55 = vpop.f32.mrf.mxu0 }
 0x1fa   : > { %v4781_v60 = vpop.f32.mrf.mxu1 }
 0x1fb   : > { %v5969_v51 = vpop.f32.mrf.mxu0 }
 0x1fc   : > { %v2616_v13 = vpop.f32.mrf.mxu1  ;;  %6273 = vst [vmem:[#allocation14_spill] sm:$0xff] %v5969_v51 }
 0x200   : > { %v5961_v9 = vpop.f32.mrf.mxu1 }
 0x202   : > { %v5965_v5 = vpop.f32.mrf.mxu1 }
 0x203   : > { %6271 = vst [vmem:[#allocation12_spill] sm:$0xff] %v5965_v5 }
 0x204   : > { %v5967_v15 = vpop.f32.mrf.mxu1 }
 0x205   : > { %6272 = vst [vmem:[#allocation13_spill] sm:$0xff] %v5967_v15 }
 0x206   : > { %v5971_v26 = vpop.f32.mrf.mxu1  ;;  %v4804_v19 = vpop.f32.mrf.mxu0 }
 0x207   : > { %6274 = vst [vmem:[#allocation15_spill] sm:$0xff] %v5971_v26 }
 0x208   : > { %v4836_v28 = vpop.f32.mrf.mxu1  ;;  %v3032_v30 = vpop.f32.mrf.mxu0 }
 0x209   : > { %v3095_v50 = vadd.f32 %v3032_v30, %v5937_v39 }
 0x20a   : > { %v3258_v54 = vpop.f32.mrf.mxu1  ;;  %v4805_v31 = vpop.f32.mrf.mxu0 }
 0x20c   : > { %v4837_v33 = vpop.f32.mrf.mxu1  ;;  %v3035_v61 = vpop.f32.mrf.mxu0 }
 0x20e   : > { %v3261_v34 = vpop.f32.mrf.mxu1  ;;  %v5973_v21 = vpop.f32.mrf.mxu0 }
 0x210   : > { %v5975_v25 = vpop.f32.mrf.mxu1  ;;  %v5977_v37 = vpop.f32.mrf.mxu0 }
 0x212   : > { %v5979_v63 = vpop.f32.mrf.mxu1  ;;  %v5981_v3 = vpop.f32.mrf.mxu0 }
 0x213   : > { %6275 = vst [vmem:[#allocation16_spill] sm:$0xff] %v5979_v63  ;;  %6276 = vst [vmem:[#allocation17_spill] sm:$0xff] %v5981_v3  ;;  %v2186_v63 = vadd.f32 %v2147_v10, %v5921_v47  ;;  %v3096_v47 = vadd.f32 %v3035_v61, %v5943_v56 }
 0x214   : > { %v5983_v29 = vpop.f32.mrf.mxu1  ;;  %v5985_v38 = vpop.f32.mrf.mxu0 }
 0x215   : > { %6277 = vst [vmem:[#allocation18_spill] sm:$0xff] %v5983_v29  ;;  %6278 = vst [vmem:[#allocation19_spill] sm:$0xff] %v5985_v38  ;;  %v3097_v38 = vadd.f32 %v4804_v19, %v5935_v0  ;;  %v2652_v3 = vadd.f32 %v2613_v16, %v2186_v63  ;;  %v3321_v0 = vadd.f32 %v3258_v54, %v3095_v50 }
 0x216   : > { %v5987_v40 = vpop.f32.mrf.mxu1  ;;  %v4812_v41 = vpop.f32.mrf.mxu0 }
 0x217   : > { %6279 = vst [vmem:[#allocation20_spill] sm:$0xff] %v5987_v40  ;;  %v2188_v40 = vadd.f32 %v4748_v52, %v5919_v17 }
 0x218   : > { %v4844_v43 = vpop.f32.mrf.mxu1  ;;  %v3064_v44 = vpop.f32.mrf.mxu0 }
 0x219   : > { %v2654_v5 = vadd.f32 %v4780_v58, %v2188_v40  ;;  %v3103_v30 = vadd.f32 %v3064_v44, %v2652_v3  ;;  %v2183_v44 = vadd.f32 %v5947_v42, %v5917_v49 }
 0x21a   : > { %v3290_v45 = vpop.f32.mrf.mxu1  ;;  %v4813_v53 = vpop.f32.mrf.mxu0  ;;  %v6285_v49 = vld [vmem:[#allocation17_spill] sm:$0xff] }
 0x21b   : > { %v3105_v17 = vadd.f32 %v4812_v41, %v2654_v5  ;;  %v3329_v50 = vadd.f32 %v3290_v45, %v3103_v30  ;;  %v2192_v41 = vadd.f32 %v5957_v27, %v5927_v22  ;;  %v3101_v45 = vadd.f32 %v5973_v21, %v5949_v11  ;;  %v6286_v27 = vld [vmem:[#allocation12_spill] sm:$0xff]  ;;  %v6287_v21 = vld [vmem:[#allocation11_spill] sm:$0xff] }
 0x21c   : > { %v4845_v6 = vpop.f32.mrf.mxu1  ;;  %v3067_v57 = vpop.f32.mrf.mxu0  ;;  %v2193_v22 = vadd.f32 %v5963_v55, %v5931_v36  ;;  %v6292_v36 = vld [vmem:[#allocation13_spill] sm:$0xff]  ;;  %v6295_v30 = vld [vmem:[#allocation15_spill] sm:$0xff] }
 0x21e   : > { %v5989_v59 = vpop.f32.mrf.mxu0  ;;  %v3293_v48 = vpop.f32.mrf.mxu1 }
 0x21f   : > { %6280 = vst [vmem:[#allocation21_spill] sm:$0xff] %v5989_v59 }
 0x220   : > { %v5991_v2 = vpop.f32.mrf.mxu0  ;;  %v5993_v26 = vpop.f32.mrf.mxu1 }
 0x221   : > { %6281 = vst [vmem:[#allocation22_spill] sm:$0xff] %v5991_v2  ;;  %6282 = vst [vmem:[#allocation23_spill] sm:$0xff] %v5993_v26  ;;  %v2189_v2 = vadd.f32 %v4749_v12, %v5923_v20  ;;  %v3323_v26 = vadd.f32 %v4836_v28, %v3097_v38  ;;  %v2185_v38 = vadd.f32 %v5945_v1, %v5915_v46 }
 0x222   : > { %v5995_v15 = vpop.f32.mrf.mxu0  ;;  %v5997_v29 = vpop.f32.mrf.mxu1  ;;  %v2658_v46 = vadd.f32 %v5961_v9, %v2192_v41  ;;  %v2649_v1 = vadd.f32 %v5955_v7, %v2183_v44  ;;  %v6291_v9 = vld [vmem:[#allocation19_spill] sm:$0xff]  ;;  %v2659_v7 = vadd.f32 %v6292_v36, %v2193_v22 }
 0x223   : > { %6283 = vst [vmem:[#allocation24_spill] sm:$0xff] %v5995_v15  ;;  %6284 = vst [vmem:[#allocation25_spill] sm:$0xff] %v5997_v29  ;;  %v3098_v15 = vadd.f32 %v4805_v31, %v5939_v35  ;;  %v2187_v29 = vadd.f32 %v2150_v14, %v5925_v24  ;;  %v2655_v39 = vadd.f32 %v4781_v60, %v2189_v2 }
 0x224   : > { %v6002_v51 = vpop.f32.mrf.mxu0  ;;  %v6005_v59 = vpop.f32.mrf.mxu1  ;;  %v3331_v35 = vadd.f32 %v4844_v43, %v3105_v17  ;;  %v3322_v24 = vadd.f32 %v3261_v34, %v3096_v47  ;;  %v2182_v34 = vadd.f32 %v5941_v23, %v5913_v8  ;;  %v2190_v8 = vadd.f32 %v5959_v18, %v5929_v32 }
 0x225   : > { %v3324_v40 = vadd.f32 %v4837_v33, %v3098_v15  ;;  %v2653_v12 = vadd.f32 %v2616_v13, %v2187_v29  ;;  %v3106_v16 = vadd.f32 %v4813_v53, %v2655_v39  ;;  %v2651_v23 = vadd.f32 %v5953_v4, %v2185_v38 }
 0x226   : > { %v6011_v10 = vpop.f32.mrf.mxu1  ;;  %v2648_v43 = vadd.f32 %v5951_v62, %v2182_v34  ;;  %v3327_v62 = vadd.f32 %v5975_v25, %v3101_v45  ;;  %v2656_v11 = vadd.f32 %v6286_v27, %v2190_v8  ;;  %v6289_v18 = vld [vmem:[#allocation21_spill] sm:$0xff]  ;;  %v3100_v2 = vadd.f32 %v6291_v9, %v2649_v1 }
 0x227   : > { %v3104_v56 = vadd.f32 %v3067_v57, %v2653_v12  ;;  %v3332_v61 = vadd.f32 %v4845_v6, %v3106_v16  ;;  %v3102_v42 = vadd.f32 %v6285_v49, %v2651_v23  ;;  %v6288_v6 = vld [vmem:[#allocation14_spill] sm:$0xff]  ;;  %v3109_v4 = vadd.f32 %v6289_v18, %v2658_v46 }
 0x228   : > { %v3099_v53 = vadd.f32 %v5977_v37, %v2648_v43  ;;  %v2191_v32 = vadd.f32 %v6288_v6, %v6287_v21  ;;  %v6290_v37 = vld [vmem:[#allocation16_spill] sm:$0xff]  ;;  %v6293_v55 = vld [vmem:[#allocation22_spill] sm:$0xff] }
 0x229   : > { %v3330_v13 = vadd.f32 %v3293_v48, %v3104_v56  ;;  %v3107_v25 = vadd.f32 %v6293_v55, %v2656_v11 }
 0x22a   : > { %v3325_v48 = vadd.f32 %v6290_v37, %v3099_v53 }
 0x22e   : > { %v4868_v52 = vpop.f32.mrf.mxu0 }
 0x22f   : > { %v6013_v19 = vadd.f32 %v4868_v52, %v3323_v26 }
 0x230   : > { %v3724_v58 = vpop.f32.mrf.mxu0 }
 0x231   : > { %v6015_v20 = vadd.f32 %v3724_v58, %v3321_v0  ;;  %v6294_v0 = vld [vmem:[#allocation18_spill] sm:$0xff]  ;;  %v2657_v58 = vadd.f32 %v6295_v30, %v2191_v32 }
 0x232   : > { %v4869_v28 = vpop.f32.mrf.mxu0  ;;  %v3328_v47 = vadd.f32 %v6294_v0, %v3102_v42 }
 0x233   : > { %v4876_v14 = vpop.f32.mrf.mxu1  ;;  %v6017_v5 = vadd.f32 %v4869_v28, %v3324_v40  ;;  %v6296_v40 = vld [vmem:[#allocation23_spill] sm:$0xff] }
 0x234   : > { %v6019_v54 = vadd.f32 %v4876_v14, %v3331_v35  ;;  %v3727_v26 = vpop.f32.mrf.mxu0  ;;  %v3335_v12 = vadd.f32 %v6296_v40, %v3109_v4  ;;  %v6297_v35 = vld [vmem:[#allocation24_spill] sm:$0xff] }
 0x235   : > { %v3756_v31 = vpop.f32.mrf.mxu1  ;;  %v6021_v60 = vadd.f32 %v3727_v26, %v3322_v24  ;;  %v3110_v16 = vadd.f32 %v6297_v35, %v2659_v7  ;;  %v6298_v24 = vld [vmem:[#allocation20_spill] sm:$0xff]  ;;  %v6299_v26 = vld [vmem:[#allocation25_spill] sm:$0xff] }
 0x236   : > { %v6023_v15 = vadd.f32 %v3756_v31, %v3329_v50  ;;  %v3326_v14 = vadd.f32 %v6298_v24, %v3100_v2  ;;  %v3333_v31 = vadd.f32 %v6299_v26, %v3107_v25 }
 0x237   : > { %v4877_v33 = vpop.f32.mrf.mxu1  ;;  %v3336_v38 = vadd.f32 %v6005_v59, %v3110_v16 }
 0x238   : > { %v6025_v63 = vadd.f32 %v4877_v33, %v3332_v61  ;;  %v3108_v61 = vadd.f32 %v6002_v51, %v2657_v58 }
 0x239   : > { %v3759_v3 = vpop.f32.mrf.mxu1 }
 0x23a   : > { %v6029_v29 = vadd.f32 %v3759_v3, %v3330_v13  ;;  %v3334_v44 = vadd.f32 %v6011_v10, %v3108_v61 }
 0x242   : > { %v4872_v57 = vpop.f32.mrf.mxu0 }
 0x243   : > { %v6056_v17 = vadd.f32 %v4872_v57, %v3327_v62 }
 0x244   : > { %v3740_v52 = vpop.f32.mrf.mxu0 }
 0x245   : > { %v6061_v39 = vadd.f32 %v3740_v52, %v3325_v48 }
 0x246   : > { %v4873_v28 = vpop.f32.mrf.mxu0 }
 0x247   : > { %v4880_v50 = vpop.f32.mrf.mxu1  ;;  %v6067_v56 = vadd.f32 %v4873_v28, %v3328_v47 }
 0x248   : > { %v6071_v33 = vadd.f32 %v4880_v50, %v3335_v12  ;;  %v3743_v13 = vpop.f32.mrf.mxu0 }
 0x249   : > { %v3772_v34 = vpop.f32.mrf.mxu1  ;;  %v6073_v3 = vadd.f32 %v3743_v13, %v3326_v14 }
 0x24a   : > { %v6076_v41 = vadd.f32 %v3772_v34, %v3333_v31  ;;  %3805 = sbr.rel (%p4125_p8) target bundleno = 603 (0x25b), region = 56 }
 0x24b   : > { %v4881_v43 = vpop.f32.mrf.mxu1 }
 0x24c   : > { %v6079_v45 = vadd.f32 %v4881_v43, %v3336_v38 }
 0x24d   : > { %v3775_v8 = vpop.f32.mrf.mxu1 }
 0x24e   : > { %v6081_v23 = vadd.f32 %v3775_v8, %v3334_v44 }
 0x24f   : > { %v3806_v51 = vmax.f32 %v6015_v20, 0.0  ;;  %v3807_v53 = vmax.f32 %v6021_v60, 0.0  ;;  %v3808_v46 = vmax.f32 %v6013_v19, 0.0  ;;  %v3809_v59 = vmax.f32 %v6017_v5, 0.0 }
 0x250   : > { %v3810_v22 = vmax.f32 %v6061_v39, 0.0  ;;  %v3811_v10 = vmax.f32 %v6073_v3, 0.0  ;;  %v3812_v1 = vmax.f32 %v6056_v17, 0.0  ;;  %v3813_v62 = vmax.f32 %v6067_v56, 0.0 }
 0x251   : > { %v3822_v49 = vpack.c.bf16 %v3806_v51, %v3806_v51  ;;  %v3823_v42 = vpack.c.bf16 %v3807_v53, %v3807_v53  ;;  %v3824_v27 = vpack.c.bf16 %v3808_v46, %v3808_v46  ;;  %v3825_v11 = vpack.c.bf16 %v3809_v59, %v3809_v59 }
 0x252   : > { %v3826_v21 = vpack.c.bf16 %v3810_v22, %v3810_v22  ;;  %v3827_v6 = vpack.c.bf16 %v3811_v10, %v3811_v10  ;;  %v3828_v32 = vpack.c.bf16 %v3812_v1, %v3812_v1  ;;  %v3829_v18 = vpack.c.bf16 %v3813_v62, %v3813_v62 }
 0x253   : > { %3838 = vst [vmem:[#allocation2 + $0x18] sm:$0xf] %v3822_v49  ;;  %3839 = vst [vmem:[#allocation2 + $0x28] sm:$0xf] %v3823_v42  ;;  %v3814_v4 = vmax.f32 %v6023_v15, 0.0  ;;  %v3815_v57 = vmax.f32 %v6029_v29, 0.0 }
 0x254   : > { %3840 = vst [vmem:[#allocation2 + $0x38] sm:$0xf] %v3824_v27  ;;  %3841 = vst [vmem:[#allocation2 + $0x48] sm:$0xf] %v3825_v11  ;;  %v3816_v37 = vmax.f32 %v6019_v54, 0.0  ;;  %v3817_v48 = vmax.f32 %v6025_v63, 0.0 }
 0x255   : > { %3842 = vst [vmem:[#allocation2 + $0x58] sm:$0xf] %v3826_v21  ;;  %3843 = vst [vmem:[#allocation2 + $0x68] sm:$0xf] %v3827_v6  ;;  %v3818_v9 = vmax.f32 %v6076_v41, 0.0  ;;  %v3819_v2 = vmax.f32 %v6081_v23, 0.0  ;;  %v3830_v55 = vpack.c.bf16 %v3814_v4, %v3814_v4  ;;  %v3831_v25 = vpack.c.bf16 %v3815_v57, %v3815_v57 }
 0x256   : > { %3844 = vst [vmem:[#allocation2 + $0x78] sm:$0xf] %v3828_v32  ;;  %3845 = vst [vmem:[#allocation2 + $0x88] sm:$0xf] %v3829_v18  ;;  %v3820_v36 = vmax.f32 %v6071_v33, 0.0  ;;  %v3821_v7 = vmax.f32 %v6079_v45, 0.0  ;;  %v3832_v52 = vpack.c.bf16 %v3816_v37, %v3816_v37  ;;  %v3833_v0 = vpack.c.bf16 %v3817_v48, %v3817_v48 }
 0x257   : > { %v3834_v47 = vpack.c.bf16 %v3818_v9, %v3818_v9  ;;  %v3835_v30 = vpack.c.bf16 %v3819_v2, %v3819_v2  ;;  %3846 = vst [vmem:[#allocation2 + $0xb8] sm:$0xf] %v3830_v55  ;;  %3847 = vst [vmem:[#allocation2 + $0xc8] sm:$0xf] %v3831_v25 }
 0x258   : > { %v3836_v58 = vpack.c.bf16 %v3820_v36, %v3820_v36  ;;  %v3837_v40 = vpack.c.bf16 %v3821_v7, %v3821_v7  ;;  %3848 = vst [vmem:[#allocation2 + $0xd8] sm:$0xf] %v3832_v52  ;;  %3849 = vst [vmem:[#allocation2 + $0xe8] sm:$0xf] %v3833_v0 }
 0x259   : > { %3850 = vst [vmem:[#allocation2 + $0xf8] sm:$0xf] %v3834_v47  ;;  %3851 = vst [vmem:[#allocation2 + $0x108] sm:$0xf] %v3835_v30 }
 0x25a   : > { %3852 = vst [vmem:[#allocation2 + $0x118] sm:$0xf] %v3836_v58  ;;  %3853 = vst [vmem:[#allocation2 + $0x128] sm:$0xf] %v3837_v40 }
 0x25b PF: > { %p3854_p4 = scmp.gt.s32.totalorder %s5225_s19, 0  ;;  %p3855_p5 = scmp.lt.s32.totalorder %s5225_s19, 14 }
 0x25d   : > { %p3856_p6 = pnand %p3855_p5, %p3854_p4 }
 0x25f   : > { %3859 = sbr.rel (%p3856_p6) target bundleno = 703 (0x2bf), region = 60 }
 0x264   : > { %v3860_v12 = vadd.f32 %v6021_v60, %v6015_v20  ;;  %v3882_v35 = vmul.f32 %v6015_v20, %v6015_v20  ;;  %v3883_v16 = vmul.f32 %v6021_v60, %v6021_v60  ;;  %v3884_v24 = vmul.f32 %v6013_v19, %v6013_v19 }
 0x265   : > { %v3885_v50 = vmul.f32 %v6017_v5, %v6017_v5  ;;  %v3886_v61 = vmul.f32 %v6061_v39, %v6061_v39  ;;  %v3887_v38 = vmul.f32 %v6073_v3, %v6073_v3  ;;  %v3888_v8 = vmul.f32 %v6056_v17, %v6056_v17 }
 0x266   : > { %v3861_v28 = vadd.f32 %v3860_v12, %v6013_v19  ;;  %v3898_v26 = vadd.f32 %v3883_v16, %v3882_v35  ;;  %v3889_v46 = vmul.f32 %v6067_v56, %v6067_v56  ;;  %v3890_v10 = vmul.f32 %v6023_v15, %v6023_v15 }
 0x267   : > { %v3891_v49 = vmul.f32 %v6029_v29, %v6029_v29  ;;  %v3892_v11 = vmul.f32 %v6019_v54, %v6019_v54  ;;  %v3893_v32 = vmul.f32 %v6025_v63, %v6025_v63  ;;  %v3894_v57 = vmul.f32 %v6076_v41, %v6076_v41 }
 0x268   : > { %v3862_v14 = vadd.f32 %v3861_v28, %v6017_v5  ;;  %v3899_v13 = vadd.f32 %v3898_v26, %v3884_v24  ;;  %v3895_v9 = vmul.f32 %v6081_v23, %v6081_v23  ;;  %v3896_v7 = vmul.f32 %v6071_v33, %v6071_v33 }
 0x269   : > { %v3897_v52 = vmul.f32 %v6079_v45, %v6079_v45 }
 0x26a   : > { %v3863_v31 = vadd.f32 %v3862_v14, %v6061_v39  ;;  %v3900_v43 = vadd.f32 %v3899_v13, %v3885_v50 }
 0x26c   : > { %v3864_v34 = vadd.f32 %v3863_v31, %v6073_v3  ;;  %v3901_v51 = vadd.f32 %v3900_v43, %v3886_v61 }
 0x26e   : > { %v3865_v44 = vadd.f32 %v3864_v34, %v6056_v17  ;;  %v3902_v59 = vadd.f32 %v3901_v51, %v3887_v38  ;;  %v3931_v51 = vlaneseq }
 0x270   : > { %v3866_v53 = vadd.f32 %v3865_v44, %v6067_v56  ;;  %v3903_v1 = vadd.f32 %v3902_v59, %v3888_v8 }
 0x272   : > { %v3867_v22 = vadd.f32 %v3866_v53, %v6023_v15  ;;  %v3904_v42 = vadd.f32 %v3903_v1, %v3889_v46  ;;  %v3932_v53 = vshrl.u32 %v3931_v51, 7  ;;  %v3923_v46 = vld [vmem:[%s232_s6] sm:$0x1] }
 0x273   : > { %v3927_v1 = vld [vmem:[%s240_s15] sm:$0x1] }
 0x274   : > { %v3868_v62 = vadd.f32 %v3867_v22, %v6029_v29  ;;  %v3905_v21 = vadd.f32 %v3904_v42, %v3890_v10  ;;  %v3933_v59 = vsub.s32 0, %v3932_v53 }
 0x276   : > { %v3869_v27 = vadd.f32 %v3868_v62, %v6019_v54  ;;  %v3906_v18 = vadd.f32 %v3905_v21, %v3891_v49 }
 0x278   : > { %v3870_v6 = vadd.f32 %v3869_v27, %v6025_v63  ;;  %v3907_v37 = vadd.f32 %v3906_v18, %v3892_v11 }
 0x27a   : > { %v3871_v4 = vadd.f32 %v3870_v6, %v6076_v41  ;;  %v3908_v2 = vadd.f32 %v3907_v37, %v3893_v32 }
 0x27c   : > { %v3872_v48 = vadd.f32 %v3871_v4, %v6081_v23  ;;  %v3909_v55 = vadd.f32 %v3908_v2, %v3894_v57 }
 0x27e   : > { %v3873_v36 = vadd.f32 %v3872_v48, %v6071_v33  ;;  %v3910_v0 = vadd.f32 %v3909_v55, %v3895_v9 }
 0x280   : > { %v3874_v25 = vadd.f32 %v3873_v36, %v6079_v45  ;;  %v3911_v30 = vadd.f32 %v3910_v0, %v3896_v7 }
 0x282   : > { %v3875_v47 = vrot.slane %v3874_v25, 4  ;;  %v3912_v40 = vadd.f32 %v3911_v30, %v3897_v52 }
 0x284   : > { %v3876_v58 = vadd.f32 %v3875_v47, %v3874_v25  ;;  %v3913_v35 = vrot.slane %v3912_v40, 4 }
 0x286   : > { %v3877_v12 = vrot.slane %v3876_v58, 2  ;;  %v3914_v28 = vadd.f32 %v3913_v35, %v3912_v40 }
 0x288   : > { %v3878_v16 = vadd.f32 %v3877_v12, %v3876_v58  ;;  %v3915_v14 = vrot.slane %v3914_v28, 2 }
 0x28a   : > { %v3879_v24 = vrot.slane %v3878_v16, 1  ;;  %v3916_v26 = vadd.f32 %v3915_v14, %v3914_v28 }
 0x28c   : > { %v3880_v50 = vadd.f32 %v3879_v24, %v3878_v16  ;;  %v3917_v61 = vrot.slane %v3916_v26, 1 }
 0x28e   : > { %v3881_v31 = vmul.f32 0.0078125, %v3880_v50  ;;  %v3918_v13 = vadd.f32 %v3917_v61, %v3916_v26 }
 0x290   : > { %v3920_v34 = vmul.f32 %v3881_v31, %v3881_v31  ;;  %v3919_v38 = vmul.f32 0.0078125, %v3918_v13 }
 0x292   : > { %v3921_v43 = vsub.f32 %v3919_v38, %v3920_v34 }
 0x294   : > { %v3922_v44 = vmax.f32 %v3921_v43, 0.0 }
 0x296   : > { %v3924_v8 = vadd.f32 1e-05, %v3922_v44 }
 0x298   : > { %5049 = vrsqrt.f32 %v3924_v8 }
 0x2a5   : > { %v5050_v22 = vpop.eup %5049 }
 0x2a6   : > { %v3926_v10 = vmul.f32 %v5050_v22, %v3923_v46 }
 0x2a8   : > { %v3928_v62 = vmul.f32 %v3926_v10, %v3881_v31  ;;  %v3934_v49 = vrot.slane %v3926_v10, %v3933_v59 }
 0x2aa   : > { %v3929_v42 = vsub.f32 %v3927_v1, %v3928_v62  ;;  %v3936_v27 = vmul.f32 %v3934_v49, %v6015_v20  ;;  %v3937_v11 = vmul.f32 %v3934_v49, %v6021_v60  ;;  %v3938_v21 = vmul.f32 %v3934_v49, %v6013_v19 }
 0x2ab   : > { %v3939_v6 = vmul.f32 %v3934_v49, %v6017_v5  ;;  %v3940_v32 = vmul.f32 %v3934_v49, %v6061_v39  ;;  %v3941_v18 = vmul.f32 %v3934_v49, %v6073_v3  ;;  %v3942_v4 = vmul.f32 %v3934_v49, %v6056_v17 }
 0x2ac   : > { %v3956_v57 = vrot.slane %v3929_v42, %v3933_v59  ;;  %v3943_v37 = vmul.f32 %v3934_v49, %v6067_v56  ;;  %v3944_v48 = vmul.f32 %v3934_v49, %v6023_v15  ;;  %v3945_v9 = vmul.f32 %v3934_v49, %v6029_v29 }
 0x2ad   : > { %v3946_v2 = vmul.f32 %v3934_v49, %v6019_v54  ;;  %v3947_v36 = vmul.f32 %v3934_v49, %v6025_v63  ;;  %v3948_v7 = vmul.f32 %v3934_v49, %v6076_v41  ;;  %v3949_v55 = vmul.f32 %v3934_v49, %v6081_v23 }
 0x2ae   : > { %v3958_v25 = vadd.f32 %v3956_v57, %v3936_v27  ;;  %v3959_v52 = vadd.f32 %v3956_v57, %v3937_v11  ;;  %v3960_v0 = vadd.f32 %v3956_v57, %v3938_v21  ;;  %v3961_v47 = vadd.f32 %v3956_v57, %v3939_v6 }
 0x2af   : > { %v3962_v30 = vadd.f32 %v3956_v57, %v3940_v32  ;;  %v3963_v58 = vadd.f32 %v3956_v57, %v3941_v18  ;;  %v3964_v40 = vadd.f32 %v3956_v57, %v3942_v4  ;;  %v3965_v12 = vadd.f32 %v3956_v57, %v3943_v37 }
 0x2b0   : > { %v3974_v35 = vmax.f32 %v3958_v25, 0.0  ;;  %v3975_v16 = vmax.f32 %v3959_v52, 0.0  ;;  %v3976_v28 = vmax.f32 %v3960_v0, 0.0  ;;  %v3977_v24 = vmax.f32 %v3961_v47, 0.0 }
 0x2b1   : > { %v3978_v14 = vmax.f32 %v3962_v30, 0.0  ;;  %v3979_v50 = vmax.f32 %v3963_v58, 0.0  ;;  %v3980_v26 = vmax.f32 %v3964_v40, 0.0  ;;  %v3981_v31 = vmax.f32 %v3965_v12, 0.0 }
 0x2b2   : > { %v3990_v61 = vpack.c.bf16 %v3974_v35, %v3974_v35  ;;  %v3991_v13 = vpack.c.bf16 %v3975_v16, %v3975_v16  ;;  %v3992_v34 = vpack.c.bf16 %v3976_v28, %v3976_v28  ;;  %v3993_v38 = vpack.c.bf16 %v3977_v24, %v3977_v24 }
 0x2b3   : > { %v3994_v43 = vpack.c.bf16 %v3978_v14, %v3978_v14  ;;  %v3995_v44 = vpack.c.bf16 %v3979_v50, %v3979_v50  ;;  %v3996_v8 = vpack.c.bf16 %v3980_v26, %v3980_v26  ;;  %v3997_v51 = vpack.c.bf16 %v3981_v31, %v3981_v31 }
 0x2b4   : > { %4006 = vst [vmem:[#allocation2 + $0x18] sm:$0xf] %v3990_v61  ;;  %4007 = vst [vmem:[#allocation2 + $0x28] sm:$0xf] %v3991_v13  ;;  %v3966_v53 = vadd.f32 %v3956_v57, %v3944_v48  ;;  %v3967_v46 = vadd.f32 %v3956_v57, %v3945_v9  ;;  %v3968_v59 = vadd.f32 %v3956_v57, %v3946_v2 }
 0x2b5   : > { %4008 = vst [vmem:[#allocation2 + $0x38] sm:$0xf] %v3992_v34  ;;  %4009 = vst [vmem:[#allocation2 + $0x48] sm:$0xf] %v3993_v38  ;;  %v3969_v22 = vadd.f32 %v3956_v57, %v3947_v36  ;;  %v3970_v10 = vadd.f32 %v3956_v57, %v3948_v7  ;;  %v3971_v1 = vadd.f32 %v3956_v57, %v3949_v55 }
 0x2b6   : > { %4010 = vst [vmem:[#allocation2 + $0x58] sm:$0xf] %v3994_v43  ;;  %4011 = vst [vmem:[#allocation2 + $0x68] sm:$0xf] %v3995_v44  ;;  %v3950_v62 = vmul.f32 %v3934_v49, %v6071_v33  ;;  %v3951_v42 = vmul.f32 %v3934_v49, %v6079_v45  ;;  %v3982_v27 = vmax.f32 %v3966_v53, 0.0  ;;  %v3983_v11 = vmax.f32 %v3967_v46, 0.0 }
 0x2b7   : > { %4012 = vst [vmem:[#allocation2 + $0x78] sm:$0xf] %v3996_v8  ;;  %4013 = vst [vmem:[#allocation2 + $0x88] sm:$0xf] %v3997_v51  ;;  %v3984_v21 = vmax.f32 %v3968_v59, 0.0  ;;  %v3985_v6 = vmax.f32 %v3969_v22, 0.0 }
 0x2b8   : > { %v3986_v32 = vmax.f32 %v3970_v10, 0.0  ;;  %v3987_v18 = vmax.f32 %v3971_v1, 0.0  ;;  %v3972_v4 = vadd.f32 %v3956_v57, %v3950_v62  ;;  %v3973_v37 = vadd.f32 %v3956_v57, %v3951_v42 }
 0x2b9   : > { %v3998_v48 = vpack.c.bf16 %v3982_v27, %v3982_v27  ;;  %v3999_v9 = vpack.c.bf16 %v3983_v11, %v3983_v11  ;;  %v4000_v2 = vpack.c.bf16 %v3984_v21, %v3984_v21  ;;  %v4001_v36 = vpack.c.bf16 %v3985_v6, %v3985_v6 }
 0x2ba   : > { %v4002_v25 = vpack.c.bf16 %v3986_v32, %v3986_v32  ;;  %v4003_v52 = vpack.c.bf16 %v3987_v18, %v3987_v18  ;;  %v3988_v7 = vmax.f32 %v3972_v4, 0.0  ;;  %v3989_v55 = vmax.f32 %v3973_v37, 0.0 }
 0x2bb   : > { %4014 = vst [vmem:[#allocation2 + $0xb8] sm:$0xf] %v3998_v48  ;;  %4015 = vst [vmem:[#allocation2 + $0xc8] sm:$0xf] %v3999_v9 }
 0x2bc   : > { %4016 = vst [vmem:[#allocation2 + $0xd8] sm:$0xf] %v4000_v2  ;;  %4017 = vst [vmem:[#allocation2 + $0xe8] sm:$0xf] %v4001_v36  ;;  %v4004_v49 = vpack.c.bf16 %v3988_v7, %v3988_v7  ;;  %v4005_v0 = vpack.c.bf16 %v3989_v55, %v3989_v55 }
 0x2bd   : > { %4018 = vst [vmem:[#allocation2 + $0xf8] sm:$0xf] %v4002_v25  ;;  %4019 = vst [vmem:[#allocation2 + $0x108] sm:$0xf] %v4003_v52 }
 0x2be   : > { %4020 = vst [vmem:[#allocation2 + $0x118] sm:$0xf] %v4004_v49  ;;  %4021 = vst [vmem:[#allocation2 + $0x128] sm:$0xf] %v4005_v0 }
 0x2bf PF: > { %p4447_p9 = scmp.ne.s32.totalorder %s5225_s19, 14 }
 0x2c1   : > { %4025 = sbr.rel (%p4447_p9) target bundleno = 718 (0x2ce), region = 64 }
 0x2c6   : > { %4026 = vst [vmem:[%s6253_s4] sm:$0xff] %v6015_v20  ;;  %4027 = vst [vmem:[%s6253_s4 + $0x8] sm:$0xff] %v6021_v60 }
 0x2c7   : > { %4028 = vst [vmem:[%s6253_s4 + $0x10] sm:$0xff] %v6013_v19  ;;  %4029 = vst [vmem:[%s6253_s4 + $0x18] sm:$0xff] %v6017_v5 }
 0x2c8   : > { %4030 = vst [vmem:[%s6253_s4 + $0x20] sm:$0xff] %v6061_v39  ;;  %4031 = vst [vmem:[%s6253_s4 + $0x28] sm:$0xff] %v6073_v3 }
 0x2c9   : > { %4032 = vst [vmem:[%s6253_s4 + $0x30] sm:$0xff] %v6056_v17  ;;  %4033 = vst [vmem:[%s6253_s4 + $0x38] sm:$0xff] %v6067_v56 }
 0x2ca   : > { %4034 = vst [vmem:[%s6253_s4 + $0x40] sm:$0xff] %v6023_v15  ;;  %4035 = vst [vmem:[%s6253_s4 + $0x48] sm:$0xff] %v6029_v29 }
 0x2cb   : > { %4036 = vst [vmem:[%s6253_s4 + $0x50] sm:$0xff] %v6019_v54  ;;  %4037 = vst [vmem:[%s6253_s4 + $0x58] sm:$0xff] %v6025_v63 }
 0x2cc   : > { %4038 = vst [vmem:[%s6253_s4 + $0x60] sm:$0xff] %v6076_v41  ;;  %4039 = vst [vmem:[%s6253_s4 + $0x68] sm:$0xff] %v6081_v23 }
 0x2cd   : > { %4040 = vst [vmem:[%s6253_s4 + $0x70] sm:$0xff] %v6071_v33  ;;  %4041 = vst [vmem:[%s6253_s4 + $0x78] sm:$0xff] %v6079_v45 }
 0x2ce PF: > { %s6300_s13 = sld [smem:[#allocation10_spill]]  ;;  %p17_p11 = scmp.ge.s32.totalorder %s5228_s20, 17  }
 0x2cf   : > { %s6301_s15 = smov %s5165_s16  ;;  %s6302_s16 = smov %s5169_s17 }
 0x2d0   : > { %s6304_s18 = smov %s5228_s20  ;;  %19 = sbr.rel (!%p17_p11) target bundleno = 8 (0x8), region = 123 }
 0x2d4   : > { %s6303_s17 = smov %s6300_s13 }
 0x2d5   :  { %4053 = vsyncpa [#allocation4], 1 }
 0x2d6   :  { %4055 = vsyncpa [#allocation4 + $0x1], 1 }
 0x2d7   :  { %4056 = vsyncpa [#allocation6], 1 }
 0x2d8   :  { %4058 = vsyncpa [#allocation6 + $0x1], 1 }

</bundles_post_ra>
